<compile_context>
chip_gen: v7x
topology: tpu7x:2x2x1
jax: 0.10.0
libtpu: 0.0.40
codegen_flags: <defaults>
</compile_context>

<pallas_src>
import math

import jax
import jax.numpy as jnp
from jax.experimental import pallas as pl
from jax.experimental.pallas import tpu as pltpu

D_MODEL = 64
N_HEAD = 8
HEAD_DIM = D_MODEL // N_HEAD
N_LAYERS = 3
D_FF = 128
D_CLS = 32


# ----------------------------- fused Pallas kernel -----------------------------

def _fused_forward_kernel(
    x_ref,        # (1, S, 1)  one batch element's features
    pe_ref,       # (S, D)     positional encoding
    emb_w_ref,    # (1, D)
    emb_b_ref,    # (1, D)
    wqkv_ref,     # (L, D, 3D) fused Q/K/V weights
    bqkv_ref,     # (L, 1, 3D)
    wo_ref,       # (L, D, D)
    bo_ref,       # (L, 1, D)
    ln1_g_ref,    # (L, 1, D)
    ln1_b_ref,    # (L, 1, D)
    w1_ref,       # (L, D, F)
    b1_ref,       # (L, 1, F)
    w2_ref,       # (L, F, D)
    b2_ref,       # (L, 1, D)
    ln2_g_ref,    # (L, 1, D)
    ln2_b_ref,    # (L, 1, D)
    c1_w_ref,     # (D, C)
    c1_b_ref,     # (1, C)
    c2_w_ref,     # (C, 1)
    c2_b_ref,     # (1, 1)
    o_ref,        # (1, 1, 1)  logit for this batch element
):
    scale = 1.0 / math.sqrt(HEAD_DIM)

    def mxu_dot(a, b):
        # bf16 operands on the MXU, f32 accumulation.
        return jnp.dot(a.astype(jnp.bfloat16), b.astype(jnp.bfloat16),
                       preferred_element_type=jnp.float32)

    def layernorm(y, g, b):
        # f32 elementwise math (eps=1e-5, PyTorch default)
        mean = jnp.mean(y, axis=-1, keepdims=True)
        var = jnp.mean((y - mean) ** 2, axis=-1, keepdims=True)
        return (y - mean) * jax.lax.rsqrt(var + 1e-5) * g + b

    def split_heads(t):  # (S, D) -> (H, S, Hd), static lane slices
        return jnp.stack(
            [t[:, i * HEAD_DIM:(i + 1) * HEAD_DIM] for i in range(N_HEAD)],
            axis=0)

    # ---- feature embedding (Linear(1, D)) + positional encoding ----
    x_col = x_ref[0]                                              # (S, 1)
    h = x_col * emb_w_ref[...] + emb_b_ref[...] + pe_ref[...]     # (S, D), f32

    # ---- encoder layers (unrolled; all weights stay VMEM-resident) ----
    for li in range(N_LAYERS):
        # fused Q/K/V projection: (S, D) @ (D, 3D)
        qkv = mxu_dot(h, wqkv_ref[li]) + bqkv_ref[li]             # (S, 3D)
        q = qkv[:, :D_MODEL]
        k = qkv[:, D_MODEL:2 * D_MODEL]
        v = qkv[:, 2 * D_MODEL:]

        qh = split_heads(q).astype(jnp.bfloat16)                  # (H, S, Hd)
        kh = split_heads(k).astype(jnp.bfloat16)
        vh = split_heads(v).astype(jnp.bfloat16)

        # scaled dot-product attention over all heads at once
        s = jnp.einsum('hqd,hkd->hqk', qh, kh,
                       preferred_element_type=jnp.float32) * scale  # (H, S, S)
        m = jnp.max(s, axis=-1, keepdims=True)
        p = jnp.exp(s - m)
        p = p * pl.reciprocal(jnp.sum(p, axis=-1, keepdims=True), approx=True)
        o = jnp.einsum('hqk,hkd->hqd', p.astype(jnp.bfloat16), vh,
                       preferred_element_type=jnp.float32)           # (H, S, Hd)
        a = jnp.concatenate([o[i] for i in range(N_HEAD)], axis=-1)  # (S, D)

        # output projection + residual + LayerNorm (post-norm)
        attn_out = mxu_dot(a, wo_ref[li]) + bo_ref[li]
        # TODO(synk): attention/FFN/classifier dropout is identity (inference)
        h1 = layernorm(h + attn_out, ln1_g_ref[li], ln1_b_ref[li])

        # feed-forward
        ff = jnp.maximum(mxu_dot(h1, w1_ref[li]) + b1_ref[li], 0.0)
        ff = mxu_dot(ff, w2_ref[li]) + b2_ref[li]
        h = layernorm(h1 + ff, ln2_g_ref[li], ln2_b_ref[li])

    # ---- mean over sequence + classifier head ----
    pooled = jnp.mean(h, axis=0, keepdims=True)                    # (1, D)
    z = jnp.maximum(mxu_dot(pooled, c1_w_ref[...]) + c1_b_ref[...], 0.0)
    logits = mxu_dot(z, c2_w_ref[...]) + c2_b_ref[...]             # (1, 1)
    o_ref[...] = logits.reshape(1, 1, 1)


def _full_spec(shape):
    zeros = (0,) * len(shape)
    return pl.BlockSpec(shape, lambda b: zeros)


def transformer_classifier_forward(params, x):
    """x: (batch, input_dim) float32 -> logits (batch,)"""
    bsz, seq = x.shape
    x3 = x[:, :, None]                                             # (B, S, 1)
    L = N_LAYERS

    in_specs = [
        pl.BlockSpec((1, seq, 1), lambda b: (b, 0, 0)),            # x
        _full_spec((seq, D_MODEL)),                                # pe
        _full_spec((1, D_MODEL)),                                  # emb_w
        _full_spec((1, D_MODEL)),                                  # emb_b
        _full_spec((L, D_MODEL, 3 * D_MODEL)),                     # wqkv
        _full_spec((L, 1, 3 * D_MODEL)),                           # bqkv
        _full_spec((L, D_MODEL, D_MODEL)),                         # wo
        _full_spec((L, 1, D_MODEL)),                               # bo
        _full_spec((L, 1, D_MODEL)),                               # ln1_g
        _full_spec((L, 1, D_MODEL)),                               # ln1_b
        _full_spec((L, D_MODEL, D_FF)),                            # w1
        _full_spec((L, 1, D_FF)),                                  # b1
        _full_spec((L, D_FF, D_MODEL)),                            # w2
        _full_spec((L, 1, D_MODEL)),                               # b2
        _full_spec((L, 1, D_MODEL)),                               # ln2_g
        _full_spec((L, 1, D_MODEL)),                               # ln2_b
        _full_spec((D_MODEL, D_CLS)),                              # c1_w
        _full_spec((1, D_CLS)),                                    # c1_b
        _full_spec((D_CLS, 1)),                                    # c2_w
        _full_spec((1, 1)),                                        # c2_b
    ]

    out = pl.pallas_call(
        _fused_forward_kernel,
        grid=(bsz,),
        in_specs=in_specs,
        out_specs=pl.BlockSpec((1, 1, 1), lambda b: (b, 0, 0)),
        out_shape=jax.ShapeDtypeStruct((bsz, 1, 1), jnp.float32),
        compiler_params=pltpu.CompilerParams(
            dimension_semantics=("parallel",)),
    )(x3, params["pe"], params["emb_w"], params["emb_b"],
      params["wqkv"], params["bqkv"], params["wo"], params["bo"],
      params["ln1_g"], params["ln1_b"], params["w1"], params["b1"],
      params["w2"], params["b2"], params["ln2_g"], params["ln2_b"],
      params["c1_w"], params["c1_b"], params["c2_w"], params["c2_b"])
    return out[:, 0, 0]                                            # (B,)


# --------------------------- parameter construction ---------------------------

def init_params(key, input_dim):
    def dense(k, din, dout, scale=0.02):
        kw, kb = jax.random.split(k)
        w = scale * jax.random.normal(kw, (din, dout), jnp.float32)
        b = scale * jax.random.normal(kb, (1, dout), jnp.float32)
        return w, b

    keys = jax.random.split(key, 2 + N_LAYERS)
    params = {}
    params["emb_w"], params["emb_b"] = dense(keys[0], 1, D_MODEL)

    # positional encoding buffer (interleaved sin/cos, as in PositionalEncoding)
    position = jnp.arange(input_dim, dtype=jnp.float32)[:, None]
    div_term = jnp.exp(jnp.arange(0, D_MODEL, 2, dtype=jnp.float32)
                       * (-math.log(10000.0) / D_MODEL))
    ang = position * div_term                                      # (S, D/2)
    params["pe"] = jnp.stack([jnp.sin(ang), jnp.cos(ang)], axis=-1).reshape(
        input_dim, D_MODEL)

    wqkv, bqkv, wo, bo = [], [], [], []
    w1, b1, w2, b2 = [], [], [], []
    ln1_g, ln1_b, ln2_g, ln2_b = [], [], [], []
    for li in range(N_LAYERS):
        lk = jax.random.split(keys[2 + li], 6)
        wq, bq = dense(lk[0], D_MODEL, D_MODEL)
        wk, bk = dense(lk[1], D_MODEL, D_MODEL)
        wv, bv = dense(lk[2], D_MODEL, D_MODEL)
        wqkv.append(jnp.concatenate([wq, wk, wv], axis=1))         # (D, 3D)
        bqkv.append(jnp.concatenate([bq, bk, bv], axis=1))         # (1, 3D)
        w, b = dense(lk[3], D_MODEL, D_MODEL); wo.append(w); bo.append(b)
        w, b = dense(lk[4], D_MODEL, D_FF);    w1.append(w); b1.append(b)
        w, b = dense(lk[5], D_FF, D_MODEL);    w2.append(w); b2.append(b)
        ln1_g.append(jnp.ones((1, D_MODEL), jnp.float32))
        ln1_b.append(jnp.zeros((1, D_MODEL), jnp.float32))
        ln2_g.append(jnp.ones((1, D_MODEL), jnp.float32))
        ln2_b.append(jnp.zeros((1, D_MODEL), jnp.float32))

    params["wqkv"] = jnp.stack(wqkv); params["bqkv"] = jnp.stack(bqkv)
    params["wo"] = jnp.stack(wo);     params["bo"] = jnp.stack(bo)
    params["w1"] = jnp.stack(w1);     params["b1"] = jnp.stack(b1)
    params["w2"] = jnp.stack(w2);     params["b2"] = jnp.stack(b2)
    params["ln1_g"] = jnp.stack(ln1_g); params["ln1_b"] = jnp.stack(ln1_b)
    params["ln2_g"] = jnp.stack(ln2_g); params["ln2_b"] = jnp.stack(ln2_b)

    kc1, kc2 = jax.random.split(keys[1])
    params["c1_w"], params["c1_b"] = dense(kc1, D_MODEL, D_CLS)
    params["c2_w"], params["c2_b"] = dense(kc2, D_CLS, 1)
    return params


if __name__ == "__main__":
    key = jax.random.PRNGKey(0)
    kx, kp = jax.random.split(key)

    batch, input_dim = 2, 16
    x = jax.random.normal(kx, (batch, input_dim), dtype=jnp.float32)
    params = init_params(kp, input_dim)

    fwd = jax.jit(transformer_classifier_forward)
    logits = fwd(params, x)
    jax.block_until_ready(logits)

    assert logits.shape == (batch,)
    assert logits.dtype == jnp.float32
    print("KERNEL_OK")
</pallas_src>

<mosaic_0001>
module attributes {stable_mosaic.version = 11 : i64} {
  func.func @_fused_forward_kernel(%arg0: i32, %arg1: memref<1x16x1xf32, #tpu.memory_space<vmem>>, %arg2: memref<16x64xf32, #tpu.memory_space<vmem>>, %arg3: memref<1x64xf32, #tpu.memory_space<vmem>>, %arg4: memref<1x64xf32, #tpu.memory_space<vmem>>, %arg5: memref<3x64x192xf32, #tpu.memory_space<vmem>>, %arg6: memref<3x1x192xf32, #tpu.memory_space<vmem>>, %arg7: memref<3x64x64xf32, #tpu.memory_space<vmem>>, %arg8: memref<3x1x64xf32, #tpu.memory_space<vmem>>, %arg9: memref<3x1x64xf32, #tpu.memory_space<vmem>>, %arg10: memref<3x1x64xf32, #tpu.memory_space<vmem>>, %arg11: memref<3x64x128xf32, #tpu.memory_space<vmem>>, %arg12: memref<3x1x128xf32, #tpu.memory_space<vmem>>, %arg13: memref<3x128x64xf32, #tpu.memory_space<vmem>>, %arg14: memref<3x1x64xf32, #tpu.memory_space<vmem>>, %arg15: memref<3x1x64xf32, #tpu.memory_space<vmem>>, %arg16: memref<3x1x64xf32, #tpu.memory_space<vmem>>, %arg17: memref<64x32xf32, #tpu.memory_space<vmem>>, %arg18: memref<1x32xf32, #tpu.memory_space<vmem>>, %arg19: memref<32x1xf32, #tpu.memory_space<vmem>>, %arg20: memref<1x1xf32, #tpu.memory_space<vmem>>, %arg21: memref<1x1x1xf32, #tpu.memory_space<vmem>>) attributes {dimension_semantics = [#tpu.dimension_semantics<parallel>], iteration_bounds = array<i64: 2>, scalar_prefetch = 0 : i64, scratch_operands = 0 : i64, tpu.core_type = #tpu.core_type<tc>, window_params = [{transform_indices = @transform_0, window_bounds = array<i64: 1, 16, 1>}, {pipeline_mode = #tpu.pipeline_mode<synchronous>, transform_indices = @transform_1, window_bounds = array<i64: 16, 64>}, {pipeline_mode = #tpu.pipeline_mode<synchronous>, transform_indices = @transform_2, window_bounds = array<i64: 1, 64>}, {pipeline_mode = #tpu.pipeline_mode<synchronous>, transform_indices = @transform_3, window_bounds = array<i64: 1, 64>}, {pipeline_mode = #tpu.pipeline_mode<synchronous>, transform_indices = @transform_4, window_bounds = array<i64: 3, 64, 192>}, {pipeline_mode = #tpu.pipeline_mode<synchronous>, transform_indices = @transform_5, window_bounds = array<i64: 3, 1, 192>}, {pipeline_mode = #tpu.pipeline_mode<synchronous>, transform_indices = @transform_6, window_bounds = array<i64: 3, 64, 64>}, {pipeline_mode = #tpu.pipeline_mode<synchronous>, transform_indices = @transform_7, window_bounds = array<i64: 3, 1, 64>}, {pipeline_mode = #tpu.pipeline_mode<synchronous>, transform_indices = @transform_8, window_bounds = array<i64: 3, 1, 64>}, {pipeline_mode = #tpu.pipeline_mode<synchronous>, transform_indices = @transform_9, window_bounds = array<i64: 3, 1, 64>}, {pipeline_mode = #tpu.pipeline_mode<synchronous>, transform_indices = @transform_10, window_bounds = array<i64: 3, 64, 128>}, {pipeline_mode = #tpu.pipeline_mode<synchronous>, transform_indices = @transform_11, window_bounds = array<i64: 3, 1, 128>}, {pipeline_mode = #tpu.pipeline_mode<synchronous>, transform_indices = @transform_12, window_bounds = array<i64: 3, 128, 64>}, {pipeline_mode = #tpu.pipeline_mode<synchronous>, transform_indices = @transform_13, window_bounds = array<i64: 3, 1, 64>}, {pipeline_mode = #tpu.pipeline_mode<synchronous>, transform_indices = @transform_14, window_bounds = array<i64: 3, 1, 64>}, {pipeline_mode = #tpu.pipeline_mode<synchronous>, transform_indices = @transform_15, window_bounds = array<i64: 3, 1, 64>}, {pipeline_mode = #tpu.pipeline_mode<synchronous>, transform_indices = @transform_16, window_bounds = array<i64: 64, 32>}, {pipeline_mode = #tpu.pipeline_mode<synchronous>, transform_indices = @transform_17, window_bounds = array<i64: 1, 32>}, {pipeline_mode = #tpu.pipeline_mode<synchronous>, transform_indices = @transform_18, window_bounds = array<i64: 32, 1>}, {pipeline_mode = #tpu.pipeline_mode<synchronous>, transform_indices = @transform_19, window_bounds = array<i64: 1, 1>}, {transform_indices = @transform_20, window_bounds = array<i64: 1, 1, 1>}]} {
    %c0 = arith.constant 0 : index
    %c0_0 = arith.constant 0 : index
    %c0_1 = arith.constant 0 : index
    %0 = vector.load %arg1[%c0, %c0_0, %c0_1] : memref<1x16x1xf32, #tpu.memory_space<vmem>>, vector<1x16x1xf32>
    %1 = vector.shape_cast %0 : vector<1x16x1xf32> to vector<16x1xf32>
    %c0_2 = arith.constant 0 : index
    %c0_3 = arith.constant 0 : index
    %2 = vector.load %arg3[%c0_2, %c0_3] : memref<1x64xf32, #tpu.memory_space<vmem>>, vector<1x64xf32>
    %3 = vector.broadcast %1 : vector<16x1xf32> to vector<16x64xf32>
    %4 = vector.broadcast %2 : vector<1x64xf32> to vector<16x64xf32>
    %5 = arith.mulf %3, %4 : vector<16x64xf32>
    %c0_4 = arith.constant 0 : index
    %c0_5 = arith.constant 0 : index
    %6 = vector.load %arg4[%c0_4, %c0_5] : memref<1x64xf32, #tpu.memory_space<vmem>>, vector<1x64xf32>
    %7 = vector.broadcast %6 : vector<1x64xf32> to vector<16x64xf32>
    %8 = arith.addf %5, %7 : vector<16x64xf32>
    %c0_6 = arith.constant 0 : index
    %c0_7 = arith.constant 0 : index
    %9 = vector.load %arg2[%c0_6, %c0_7] : memref<16x64xf32, #tpu.memory_space<vmem>>, vector<16x64xf32>
    %10 = arith.addf %8, %9 : vector<16x64xf32>
    %c0_8 = arith.constant 0 : index
    %c0_9 = arith.constant 0 : index
    %c0_10 = arith.constant 0 : index
    %11 = vector.load %arg5[%c0_8, %c0_9, %c0_10] : memref<3x64x192xf32, #tpu.memory_space<vmem>>, vector<1x64x192xf32>
    %12 = vector.shape_cast %11 : vector<1x64x192xf32> to vector<64x192xf32>
    %13 = arith.truncf %10 : vector<16x64xf32> to vector<16x64xbf16>
    %14 = arith.truncf %12 : vector<64x192xf32> to vector<64x192xbf16>
    %cst = arith.constant dense<0.000000e+00> : vector<16x192xf32>
    %15 = tpu.matmul %13, %14, %cst {dimension_numbers = #tpu.dot_dimension_numbers<[1], [0], [0], [1], [0, 0, 1, 1], [], []>} : vector<16x64xbf16>, vector<64x192xbf16>, vector<16x192xf32> -> vector<16x192xf32>
    %c0_11 = arith.constant 0 : index
    %c0_12 = arith.constant 0 : index
    %c0_13 = arith.constant 0 : index
    %16 = vector.load %arg6[%c0_11, %c0_12, %c0_13] : memref<3x1x192xf32, #tpu.memory_space<vmem>>, vector<1x1x192xf32>
    %17 = vector.shape_cast %16 : vector<1x1x192xf32> to vector<1x192xf32>
    %18 = vector.broadcast %17 : vector<1x192xf32> to vector<16x192xf32>
    %19 = arith.addf %15, %18 : vector<16x192xf32>
    %20 = vector.extract_strided_slice %19 {offsets = [0, 0], sizes = [16, 64], strides = [1, 1]} : vector<16x192xf32> to vector<16x64xf32>
    %21 = vector.extract_strided_slice %19 {offsets = [0, 64], sizes = [16, 64], strides = [1, 1]} : vector<16x192xf32> to vector<16x64xf32>
    %22 = vector.extract_strided_slice %19 {offsets = [0, 128], sizes = [16, 64], strides = [1, 1]} : vector<16x192xf32> to vector<16x64xf32>
    %23 = vector.extract_strided_slice %20 {offsets = [0, 0], sizes = [16, 8], strides = [1, 1]} : vector<16x64xf32> to vector<16x8xf32>
    %24 = vector.extract_strided_slice %20 {offsets = [0, 8], sizes = [16, 8], strides = [1, 1]} : vector<16x64xf32> to vector<16x8xf32>
    %25 = vector.extract_strided_slice %20 {offsets = [0, 16], sizes = [16, 8], strides = [1, 1]} : vector<16x64xf32> to vector<16x8xf32>
    %26 = vector.extract_strided_slice %20 {offsets = [0, 24], sizes = [16, 8], strides = [1, 1]} : vector<16x64xf32> to vector<16x8xf32>
    %27 = vector.extract_strided_slice %20 {offsets = [0, 32], sizes = [16, 8], strides = [1, 1]} : vector<16x64xf32> to vector<16x8xf32>
    %28 = vector.extract_strided_slice %20 {offsets = [0, 40], sizes = [16, 8], strides = [1, 1]} : vector<16x64xf32> to vector<16x8xf32>
    %29 = vector.extract_strided_slice %20 {offsets = [0, 48], sizes = [16, 8], strides = [1, 1]} : vector<16x64xf32> to vector<16x8xf32>
    %30 = vector.extract_strided_slice %20 {offsets = [0, 56], sizes = [16, 8], strides = [1, 1]} : vector<16x64xf32> to vector<16x8xf32>
    %31 = vector.shape_cast %23 : vector<16x8xf32> to vector<1x16x8xf32>
    %32 = vector.shape_cast %24 : vector<16x8xf32> to vector<1x16x8xf32>
    %33 = vector.shape_cast %25 : vector<16x8xf32> to vector<1x16x8xf32>
    %34 = vector.shape_cast %26 : vector<16x8xf32> to vector<1x16x8xf32>
    %35 = vector.shape_cast %27 : vector<16x8xf32> to vector<1x16x8xf32>
    %36 = vector.shape_cast %28 : vector<16x8xf32> to vector<1x16x8xf32>
    %37 = vector.shape_cast %29 : vector<16x8xf32> to vector<1x16x8xf32>
    %38 = vector.shape_cast %30 : vector<16x8xf32> to vector<1x16x8xf32>
    %39 = tpu.concatenate %31, %32, %33, %34, %35, %36, %37, %38 in 0 : vector<1x16x8xf32>, vector<1x16x8xf32>, vector<1x16x8xf32>, vector<1x16x8xf32>, vector<1x16x8xf32>, vector<1x16x8xf32>, vector<1x16x8xf32>, vector<1x16x8xf32> -> vector<8x16x8xf32>
    %40 = arith.truncf %39 : vector<8x16x8xf32> to vector<8x16x8xbf16>
    %41 = vector.extract_strided_slice %21 {offsets = [0, 0], sizes = [16, 8], strides = [1, 1]} : vector<16x64xf32> to vector<16x8xf32>
    %42 = vector.extract_strided_slice %21 {offsets = [0, 8], sizes = [16, 8], strides = [1, 1]} : vector<16x64xf32> to vector<16x8xf32>
    %43 = vector.extract_strided_slice %21 {offsets = [0, 16], sizes = [16, 8], strides = [1, 1]} : vector<16x64xf32> to vector<16x8xf32>
    %44 = vector.extract_strided_slice %21 {offsets = [0, 24], sizes = [16, 8], strides = [1, 1]} : vector<16x64xf32> to vector<16x8xf32>
    %45 = vector.extract_strided_slice %21 {offsets = [0, 32], sizes = [16, 8], strides = [1, 1]} : vector<16x64xf32> to vector<16x8xf32>
    %46 = vector.extract_strided_slice %21 {offsets = [0, 40], sizes = [16, 8], strides = [1, 1]} : vector<16x64xf32> to vector<16x8xf32>
    %47 = vector.extract_strided_slice %21 {offsets = [0, 48], sizes = [16, 8], strides = [1, 1]} : vector<16x64xf32> to vector<16x8xf32>
    %48 = vector.extract_strided_slice %21 {offsets = [0, 56], sizes = [16, 8], strides = [1, 1]} : vector<16x64xf32> to vector<16x8xf32>
    %49 = vector.shape_cast %41 : vector<16x8xf32> to vector<1x16x8xf32>
    %50 = vector.shape_cast %42 : vector<16x8xf32> to vector<1x16x8xf32>
    %51 = vector.shape_cast %43 : vector<16x8xf32> to vector<1x16x8xf32>
    %52 = vector.shape_cast %44 : vector<16x8xf32> to vector<1x16x8xf32>
    %53 = vector.shape_cast %45 : vector<16x8xf32> to vector<1x16x8xf32>
    %54 = vector.shape_cast %46 : vector<16x8xf32> to vector<1x16x8xf32>
    %55 = vector.shape_cast %47 : vector<16x8xf32> to vector<1x16x8xf32>
    %56 = vector.shape_cast %48 : vector<16x8xf32> to vector<1x16x8xf32>
    %57 = tpu.concatenate %49, %50, %51, %52, %53, %54, %55, %56 in 0 : vector<1x16x8xf32>, vector<1x16x8xf32>, vector<1x16x8xf32>, vector<1x16x8xf32>, vector<1x16x8xf32>, vector<1x16x8xf32>, vector<1x16x8xf32>, vector<1x16x8xf32> -> vector<8x16x8xf32>
    %58 = arith.truncf %57 : vector<8x16x8xf32> to vector<8x16x8xbf16>
    %59 = vector.extract_strided_slice %22 {offsets = [0, 0], sizes = [16, 8], strides = [1, 1]} : vector<16x64xf32> to vector<16x8xf32>
    %60 = vector.extract_strided_slice %22 {offsets = [0, 8], sizes = [16, 8], strides = [1, 1]} : vector<16x64xf32> to vector<16x8xf32>
    %61 = vector.extract_strided_slice %22 {offsets = [0, 16], sizes = [16, 8], strides = [1, 1]} : vector<16x64xf32> to vector<16x8xf32>
    %62 = vector.extract_strided_slice %22 {offsets = [0, 24], sizes = [16, 8], strides = [1, 1]} : vector<16x64xf32> to vector<16x8xf32>
    %63 = vector.extract_strided_slice %22 {offsets = [0, 32], sizes = [16, 8], strides = [1, 1]} : vector<16x64xf32> to vector<16x8xf32>
    %64 = vector.extract_strided_slice %22 {offsets = [0, 40], sizes = [16, 8], strides = [1, 1]} : vector<16x64xf32> to vector<16x8xf32>
    %65 = vector.extract_strided_slice %22 {offsets = [0, 48], sizes = [16, 8], strides = [1, 1]} : vector<16x64xf32> to vector<16x8xf32>
    %66 = vector.extract_strided_slice %22 {offsets = [0, 56], sizes = [16, 8], strides = [1, 1]} : vector<16x64xf32> to vector<16x8xf32>
    %67 = vector.shape_cast %59 : vector<16x8xf32> to vector<1x16x8xf32>
    %68 = vector.shape_cast %60 : vector<16x8xf32> to vector<1x16x8xf32>
    %69 = vector.shape_cast %61 : vector<16x8xf32> to vector<1x16x8xf32>
    %70 = vector.shape_cast %62 : vector<16x8xf32> to vector<1x16x8xf32>
    %71 = vector.shape_cast %63 : vector<16x8xf32> to vector<1x16x8xf32>
    %72 = vector.shape_cast %64 : vector<16x8xf32> to vector<1x16x8xf32>
    %73 = vector.shape_cast %65 : vector<16x8xf32> to vector<1x16x8xf32>
    %74 = vector.shape_cast %66 : vector<16x8xf32> to vector<1x16x8xf32>
    %75 = tpu.concatenate %67, %68, %69, %70, %71, %72, %73, %74 in 0 : vector<1x16x8xf32>, vector<1x16x8xf32>, vector<1x16x8xf32>, vector<1x16x8xf32>, vector<1x16x8xf32>, vector<1x16x8xf32>, vector<1x16x8xf32>, vector<1x16x8xf32> -> vector<8x16x8xf32>
    %76 = arith.truncf %75 : vector<8x16x8xf32> to vector<8x16x8xbf16>
    "tpu.trace_start"() <{level = 10 : i32, message = "hqd,hkd->hqk"}> : () -> ()
    %cst_14 = arith.constant dense<0.000000e+00> : vector<8x16x16xf32>
    %77 = tpu.matmul %40, %58, %cst_14 {dimension_numbers = #tpu.dot_dimension_numbers<[2], [2], [1], [1], [0, 0, 0, 1, 1, 1], [0], [0]>} : vector<8x16x8xbf16>, vector<8x16x8xbf16>, vector<8x16x16xf32> -> vector<8x16x16xf32>
    "tpu.trace_stop"() : () -> ()
    %cst_15 = arith.constant 0.353553385 : f32
    %78 = vector.broadcast %cst_15 : f32 to vector<8x16x16xf32>
    %79 = arith.mulf %77, %78 : vector<8x16x16xf32>
    %cst_16 = arith.constant dense<0xFF800000> : vector<8x16xf32>
    %80 = vector.multi_reduction <maximumf>, %79, %cst_16 [2] : vector<8x16x16xf32> to vector<8x16xf32>
    %81 = vector.shape_cast %80 : vector<8x16xf32> to vector<8x16x1xf32>
    %82 = vector.broadcast %81 : vector<8x16x1xf32> to vector<8x16x16xf32>
    %83 = arith.subf %79, %82 : vector<8x16x16xf32>
    %84 = math.exp %83 : vector<8x16x16xf32>
    %cst_17 = arith.constant dense<0.000000e+00> : vector<8x16xf32>
    %85 = vector.multi_reduction <add>, %84, %cst_17 [2] : vector<8x16x16xf32> to vector<8x16xf32>
    %86 = vector.shape_cast %85 : vector<8x16xf32> to vector<8x16x1xf32>
    %87 = tpu.reciprocal %86 {approx = true} : vector<8x16x1xf32> -> vector<8x16x1xf32>
    %88 = vector.broadcast %87 : vector<8x16x1xf32> to vector<8x16x16xf32>
    %89 = arith.mulf %84, %88 : vector<8x16x16xf32>
    %90 = arith.truncf %89 : vector<8x16x16xf32> to vector<8x16x16xbf16>
    "tpu.trace_start"() <{level = 10 : i32, message = "hqk,hkd->hqd"}> : () -> ()
    %cst_18 = arith.constant dense<0.000000e+00> : vector<8x16x8xf32>
    %91 = tpu.matmul %90, %76, %cst_18 {dimension_numbers = #tpu.dot_dimension_numbers<[2], [1], [1], [2], [0, 0, 0, 1, 1, 2], [0], [0]>} : vector<8x16x16xbf16>, vector<8x16x8xbf16>, vector<8x16x8xf32> -> vector<8x16x8xf32>
    "tpu.trace_stop"() : () -> ()
    %92 = vector.extract_strided_slice %91 {offsets = [0, 0, 0], sizes = [1, 16, 8], strides = [1, 1, 1]} : vector<8x16x8xf32> to vector<1x16x8xf32>
    %93 = vector.shape_cast %92 : vector<1x16x8xf32> to vector<16x8xf32>
    %94 = vector.extract_strided_slice %91 {offsets = [1, 0, 0], sizes = [1, 16, 8], strides = [1, 1, 1]} : vector<8x16x8xf32> to vector<1x16x8xf32>
    %95 = vector.shape_cast %94 : vector<1x16x8xf32> to vector<16x8xf32>
    %96 = vector.extract_strided_slice %91 {offsets = [2, 0, 0], sizes = [1, 16, 8], strides = [1, 1, 1]} : vector<8x16x8xf32> to vector<1x16x8xf32>
    %97 = vector.shape_cast %96 : vector<1x16x8xf32> to vector<16x8xf32>
    %98 = vector.extract_strided_slice %91 {offsets = [3, 0, 0], sizes = [1, 16, 8], strides = [1, 1, 1]} : vector<8x16x8xf32> to vector<1x16x8xf32>
    %99 = vector.shape_cast %98 : vector<1x16x8xf32> to vector<16x8xf32>
    %100 = vector.extract_strided_slice %91 {offsets = [4, 0, 0], sizes = [1, 16, 8], strides = [1, 1, 1]} : vector<8x16x8xf32> to vector<1x16x8xf32>
    %101 = vector.shape_cast %100 : vector<1x16x8xf32> to vector<16x8xf32>
    %102 = vector.extract_strided_slice %91 {offsets = [5, 0, 0], sizes = [1, 16, 8], strides = [1, 1, 1]} : vector<8x16x8xf32> to vector<1x16x8xf32>
    %103 = vector.shape_cast %102 : vector<1x16x8xf32> to vector<16x8xf32>
    %104 = vector.extract_strided_slice %91 {offsets = [6, 0, 0], sizes = [1, 16, 8], strides = [1, 1, 1]} : vector<8x16x8xf32> to vector<1x16x8xf32>
    %105 = vector.shape_cast %104 : vector<1x16x8xf32> to vector<16x8xf32>
    %106 = vector.extract_strided_slice %91 {offsets = [7, 0, 0], sizes = [1, 16, 8], strides = [1, 1, 1]} : vector<8x16x8xf32> to vector<1x16x8xf32>
    %107 = vector.shape_cast %106 : vector<1x16x8xf32> to vector<16x8xf32>
    %108 = tpu.concatenate %93, %95, %97, %99, %101, %103, %105, %107 in 1 : vector<16x8xf32>, vector<16x8xf32>, vector<16x8xf32>, vector<16x8xf32>, vector<16x8xf32>, vector<16x8xf32>, vector<16x8xf32>, vector<16x8xf32> -> vector<16x64xf32>
    %c0_19 = arith.constant 0 : index
    %c0_20 = arith.constant 0 : index
    %c0_21 = arith.constant 0 : index
    %109 = vector.load %arg7[%c0_19, %c0_20, %c0_21] : memref<3x64x64xf32, #tpu.memory_space<vmem>>, vector<1x64x64xf32>
    %110 = vector.shape_cast %109 : vector<1x64x64xf32> to vector<64x64xf32>
    %111 = arith.truncf %108 : vector<16x64xf32> to vector<16x64xbf16>
    %112 = arith.truncf %110 : vector<64x64xf32> to vector<64x64xbf16>
    %cst_22 = arith.constant dense<0.000000e+00> : vector<16x64xf32>
    %113 = tpu.matmul %111, %112, %cst_22 {dimension_numbers = #tpu.dot_dimension_numbers<[1], [0], [0], [1], [0, 0, 1, 1], [], []>} : vector<16x64xbf16>, vector<64x64xbf16>, vector<16x64xf32> -> vector<16x64xf32>
    %c0_23 = arith.constant 0 : index
    %c0_24 = arith.constant 0 : index
    %c0_25 = arith.constant 0 : index
    %114 = vector.load %arg8[%c0_23, %c0_24, %c0_25] : memref<3x1x64xf32, #tpu.memory_space<vmem>>, vector<1x1x64xf32>
    %115 = vector.shape_cast %114 : vector<1x1x64xf32> to vector<1x64xf32>
    %116 = vector.broadcast %115 : vector<1x64xf32> to vector<16x64xf32>
    %117 = arith.addf %113, %116 : vector<16x64xf32>
    %118 = arith.addf %10, %117 : vector<16x64xf32>
    %c0_26 = arith.constant 0 : index
    %c0_27 = arith.constant 0 : index
    %c0_28 = arith.constant 0 : index
    %119 = vector.load %arg9[%c0_26, %c0_27, %c0_28] : memref<3x1x64xf32, #tpu.memory_space<vmem>>, vector<1x1x64xf32>
    %120 = vector.shape_cast %119 : vector<1x1x64xf32> to vector<1x64xf32>
    %c0_29 = arith.constant 0 : index
    %c0_30 = arith.constant 0 : index
    %c0_31 = arith.constant 0 : index
    %121 = vector.load %arg10[%c0_29, %c0_30, %c0_31] : memref<3x1x64xf32, #tpu.memory_space<vmem>>, vector<1x1x64xf32>
    %122 = vector.shape_cast %121 : vector<1x1x64xf32> to vector<1x64xf32>
    %cst_32 = arith.constant dense<0.000000e+00> : vector<16xf32>
    %123 = vector.multi_reduction <add>, %118, %cst_32 [1] : vector<16x64xf32> to vector<16xf32>
    %124 = vector.shape_cast %123 : vector<16xf32> to vector<16x1xf32>
    %cst_33 = arith.constant 6.400000e+01 : f32
    %125 = vector.broadcast %cst_33 : f32 to vector<16x1xf32>
    %126 = arith.divf %124, %125 : vector<16x1xf32>
    %127 = vector.broadcast %126 : vector<16x1xf32> to vector<16x64xf32>
    %128 = arith.subf %118, %127 : vector<16x64xf32>
    %129 = arith.mulf %128, %128 : vector<16x64xf32>
    %cst_34 = arith.constant dense<0.000000e+00> : vector<16xf32>
    %130 = vector.multi_reduction <add>, %129, %cst_34 [1] : vector<16x64xf32> to vector<16xf32>
    %131 = vector.shape_cast %130 : vector<16xf32> to vector<16x1xf32>
    %cst_35 = arith.constant 6.400000e+01 : f32
    %132 = vector.broadcast %cst_35 : f32 to vector<16x1xf32>
    %133 = arith.divf %131, %132 : vector<16x1xf32>
    %134 = vector.broadcast %126 : vector<16x1xf32> to vector<16x64xf32>
    %135 = arith.subf %118, %134 : vector<16x64xf32>
    %cst_36 = arith.constant 9.99999974E-6 : f32
    %136 = vector.broadcast %cst_36 : f32 to vector<16x1xf32>
    %137 = arith.addf %133, %136 : vector<16x1xf32>
    %138 = math.rsqrt %137 : vector<16x1xf32>
    %139 = vector.broadcast %138 : vector<16x1xf32> to vector<16x64xf32>
    %140 = arith.mulf %135, %139 : vector<16x64xf32>
    %141 = vector.broadcast %120 : vector<1x64xf32> to vector<16x64xf32>
    %142 = arith.mulf %140, %141 : vector<16x64xf32>
    %143 = vector.broadcast %122 : vector<1x64xf32> to vector<16x64xf32>
    %144 = arith.addf %142, %143 : vector<16x64xf32>
    %c0_37 = arith.constant 0 : index
    %c0_38 = arith.constant 0 : index
    %c0_39 = arith.constant 0 : index
    %145 = vector.load %arg11[%c0_37, %c0_38, %c0_39] : memref<3x64x128xf32, #tpu.memory_space<vmem>>, vector<1x64x128xf32>
    %146 = vector.shape_cast %145 : vector<1x64x128xf32> to vector<64x128xf32>
    %147 = arith.truncf %144 : vector<16x64xf32> to vector<16x64xbf16>
    %148 = arith.truncf %146 : vector<64x128xf32> to vector<64x128xbf16>
    %cst_40 = arith.constant dense<0.000000e+00> : vector<16x128xf32>
    %149 = tpu.matmul %147, %148, %cst_40 {dimension_numbers = #tpu.dot_dimension_numbers<[1], [0], [0], [1], [0, 0, 1, 1], [], []>} : vector<16x64xbf16>, vector<64x128xbf16>, vector<16x128xf32> -> vector<16x128xf32>
    %c0_41 = arith.constant 0 : index
    %c0_42 = arith.constant 0 : index
    %c0_43 = arith.constant 0 : index
    %150 = vector.load %arg12[%c0_41, %c0_42, %c0_43] : memref<3x1x128xf32, #tpu.memory_space<vmem>>, vector<1x1x128xf32>
    %151 = vector.shape_cast %150 : vector<1x1x128xf32> to vector<1x128xf32>
    %152 = vector.broadcast %151 : vector<1x128xf32> to vector<16x128xf32>
    %153 = arith.addf %149, %152 : vector<16x128xf32>
    %cst_44 = arith.constant 0.000000e+00 : f32
    %154 = vector.broadcast %cst_44 : f32 to vector<16x128xf32>
    %155 = arith.maximumf %153, %154 : vector<16x128xf32>
    %c0_45 = arith.constant 0 : index
    %c0_46 = arith.constant 0 : index
    %c0_47 = arith.constant 0 : index
    %156 = vector.load %arg13[%c0_45, %c0_46, %c0_47] : memref<3x128x64xf32, #tpu.memory_space<vmem>>, vector<1x128x64xf32>
    %157 = vector.shape_cast %156 : vector<1x128x64xf32> to vector<128x64xf32>
    %158 = arith.truncf %155 : vector<16x128xf32> to vector<16x128xbf16>
    %159 = arith.truncf %157 : vector<128x64xf32> to vector<128x64xbf16>
    %cst_48 = arith.constant dense<0.000000e+00> : vector<16x64xf32>
    %160 = tpu.matmul %158, %159, %cst_48 {dimension_numbers = #tpu.dot_dimension_numbers<[1], [0], [0], [1], [0, 0, 1, 1], [], []>} : vector<16x128xbf16>, vector<128x64xbf16>, vector<16x64xf32> -> vector<16x64xf32>
    %c0_49 = arith.constant 0 : index
    %c0_50 = arith.constant 0 : index
    %c0_51 = arith.constant 0 : index
    %161 = vector.load %arg14[%c0_49, %c0_50, %c0_51] : memref<3x1x64xf32, #tpu.memory_space<vmem>>, vector<1x1x64xf32>
    %162 = vector.shape_cast %161 : vector<1x1x64xf32> to vector<1x64xf32>
    %163 = vector.broadcast %162 : vector<1x64xf32> to vector<16x64xf32>
    %164 = arith.addf %160, %163 : vector<16x64xf32>
    %165 = arith.addf %144, %164 : vector<16x64xf32>
    %c0_52 = arith.constant 0 : index
    %c0_53 = arith.constant 0 : index
    %c0_54 = arith.constant 0 : index
    %166 = vector.load %arg15[%c0_52, %c0_53, %c0_54] : memref<3x1x64xf32, #tpu.memory_space<vmem>>, vector<1x1x64xf32>
    %167 = vector.shape_cast %166 : vector<1x1x64xf32> to vector<1x64xf32>
    %c0_55 = arith.constant 0 : index
    %c0_56 = arith.constant 0 : index
    %c0_57 = arith.constant 0 : index
    %168 = vector.load %arg16[%c0_55, %c0_56, %c0_57] : memref<3x1x64xf32, #tpu.memory_space<vmem>>, vector<1x1x64xf32>
    %169 = vector.shape_cast %168 : vector<1x1x64xf32> to vector<1x64xf32>
    %cst_58 = arith.constant dense<0.000000e+00> : vector<16xf32>
    %170 = vector.multi_reduction <add>, %165, %cst_58 [1] : vector<16x64xf32> to vector<16xf32>
    %171 = vector.shape_cast %170 : vector<16xf32> to vector<16x1xf32>
    %cst_59 = arith.constant 6.400000e+01 : f32
    %172 = vector.broadcast %cst_59 : f32 to vector<16x1xf32>
    %173 = arith.divf %171, %172 : vector<16x1xf32>
    %174 = vector.broadcast %173 : vector<16x1xf32> to vector<16x64xf32>
    %175 = arith.subf %165, %174 : vector<16x64xf32>
    %176 = arith.mulf %175, %175 : vector<16x64xf32>
    %cst_60 = arith.constant dense<0.000000e+00> : vector<16xf32>
    %177 = vector.multi_reduction <add>, %176, %cst_60 [1] : vector<16x64xf32> to vector<16xf32>
    %178 = vector.shape_cast %177 : vector<16xf32> to vector<16x1xf32>
    %cst_61 = arith.constant 6.400000e+01 : f32
    %179 = vector.broadcast %cst_61 : f32 to vector<16x1xf32>
    %180 = arith.divf %178, %179 : vector<16x1xf32>
    %181 = vector.broadcast %173 : vector<16x1xf32> to vector<16x64xf32>
    %182 = arith.subf %165, %181 : vector<16x64xf32>
    %cst_62 = arith.constant 9.99999974E-6 : f32
    %183 = vector.broadcast %cst_62 : f32 to vector<16x1xf32>
    %184 = arith.addf %180, %183 : vector<16x1xf32>
    %185 = math.rsqrt %184 : vector<16x1xf32>
    %186 = vector.broadcast %185 : vector<16x1xf32> to vector<16x64xf32>
    %187 = arith.mulf %182, %186 : vector<16x64xf32>
    %188 = vector.broadcast %167 : vector<1x64xf32> to vector<16x64xf32>
    %189 = arith.mulf %187, %188 : vector<16x64xf32>
    %190 = vector.broadcast %169 : vector<1x64xf32> to vector<16x64xf32>
    %191 = arith.addf %189, %190 : vector<16x64xf32>
    %c1 = arith.constant 1 : index
    %c0_63 = arith.constant 0 : index
    %c0_64 = arith.constant 0 : index
    %192 = vector.load %arg5[%c1, %c0_63, %c0_64] : memref<3x64x192xf32, #tpu.memory_space<vmem>>, vector<1x64x192xf32>
    %193 = vector.shape_cast %192 : vector<1x64x192xf32> to vector<64x192xf32>
    %194 = arith.truncf %191 : vector<16x64xf32> to vector<16x64xbf16>
    %195 = arith.truncf %193 : vector<64x192xf32> to vector<64x192xbf16>
    %cst_65 = arith.constant dense<0.000000e+00> : vector<16x192xf32>
    %196 = tpu.matmul %194, %195, %cst_65 {dimension_numbers = #tpu.dot_dimension_numbers<[1], [0], [0], [1], [0, 0, 1, 1], [], []>} : vector<16x64xbf16>, vector<64x192xbf16>, vector<16x192xf32> -> vector<16x192xf32>
    %c1_66 = arith.constant 1 : index
    %c0_67 = arith.constant 0 : index
    %c0_68 = arith.constant 0 : index
    %197 = vector.load %arg6[%c1_66, %c0_67, %c0_68] : memref<3x1x192xf32, #tpu.memory_space<vmem>>, vector<1x1x192xf32>
    %198 = vector.shape_cast %197 : vector<1x1x192xf32> to vector<1x192xf32>
    %199 = vector.broadcast %198 : vector<1x192xf32> to vector<16x192xf32>
    %200 = arith.addf %196, %199 : vector<16x192xf32>
    %201 = vector.extract_strided_slice %200 {offsets = [0, 0], sizes = [16, 64], strides = [1, 1]} : vector<16x192xf32> to vector<16x64xf32>
    %202 = vector.extract_strided_slice %200 {offsets = [0, 64], sizes = [16, 64], strides = [1, 1]} : vector<16x192xf32> to vector<16x64xf32>
    %203 = vector.extract_strided_slice %200 {offsets = [0, 128], sizes = [16, 64], strides = [1, 1]} : vector<16x192xf32> to vector<16x64xf32>
    %204 = vector.extract_strided_slice %201 {offsets = [0, 0], sizes = [16, 8], strides = [1, 1]} : vector<16x64xf32> to vector<16x8xf32>
    %205 = vector.extract_strided_slice %201 {offsets = [0, 8], sizes = [16, 8], strides = [1, 1]} : vector<16x64xf32> to vector<16x8xf32>
    %206 = vector.extract_strided_slice %201 {offsets = [0, 16], sizes = [16, 8], strides = [1, 1]} : vector<16x64xf32> to vector<16x8xf32>
    %207 = vector.extract_strided_slice %201 {offsets = [0, 24], sizes = [16, 8], strides = [1, 1]} : vector<16x64xf32> to vector<16x8xf32>
    %208 = vector.extract_strided_slice %201 {offsets = [0, 32], sizes = [16, 8], strides = [1, 1]} : vector<16x64xf32> to vector<16x8xf32>
    %209 = vector.extract_strided_slice %201 {offsets = [0, 40], sizes = [16, 8], strides = [1, 1]} : vector<16x64xf32> to vector<16x8xf32>
    %210 = vector.extract_strided_slice %201 {offsets = [0, 48], sizes = [16, 8], strides = [1, 1]} : vector<16x64xf32> to vector<16x8xf32>
    %211 = vector.extract_strided_slice %201 {offsets = [0, 56], sizes = [16, 8], strides = [1, 1]} : vector<16x64xf32> to vector<16x8xf32>
    %212 = vector.shape_cast %204 : vector<16x8xf32> to vector<1x16x8xf32>
    %213 = vector.shape_cast %205 : vector<16x8xf32> to vector<1x16x8xf32>
    %214 = vector.shape_cast %206 : vector<16x8xf32> to vector<1x16x8xf32>
    %215 = vector.shape_cast %207 : vector<16x8xf32> to vector<1x16x8xf32>
    %216 = vector.shape_cast %208 : vector<16x8xf32> to vector<1x16x8xf32>
    %217 = vector.shape_cast %209 : vector<16x8xf32> to vector<1x16x8xf32>
    %218 = vector.shape_cast %210 : vector<16x8xf32> to vector<1x16x8xf32>
    %219 = vector.shape_cast %211 : vector<16x8xf32> to vector<1x16x8xf32>
    %220 = tpu.concatenate %212, %213, %214, %215, %216, %217, %218, %219 in 0 : vector<1x16x8xf32>, vector<1x16x8xf32>, vector<1x16x8xf32>, vector<1x16x8xf32>, vector<1x16x8xf32>, vector<1x16x8xf32>, vector<1x16x8xf32>, vector<1x16x8xf32> -> vector<8x16x8xf32>
    %221 = arith.truncf %220 : vector<8x16x8xf32> to vector<8x16x8xbf16>
    %222 = vector.extract_strided_slice %202 {offsets = [0, 0], sizes = [16, 8], strides = [1, 1]} : vector<16x64xf32> to vector<16x8xf32>
    %223 = vector.extract_strided_slice %202 {offsets = [0, 8], sizes = [16, 8], strides = [1, 1]} : vector<16x64xf32> to vector<16x8xf32>
    %224 = vector.extract_strided_slice %202 {offsets = [0, 16], sizes = [16, 8], strides = [1, 1]} : vector<16x64xf32> to vector<16x8xf32>
    %225 = vector.extract_strided_slice %202 {offsets = [0, 24], sizes = [16, 8], strides = [1, 1]} : vector<16x64xf32> to vector<16x8xf32>
    %226 = vector.extract_strided_slice %202 {offsets = [0, 32], sizes = [16, 8], strides = [1, 1]} : vector<16x64xf32> to vector<16x8xf32>
    %227 = vector.extract_strided_slice %202 {offsets = [0, 40], sizes = [16, 8], strides = [1, 1]} : vector<16x64xf32> to vector<16x8xf32>
    %228 = vector.extract_strided_slice %202 {offsets = [0, 48], sizes = [16, 8], strides = [1, 1]} : vector<16x64xf32> to vector<16x8xf32>
    %229 = vector.extract_strided_slice %202 {offsets = [0, 56], sizes = [16, 8], strides = [1, 1]} : vector<16x64xf32> to vector<16x8xf32>
    %230 = vector.shape_cast %222 : vector<16x8xf32> to vector<1x16x8xf32>
    %231 = vector.shape_cast %223 : vector<16x8xf32> to vector<1x16x8xf32>
    %232 = vector.shape_cast %224 : vector<16x8xf32> to vector<1x16x8xf32>
    %233 = vector.shape_cast %225 : vector<16x8xf32> to vector<1x16x8xf32>
    %234 = vector.shape_cast %226 : vector<16x8xf32> to vector<1x16x8xf32>
    %235 = vector.shape_cast %227 : vector<16x8xf32> to vector<1x16x8xf32>
    %236 = vector.shape_cast %228 : vector<16x8xf32> to vector<1x16x8xf32>
    %237 = vector.shape_cast %229 : vector<16x8xf32> to vector<1x16x8xf32>
    %238 = tpu.concatenate %230, %231, %232, %233, %234, %235, %236, %237 in 0 : vector<1x16x8xf32>, vector<1x16x8xf32>, vector<1x16x8xf32>, vector<1x16x8xf32>, vector<1x16x8xf32>, vector<1x16x8xf32>, vector<1x16x8xf32>, vector<1x16x8xf32> -> vector<8x16x8xf32>
    %239 = arith.truncf %238 : vector<8x16x8xf32> to vector<8x16x8xbf16>
    %240 = vector.extract_strided_slice %203 {offsets = [0, 0], sizes = [16, 8], strides = [1, 1]} : vector<16x64xf32> to vector<16x8xf32>
    %241 = vector.extract_strided_slice %203 {offsets = [0, 8], sizes = [16, 8], strides = [1, 1]} : vector<16x64xf32> to vector<16x8xf32>
    %242 = vector.extract_strided_slice %203 {offsets = [0, 16], sizes = [16, 8], strides = [1, 1]} : vector<16x64xf32> to vector<16x8xf32>
    %243 = vector.extract_strided_slice %203 {offsets = [0, 24], sizes = [16, 8], strides = [1, 1]} : vector<16x64xf32> to vector<16x8xf32>
    %244 = vector.extract_strided_slice %203 {offsets = [0, 32], sizes = [16, 8], strides = [1, 1]} : vector<16x64xf32> to vector<16x8xf32>
    %245 = vector.extract_strided_slice %203 {offsets = [0, 40], sizes = [16, 8], strides = [1, 1]} : vector<16x64xf32> to vector<16x8xf32>
    %246 = vector.extract_strided_slice %203 {offsets = [0, 48], sizes = [16, 8], strides = [1, 1]} : vector<16x64xf32> to vector<16x8xf32>
    %247 = vector.extract_strided_slice %203 {offsets = [0, 56], sizes = [16, 8], strides = [1, 1]} : vector<16x64xf32> to vector<16x8xf32>
    %248 = vector.shape_cast %240 : vector<16x8xf32> to vector<1x16x8xf32>
    %249 = vector.shape_cast %241 : vector<16x8xf32> to vector<1x16x8xf32>
    %250 = vector.shape_cast %242 : vector<16x8xf32> to vector<1x16x8xf32>
    %251 = vector.shape_cast %243 : vector<16x8xf32> to vector<1x16x8xf32>
    %252 = vector.shape_cast %244 : vector<16x8xf32> to vector<1x16x8xf32>
    %253 = vector.shape_cast %245 : vector<16x8xf32> to vector<1x16x8xf32>
    %254 = vector.shape_cast %246 : vector<16x8xf32> to vector<1x16x8xf32>
    %255 = vector.shape_cast %247 : vector<16x8xf32> to vector<1x16x8xf32>
    %256 = tpu.concatenate %248, %249, %250, %251, %252, %253, %254, %255 in 0 : vector<1x16x8xf32>, vector<1x16x8xf32>, vector<1x16x8xf32>, vector<1x16x8xf32>, vector<1x16x8xf32>, vector<1x16x8xf32>, vector<1x16x8xf32>, vector<1x16x8xf32> -> vector<8x16x8xf32>
    %257 = arith.truncf %256 : vector<8x16x8xf32> to vector<8x16x8xbf16>
    "tpu.trace_start"() <{level = 10 : i32, message = "hqd,hkd->hqk"}> : () -> ()
    %cst_69 = arith.constant dense<0.000000e+00> : vector<8x16x16xf32>
    %258 = tpu.matmul %221, %239, %cst_69 {dimension_numbers = #tpu.dot_dimension_numbers<[2], [2], [1], [1], [0, 0, 0, 1, 1, 1], [0], [0]>} : vector<8x16x8xbf16>, vector<8x16x8xbf16>, vector<8x16x16xf32> -> vector<8x16x16xf32>
    "tpu.trace_stop"() : () -> ()
    %cst_70 = arith.constant 0.353553385 : f32
    %259 = vector.broadcast %cst_70 : f32 to vector<8x16x16xf32>
    %260 = arith.mulf %258, %259 : vector<8x16x16xf32>
    %cst_71 = arith.constant dense<0xFF800000> : vector<8x16xf32>
    %261 = vector.multi_reduction <maximumf>, %260, %cst_71 [2] : vector<8x16x16xf32> to vector<8x16xf32>
    %262 = vector.shape_cast %261 : vector<8x16xf32> to vector<8x16x1xf32>
    %263 = vector.broadcast %262 : vector<8x16x1xf32> to vector<8x16x16xf32>
    %264 = arith.subf %260, %263 : vector<8x16x16xf32>
    %265 = math.exp %264 : vector<8x16x16xf32>
    %cst_72 = arith.constant dense<0.000000e+00> : vector<8x16xf32>
    %266 = vector.multi_reduction <add>, %265, %cst_72 [2] : vector<8x16x16xf32> to vector<8x16xf32>
    %267 = vector.shape_cast %266 : vector<8x16xf32> to vector<8x16x1xf32>
    %268 = tpu.reciprocal %267 {approx = true} : vector<8x16x1xf32> -> vector<8x16x1xf32>
    %269 = vector.broadcast %268 : vector<8x16x1xf32> to vector<8x16x16xf32>
    %270 = arith.mulf %265, %269 : vector<8x16x16xf32>
    %271 = arith.truncf %270 : vector<8x16x16xf32> to vector<8x16x16xbf16>
    "tpu.trace_start"() <{level = 10 : i32, message = "hqk,hkd->hqd"}> : () -> ()
    %cst_73 = arith.constant dense<0.000000e+00> : vector<8x16x8xf32>
    %272 = tpu.matmul %271, %257, %cst_73 {dimension_numbers = #tpu.dot_dimension_numbers<[2], [1], [1], [2], [0, 0, 0, 1, 1, 2], [0], [0]>} : vector<8x16x16xbf16>, vector<8x16x8xbf16>, vector<8x16x8xf32> -> vector<8x16x8xf32>
    "tpu.trace_stop"() : () -> ()
    %273 = vector.extract_strided_slice %272 {offsets = [0, 0, 0], sizes = [1, 16, 8], strides = [1, 1, 1]} : vector<8x16x8xf32> to vector<1x16x8xf32>
    %274 = vector.shape_cast %273 : vector<1x16x8xf32> to vector<16x8xf32>
    %275 = vector.extract_strided_slice %272 {offsets = [1, 0, 0], sizes = [1, 16, 8], strides = [1, 1, 1]} : vector<8x16x8xf32> to vector<1x16x8xf32>
    %276 = vector.shape_cast %275 : vector<1x16x8xf32> to vector<16x8xf32>
    %277 = vector.extract_strided_slice %272 {offsets = [2, 0, 0], sizes = [1, 16, 8], strides = [1, 1, 1]} : vector<8x16x8xf32> to vector<1x16x8xf32>
    %278 = vector.shape_cast %277 : vector<1x16x8xf32> to vector<16x8xf32>
    %279 = vector.extract_strided_slice %272 {offsets = [3, 0, 0], sizes = [1, 16, 8], strides = [1, 1, 1]} : vector<8x16x8xf32> to vector<1x16x8xf32>
    %280 = vector.shape_cast %279 : vector<1x16x8xf32> to vector<16x8xf32>
    %281 = vector.extract_strided_slice %272 {offsets = [4, 0, 0], sizes = [1, 16, 8], strides = [1, 1, 1]} : vector<8x16x8xf32> to vector<1x16x8xf32>
    %282 = vector.shape_cast %281 : vector<1x16x8xf32> to vector<16x8xf32>
    %283 = vector.extract_strided_slice %272 {offsets = [5, 0, 0], sizes = [1, 16, 8], strides = [1, 1, 1]} : vector<8x16x8xf32> to vector<1x16x8xf32>
    %284 = vector.shape_cast %283 : vector<1x16x8xf32> to vector<16x8xf32>
    %285 = vector.extract_strided_slice %272 {offsets = [6, 0, 0], sizes = [1, 16, 8], strides = [1, 1, 1]} : vector<8x16x8xf32> to vector<1x16x8xf32>
    %286 = vector.shape_cast %285 : vector<1x16x8xf32> to vector<16x8xf32>
    %287 = vector.extract_strided_slice %272 {offsets = [7, 0, 0], sizes = [1, 16, 8], strides = [1, 1, 1]} : vector<8x16x8xf32> to vector<1x16x8xf32>
    %288 = vector.shape_cast %287 : vector<1x16x8xf32> to vector<16x8xf32>
    %289 = tpu.concatenate %274, %276, %278, %280, %282, %284, %286, %288 in 1 : vector<16x8xf32>, vector<16x8xf32>, vector<16x8xf32>, vector<16x8xf32>, vector<16x8xf32>, vector<16x8xf32>, vector<16x8xf32>, vector<16x8xf32> -> vector<16x64xf32>
    %c1_74 = arith.constant 1 : index
    %c0_75 = arith.constant 0 : index
    %c0_76 = arith.constant 0 : index
    %290 = vector.load %arg7[%c1_74, %c0_75, %c0_76] : memref<3x64x64xf32, #tpu.memory_space<vmem>>, vector<1x64x64xf32>
    %291 = vector.shape_cast %290 : vector<1x64x64xf32> to vector<64x64xf32>
    %292 = arith.truncf %289 : vector<16x64xf32> to vector<16x64xbf16>
    %293 = arith.truncf %291 : vector<64x64xf32> to vector<64x64xbf16>
    %cst_77 = arith.constant dense<0.000000e+00> : vector<16x64xf32>
    %294 = tpu.matmul %292, %293, %cst_77 {dimension_numbers = #tpu.dot_dimension_numbers<[1], [0], [0], [1], [0, 0, 1, 1], [], []>} : vector<16x64xbf16>, vector<64x64xbf16>, vector<16x64xf32> -> vector<16x64xf32>
    %c1_78 = arith.constant 1 : index
    %c0_79 = arith.constant 0 : index
    %c0_80 = arith.constant 0 : index
    %295 = vector.load %arg8[%c1_78, %c0_79, %c0_80] : memref<3x1x64xf32, #tpu.memory_space<vmem>>, vector<1x1x64xf32>
    %296 = vector.shape_cast %295 : vector<1x1x64xf32> to vector<1x64xf32>
    %297 = vector.broadcast %296 : vector<1x64xf32> to vector<16x64xf32>
    %298 = arith.addf %294, %297 : vector<16x64xf32>
    %299 = arith.addf %191, %298 : vector<16x64xf32>
    %c1_81 = arith.constant 1 : index
    %c0_82 = arith.constant 0 : index
    %c0_83 = arith.constant 0 : index
    %300 = vector.load %arg9[%c1_81, %c0_82, %c0_83] : memref<3x1x64xf32, #tpu.memory_space<vmem>>, vector<1x1x64xf32>
    %301 = vector.shape_cast %300 : vector<1x1x64xf32> to vector<1x64xf32>
    %c1_84 = arith.constant 1 : index
    %c0_85 = arith.constant 0 : index
    %c0_86 = arith.constant 0 : index
    %302 = vector.load %arg10[%c1_84, %c0_85, %c0_86] : memref<3x1x64xf32, #tpu.memory_space<vmem>>, vector<1x1x64xf32>
    %303 = vector.shape_cast %302 : vector<1x1x64xf32> to vector<1x64xf32>
    %cst_87 = arith.constant dense<0.000000e+00> : vector<16xf32>
    %304 = vector.multi_reduction <add>, %299, %cst_87 [1] : vector<16x64xf32> to vector<16xf32>
    %305 = vector.shape_cast %304 : vector<16xf32> to vector<16x1xf32>
    %cst_88 = arith.constant 6.400000e+01 : f32
    %306 = vector.broadcast %cst_88 : f32 to vector<16x1xf32>
    %307 = arith.divf %305, %306 : vector<16x1xf32>
    %308 = vector.broadcast %307 : vector<16x1xf32> to vector<16x64xf32>
    %309 = arith.subf %299, %308 : vector<16x64xf32>
    %310 = arith.mulf %309, %309 : vector<16x64xf32>
    %cst_89 = arith.constant dense<0.000000e+00> : vector<16xf32>
    %311 = vector.multi_reduction <add>, %310, %cst_89 [1] : vector<16x64xf32> to vector<16xf32>
    %312 = vector.shape_cast %311 : vector<16xf32> to vector<16x1xf32>
    %cst_90 = arith.constant 6.400000e+01 : f32
    %313 = vector.broadcast %cst_90 : f32 to vector<16x1xf32>
    %314 = arith.divf %312, %313 : vector<16x1xf32>
    %315 = vector.broadcast %307 : vector<16x1xf32> to vector<16x64xf32>
    %316 = arith.subf %299, %315 : vector<16x64xf32>
    %cst_91 = arith.constant 9.99999974E-6 : f32
    %317 = vector.broadcast %cst_91 : f32 to vector<16x1xf32>
    %318 = arith.addf %314, %317 : vector<16x1xf32>
    %319 = math.rsqrt %318 : vector<16x1xf32>
    %320 = vector.broadcast %319 : vector<16x1xf32> to vector<16x64xf32>
    %321 = arith.mulf %316, %320 : vector<16x64xf32>
    %322 = vector.broadcast %301 : vector<1x64xf32> to vector<16x64xf32>
    %323 = arith.mulf %321, %322 : vector<16x64xf32>
    %324 = vector.broadcast %303 : vector<1x64xf32> to vector<16x64xf32>
    %325 = arith.addf %323, %324 : vector<16x64xf32>
    %c1_92 = arith.constant 1 : index
    %c0_93 = arith.constant 0 : index
    %c0_94 = arith.constant 0 : index
    %326 = vector.load %arg11[%c1_92, %c0_93, %c0_94] : memref<3x64x128xf32, #tpu.memory_space<vmem>>, vector<1x64x128xf32>
    %327 = vector.shape_cast %326 : vector<1x64x128xf32> to vector<64x128xf32>
    %328 = arith.truncf %325 : vector<16x64xf32> to vector<16x64xbf16>
    %329 = arith.truncf %327 : vector<64x128xf32> to vector<64x128xbf16>
    %cst_95 = arith.constant dense<0.000000e+00> : vector<16x128xf32>
    %330 = tpu.matmul %328, %329, %cst_95 {dimension_numbers = #tpu.dot_dimension_numbers<[1], [0], [0], [1], [0, 0, 1, 1], [], []>} : vector<16x64xbf16>, vector<64x128xbf16>, vector<16x128xf32> -> vector<16x128xf32>
    %c1_96 = arith.constant 1 : index
    %c0_97 = arith.constant 0 : index
    %c0_98 = arith.constant 0 : index
    %331 = vector.load %arg12[%c1_96, %c0_97, %c0_98] : memref<3x1x128xf32, #tpu.memory_space<vmem>>, vector<1x1x128xf32>
    %332 = vector.shape_cast %331 : vector<1x1x128xf32> to vector<1x128xf32>
    %333 = vector.broadcast %332 : vector<1x128xf32> to vector<16x128xf32>
    %334 = arith.addf %330, %333 : vector<16x128xf32>
    %cst_99 = arith.constant 0.000000e+00 : f32
    %335 = vector.broadcast %cst_99 : f32 to vector<16x128xf32>
    %336 = arith.maximumf %334, %335 : vector<16x128xf32>
    %c1_100 = arith.constant 1 : index
    %c0_101 = arith.constant 0 : index
    %c0_102 = arith.constant 0 : index
    %337 = vector.load %arg13[%c1_100, %c0_101, %c0_102] : memref<3x128x64xf32, #tpu.memory_space<vmem>>, vector<1x128x64xf32>
    %338 = vector.shape_cast %337 : vector<1x128x64xf32> to vector<128x64xf32>
    %339 = arith.truncf %336 : vector<16x128xf32> to vector<16x128xbf16>
    %340 = arith.truncf %338 : vector<128x64xf32> to vector<128x64xbf16>
    %cst_103 = arith.constant dense<0.000000e+00> : vector<16x64xf32>
    %341 = tpu.matmul %339, %340, %cst_103 {dimension_numbers = #tpu.dot_dimension_numbers<[1], [0], [0], [1], [0, 0, 1, 1], [], []>} : vector<16x128xbf16>, vector<128x64xbf16>, vector<16x64xf32> -> vector<16x64xf32>
    %c1_104 = arith.constant 1 : index
    %c0_105 = arith.constant 0 : index
    %c0_106 = arith.constant 0 : index
    %342 = vector.load %arg14[%c1_104, %c0_105, %c0_106] : memref<3x1x64xf32, #tpu.memory_space<vmem>>, vector<1x1x64xf32>
    %343 = vector.shape_cast %342 : vector<1x1x64xf32> to vector<1x64xf32>
    %344 = vector.broadcast %343 : vector<1x64xf32> to vector<16x64xf32>
    %345 = arith.addf %341, %344 : vector<16x64xf32>
    %346 = arith.addf %325, %345 : vector<16x64xf32>
    %c1_107 = arith.constant 1 : index
    %c0_108 = arith.constant 0 : index
    %c0_109 = arith.constant 0 : index
    %347 = vector.load %arg15[%c1_107, %c0_108, %c0_109] : memref<3x1x64xf32, #tpu.memory_space<vmem>>, vector<1x1x64xf32>
    %348 = vector.shape_cast %347 : vector<1x1x64xf32> to vector<1x64xf32>
    %c1_110 = arith.constant 1 : index
    %c0_111 = arith.constant 0 : index
    %c0_112 = arith.constant 0 : index
    %349 = vector.load %arg16[%c1_110, %c0_111, %c0_112] : memref<3x1x64xf32, #tpu.memory_space<vmem>>, vector<1x1x64xf32>
    %350 = vector.shape_cast %349 : vector<1x1x64xf32> to vector<1x64xf32>
    %cst_113 = arith.constant dense<0.000000e+00> : vector<16xf32>
    %351 = vector.multi_reduction <add>, %346, %cst_113 [1] : vector<16x64xf32> to vector<16xf32>
    %352 = vector.shape_cast %351 : vector<16xf32> to vector<16x1xf32>
    %cst_114 = arith.constant 6.400000e+01 : f32
    %353 = vector.broadcast %cst_114 : f32 to vector<16x1xf32>
    %354 = arith.divf %352, %353 : vector<16x1xf32>
    %355 = vector.broadcast %354 : vector<16x1xf32> to vector<16x64xf32>
    %356 = arith.subf %346, %355 : vector<16x64xf32>
    %357 = arith.mulf %356, %356 : vector<16x64xf32>
    %cst_115 = arith.constant dense<0.000000e+00> : vector<16xf32>
    %358 = vector.multi_reduction <add>, %357, %cst_115 [1] : vector<16x64xf32> to vector<16xf32>
    %359 = vector.shape_cast %358 : vector<16xf32> to vector<16x1xf32>
    %cst_116 = arith.constant 6.400000e+01 : f32
    %360 = vector.broadcast %cst_116 : f32 to vector<16x1xf32>
    %361 = arith.divf %359, %360 : vector<16x1xf32>
    %362 = vector.broadcast %354 : vector<16x1xf32> to vector<16x64xf32>
    %363 = arith.subf %346, %362 : vector<16x64xf32>
    %cst_117 = arith.constant 9.99999974E-6 : f32
    %364 = vector.broadcast %cst_117 : f32 to vector<16x1xf32>
    %365 = arith.addf %361, %364 : vector<16x1xf32>
    %366 = math.rsqrt %365 : vector<16x1xf32>
    %367 = vector.broadcast %366 : vector<16x1xf32> to vector<16x64xf32>
    %368 = arith.mulf %363, %367 : vector<16x64xf32>
    %369 = vector.broadcast %348 : vector<1x64xf32> to vector<16x64xf32>
    %370 = arith.mulf %368, %369 : vector<16x64xf32>
    %371 = vector.broadcast %350 : vector<1x64xf32> to vector<16x64xf32>
    %372 = arith.addf %370, %371 : vector<16x64xf32>
    %c2 = arith.constant 2 : index
    %c0_118 = arith.constant 0 : index
    %c0_119 = arith.constant 0 : index
    %373 = vector.load %arg5[%c2, %c0_118, %c0_119] : memref<3x64x192xf32, #tpu.memory_space<vmem>>, vector<1x64x192xf32>
    %374 = vector.shape_cast %373 : vector<1x64x192xf32> to vector<64x192xf32>
    %375 = arith.truncf %372 : vector<16x64xf32> to vector<16x64xbf16>
    %376 = arith.truncf %374 : vector<64x192xf32> to vector<64x192xbf16>
    %cst_120 = arith.constant dense<0.000000e+00> : vector<16x192xf32>
    %377 = tpu.matmul %375, %376, %cst_120 {dimension_numbers = #tpu.dot_dimension_numbers<[1], [0], [0], [1], [0, 0, 1, 1], [], []>} : vector<16x64xbf16>, vector<64x192xbf16>, vector<16x192xf32> -> vector<16x192xf32>
    %c2_121 = arith.constant 2 : index
    %c0_122 = arith.constant 0 : index
    %c0_123 = arith.constant 0 : index
    %378 = vector.load %arg6[%c2_121, %c0_122, %c0_123] : memref<3x1x192xf32, #tpu.memory_space<vmem>>, vector<1x1x192xf32>
    %379 = vector.shape_cast %378 : vector<1x1x192xf32> to vector<1x192xf32>
    %380 = vector.broadcast %379 : vector<1x192xf32> to vector<16x192xf32>
    %381 = arith.addf %377, %380 : vector<16x192xf32>
    %382 = vector.extract_strided_slice %381 {offsets = [0, 0], sizes = [16, 64], strides = [1, 1]} : vector<16x192xf32> to vector<16x64xf32>
    %383 = vector.extract_strided_slice %381 {offsets = [0, 64], sizes = [16, 64], strides = [1, 1]} : vector<16x192xf32> to vector<16x64xf32>
    %384 = vector.extract_strided_slice %381 {offsets = [0, 128], sizes = [16, 64], strides = [1, 1]} : vector<16x192xf32> to vector<16x64xf32>
    %385 = vector.extract_strided_slice %382 {offsets = [0, 0], sizes = [16, 8], strides = [1, 1]} : vector<16x64xf32> to vector<16x8xf32>
    %386 = vector.extract_strided_slice %382 {offsets = [0, 8], sizes = [16, 8], strides = [1, 1]} : vector<16x64xf32> to vector<16x8xf32>
    %387 = vector.extract_strided_slice %382 {offsets = [0, 16], sizes = [16, 8], strides = [1, 1]} : vector<16x64xf32> to vector<16x8xf32>
    %388 = vector.extract_strided_slice %382 {offsets = [0, 24], sizes = [16, 8], strides = [1, 1]} : vector<16x64xf32> to vector<16x8xf32>
    %389 = vector.extract_strided_slice %382 {offsets = [0, 32], sizes = [16, 8], strides = [1, 1]} : vector<16x64xf32> to vector<16x8xf32>
    %390 = vector.extract_strided_slice %382 {offsets = [0, 40], sizes = [16, 8], strides = [1, 1]} : vector<16x64xf32> to vector<16x8xf32>
    %391 = vector.extract_strided_slice %382 {offsets = [0, 48], sizes = [16, 8], strides = [1, 1]} : vector<16x64xf32> to vector<16x8xf32>
    %392 = vector.extract_strided_slice %382 {offsets = [0, 56], sizes = [16, 8], strides = [1, 1]} : vector<16x64xf32> to vector<16x8xf32>
    %393 = vector.shape_cast %385 : vector<16x8xf32> to vector<1x16x8xf32>
    %394 = vector.shape_cast %386 : vector<16x8xf32> to vector<1x16x8xf32>
    %395 = vector.shape_cast %387 : vector<16x8xf32> to vector<1x16x8xf32>
    %396 = vector.shape_cast %388 : vector<16x8xf32> to vector<1x16x8xf32>
    %397 = vector.shape_cast %389 : vector<16x8xf32> to vector<1x16x8xf32>
    %398 = vector.shape_cast %390 : vector<16x8xf32> to vector<1x16x8xf32>
    %399 = vector.shape_cast %391 : vector<16x8xf32> to vector<1x16x8xf32>
    %400 = vector.shape_cast %392 : vector<16x8xf32> to vector<1x16x8xf32>
    %401 = tpu.concatenate %393, %394, %395, %396, %397, %398, %399, %400 in 0 : vector<1x16x8xf32>, vector<1x16x8xf32>, vector<1x16x8xf32>, vector<1x16x8xf32>, vector<1x16x8xf32>, vector<1x16x8xf32>, vector<1x16x8xf32>, vector<1x16x8xf32> -> vector<8x16x8xf32>
    %402 = arith.truncf %401 : vector<8x16x8xf32> to vector<8x16x8xbf16>
    %403 = vector.extract_strided_slice %383 {offsets = [0, 0], sizes = [16, 8], strides = [1, 1]} : vector<16x64xf32> to vector<16x8xf32>
    %404 = vector.extract_strided_slice %383 {offsets = [0, 8], sizes = [16, 8], strides = [1, 1]} : vector<16x64xf32> to vector<16x8xf32>
    %405 = vector.extract_strided_slice %383 {offsets = [0, 16], sizes = [16, 8], strides = [1, 1]} : vector<16x64xf32> to vector<16x8xf32>
    %406 = vector.extract_strided_slice %383 {offsets = [0, 24], sizes = [16, 8], strides = [1, 1]} : vector<16x64xf32> to vector<16x8xf32>
    %407 = vector.extract_strided_slice %383 {offsets = [0, 32], sizes = [16, 8], strides = [1, 1]} : vector<16x64xf32> to vector<16x8xf32>
    %408 = vector.extract_strided_slice %383 {offsets = [0, 40], sizes = [16, 8], strides = [1, 1]} : vector<16x64xf32> to vector<16x8xf32>
    %409 = vector.extract_strided_slice %383 {offsets = [0, 48], sizes = [16, 8], strides = [1, 1]} : vector<16x64xf32> to vector<16x8xf32>
    %410 = vector.extract_strided_slice %383 {offsets = [0, 56], sizes = [16, 8], strides = [1, 1]} : vector<16x64xf32> to vector<16x8xf32>
    %411 = vector.shape_cast %403 : vector<16x8xf32> to vector<1x16x8xf32>
    %412 = vector.shape_cast %404 : vector<16x8xf32> to vector<1x16x8xf32>
    %413 = vector.shape_cast %405 : vector<16x8xf32> to vector<1x16x8xf32>
    %414 = vector.shape_cast %406 : vector<16x8xf32> to vector<1x16x8xf32>
    %415 = vector.shape_cast %407 : vector<16x8xf32> to vector<1x16x8xf32>
    %416 = vector.shape_cast %408 : vector<16x8xf32> to vector<1x16x8xf32>
    %417 = vector.shape_cast %409 : vector<16x8xf32> to vector<1x16x8xf32>
    %418 = vector.shape_cast %410 : vector<16x8xf32> to vector<1x16x8xf32>
    %419 = tpu.concatenate %411, %412, %413, %414, %415, %416, %417, %418 in 0 : vector<1x16x8xf32>, vector<1x16x8xf32>, vector<1x16x8xf32>, vector<1x16x8xf32>, vector<1x16x8xf32>, vector<1x16x8xf32>, vector<1x16x8xf32>, vector<1x16x8xf32> -> vector<8x16x8xf32>
    %420 = arith.truncf %419 : vector<8x16x8xf32> to vector<8x16x8xbf16>
    %421 = vector.extract_strided_slice %384 {offsets = [0, 0], sizes = [16, 8], strides = [1, 1]} : vector<16x64xf32> to vector<16x8xf32>
    %422 = vector.extract_strided_slice %384 {offsets = [0, 8], sizes = [16, 8], strides = [1, 1]} : vector<16x64xf32> to vector<16x8xf32>
    %423 = vector.extract_strided_slice %384 {offsets = [0, 16], sizes = [16, 8], strides = [1, 1]} : vector<16x64xf32> to vector<16x8xf32>
    %424 = vector.extract_strided_slice %384 {offsets = [0, 24], sizes = [16, 8], strides = [1, 1]} : vector<16x64xf32> to vector<16x8xf32>
    %425 = vector.extract_strided_slice %384 {offsets = [0, 32], sizes = [16, 8], strides = [1, 1]} : vector<16x64xf32> to vector<16x8xf32>
    %426 = vector.extract_strided_slice %384 {offsets = [0, 40], sizes = [16, 8], strides = [1, 1]} : vector<16x64xf32> to vector<16x8xf32>
    %427 = vector.extract_strided_slice %384 {offsets = [0, 48], sizes = [16, 8], strides = [1, 1]} : vector<16x64xf32> to vector<16x8xf32>
    %428 = vector.extract_strided_slice %384 {offsets = [0, 56], sizes = [16, 8], strides = [1, 1]} : vector<16x64xf32> to vector<16x8xf32>
    %429 = vector.shape_cast %421 : vector<16x8xf32> to vector<1x16x8xf32>
    %430 = vector.shape_cast %422 : vector<16x8xf32> to vector<1x16x8xf32>
    %431 = vector.shape_cast %423 : vector<16x8xf32> to vector<1x16x8xf32>
    %432 = vector.shape_cast %424 : vector<16x8xf32> to vector<1x16x8xf32>
    %433 = vector.shape_cast %425 : vector<16x8xf32> to vector<1x16x8xf32>
    %434 = vector.shape_cast %426 : vector<16x8xf32> to vector<1x16x8xf32>
    %435 = vector.shape_cast %427 : vector<16x8xf32> to vector<1x16x8xf32>
    %436 = vector.shape_cast %428 : vector<16x8xf32> to vector<1x16x8xf32>
    %437 = tpu.concatenate %429, %430, %431, %432, %433, %434, %435, %436 in 0 : vector<1x16x8xf32>, vector<1x16x8xf32>, vector<1x16x8xf32>, vector<1x16x8xf32>, vector<1x16x8xf32>, vector<1x16x8xf32>, vector<1x16x8xf32>, vector<1x16x8xf32> -> vector<8x16x8xf32>
    %438 = arith.truncf %437 : vector<8x16x8xf32> to vector<8x16x8xbf16>
    "tpu.trace_start"() <{level = 10 : i32, message = "hqd,hkd->hqk"}> : () -> ()
    %cst_124 = arith.constant dense<0.000000e+00> : vector<8x16x16xf32>
    %439 = tpu.matmul %402, %420, %cst_124 {dimension_numbers = #tpu.dot_dimension_numbers<[2], [2], [1], [1], [0, 0, 0, 1, 1, 1], [0], [0]>} : vector<8x16x8xbf16>, vector<8x16x8xbf16>, vector<8x16x16xf32> -> vector<8x16x16xf32>
    "tpu.trace_stop"() : () -> ()
    %cst_125 = arith.constant 0.353553385 : f32
    %440 = vector.broadcast %cst_125 : f32 to vector<8x16x16xf32>
    %441 = arith.mulf %439, %440 : vector<8x16x16xf32>
    %cst_126 = arith.constant dense<0xFF800000> : vector<8x16xf32>
    %442 = vector.multi_reduction <maximumf>, %441, %cst_126 [2] : vector<8x16x16xf32> to vector<8x16xf32>
    %443 = vector.shape_cast %442 : vector<8x16xf32> to vector<8x16x1xf32>
    %444 = vector.broadcast %443 : vector<8x16x1xf32> to vector<8x16x16xf32>
    %445 = arith.subf %441, %444 : vector<8x16x16xf32>
    %446 = math.exp %445 : vector<8x16x16xf32>
    %cst_127 = arith.constant dense<0.000000e+00> : vector<8x16xf32>
    %447 = vector.multi_reduction <add>, %446, %cst_127 [2] : vector<8x16x16xf32> to vector<8x16xf32>
    %448 = vector.shape_cast %447 : vector<8x16xf32> to vector<8x16x1xf32>
    %449 = tpu.reciprocal %448 {approx = true} : vector<8x16x1xf32> -> vector<8x16x1xf32>
    %450 = vector.broadcast %449 : vector<8x16x1xf32> to vector<8x16x16xf32>
    %451 = arith.mulf %446, %450 : vector<8x16x16xf32>
    %452 = arith.truncf %451 : vector<8x16x16xf32> to vector<8x16x16xbf16>
    "tpu.trace_start"() <{level = 10 : i32, message = "hqk,hkd->hqd"}> : () -> ()
    %cst_128 = arith.constant dense<0.000000e+00> : vector<8x16x8xf32>
    %453 = tpu.matmul %452, %438, %cst_128 {dimension_numbers = #tpu.dot_dimension_numbers<[2], [1], [1], [2], [0, 0, 0, 1, 1, 2], [0], [0]>} : vector<8x16x16xbf16>, vector<8x16x8xbf16>, vector<8x16x8xf32> -> vector<8x16x8xf32>
    "tpu.trace_stop"() : () -> ()
    %454 = vector.extract_strided_slice %453 {offsets = [0, 0, 0], sizes = [1, 16, 8], strides = [1, 1, 1]} : vector<8x16x8xf32> to vector<1x16x8xf32>
    %455 = vector.shape_cast %454 : vector<1x16x8xf32> to vector<16x8xf32>
    %456 = vector.extract_strided_slice %453 {offsets = [1, 0, 0], sizes = [1, 16, 8], strides = [1, 1, 1]} : vector<8x16x8xf32> to vector<1x16x8xf32>
    %457 = vector.shape_cast %456 : vector<1x16x8xf32> to vector<16x8xf32>
    %458 = vector.extract_strided_slice %453 {offsets = [2, 0, 0], sizes = [1, 16, 8], strides = [1, 1, 1]} : vector<8x16x8xf32> to vector<1x16x8xf32>
    %459 = vector.shape_cast %458 : vector<1x16x8xf32> to vector<16x8xf32>
    %460 = vector.extract_strided_slice %453 {offsets = [3, 0, 0], sizes = [1, 16, 8], strides = [1, 1, 1]} : vector<8x16x8xf32> to vector<1x16x8xf32>
    %461 = vector.shape_cast %460 : vector<1x16x8xf32> to vector<16x8xf32>
    %462 = vector.extract_strided_slice %453 {offsets = [4, 0, 0], sizes = [1, 16, 8], strides = [1, 1, 1]} : vector<8x16x8xf32> to vector<1x16x8xf32>
    %463 = vector.shape_cast %462 : vector<1x16x8xf32> to vector<16x8xf32>
    %464 = vector.extract_strided_slice %453 {offsets = [5, 0, 0], sizes = [1, 16, 8], strides = [1, 1, 1]} : vector<8x16x8xf32> to vector<1x16x8xf32>
    %465 = vector.shape_cast %464 : vector<1x16x8xf32> to vector<16x8xf32>
    %466 = vector.extract_strided_slice %453 {offsets = [6, 0, 0], sizes = [1, 16, 8], strides = [1, 1, 1]} : vector<8x16x8xf32> to vector<1x16x8xf32>
    %467 = vector.shape_cast %466 : vector<1x16x8xf32> to vector<16x8xf32>
    %468 = vector.extract_strided_slice %453 {offsets = [7, 0, 0], sizes = [1, 16, 8], strides = [1, 1, 1]} : vector<8x16x8xf32> to vector<1x16x8xf32>
    %469 = vector.shape_cast %468 : vector<1x16x8xf32> to vector<16x8xf32>
    %470 = tpu.concatenate %455, %457, %459, %461, %463, %465, %467, %469 in 1 : vector<16x8xf32>, vector<16x8xf32>, vector<16x8xf32>, vector<16x8xf32>, vector<16x8xf32>, vector<16x8xf32>, vector<16x8xf32>, vector<16x8xf32> -> vector<16x64xf32>
    %c2_129 = arith.constant 2 : index
    %c0_130 = arith.constant 0 : index
    %c0_131 = arith.constant 0 : index
    %471 = vector.load %arg7[%c2_129, %c0_130, %c0_131] : memref<3x64x64xf32, #tpu.memory_space<vmem>>, vector<1x64x64xf32>
    %472 = vector.shape_cast %471 : vector<1x64x64xf32> to vector<64x64xf32>
    %473 = arith.truncf %470 : vector<16x64xf32> to vector<16x64xbf16>
    %474 = arith.truncf %472 : vector<64x64xf32> to vector<64x64xbf16>
    %cst_132 = arith.constant dense<0.000000e+00> : vector<16x64xf32>
    %475 = tpu.matmul %473, %474, %cst_132 {dimension_numbers = #tpu.dot_dimension_numbers<[1], [0], [0], [1], [0, 0, 1, 1], [], []>} : vector<16x64xbf16>, vector<64x64xbf16>, vector<16x64xf32> -> vector<16x64xf32>
    %c2_133 = arith.constant 2 : index
    %c0_134 = arith.constant 0 : index
    %c0_135 = arith.constant 0 : index
    %476 = vector.load %arg8[%c2_133, %c0_134, %c0_135] : memref<3x1x64xf32, #tpu.memory_space<vmem>>, vector<1x1x64xf32>
    %477 = vector.shape_cast %476 : vector<1x1x64xf32> to vector<1x64xf32>
    %478 = vector.broadcast %477 : vector<1x64xf32> to vector<16x64xf32>
    %479 = arith.addf %475, %478 : vector<16x64xf32>
    %480 = arith.addf %372, %479 : vector<16x64xf32>
    %c2_136 = arith.constant 2 : index
    %c0_137 = arith.constant 0 : index
    %c0_138 = arith.constant 0 : index
    %481 = vector.load %arg9[%c2_136, %c0_137, %c0_138] : memref<3x1x64xf32, #tpu.memory_space<vmem>>, vector<1x1x64xf32>
    %482 = vector.shape_cast %481 : vector<1x1x64xf32> to vector<1x64xf32>
    %c2_139 = arith.constant 2 : index
    %c0_140 = arith.constant 0 : index
    %c0_141 = arith.constant 0 : index
    %483 = vector.load %arg10[%c2_139, %c0_140, %c0_141] : memref<3x1x64xf32, #tpu.memory_space<vmem>>, vector<1x1x64xf32>
    %484 = vector.shape_cast %483 : vector<1x1x64xf32> to vector<1x64xf32>
    %cst_142 = arith.constant dense<0.000000e+00> : vector<16xf32>
    %485 = vector.multi_reduction <add>, %480, %cst_142 [1] : vector<16x64xf32> to vector<16xf32>
    %486 = vector.shape_cast %485 : vector<16xf32> to vector<16x1xf32>
    %cst_143 = arith.constant 6.400000e+01 : f32
    %487 = vector.broadcast %cst_143 : f32 to vector<16x1xf32>
    %488 = arith.divf %486, %487 : vector<16x1xf32>
    %489 = vector.broadcast %488 : vector<16x1xf32> to vector<16x64xf32>
    %490 = arith.subf %480, %489 : vector<16x64xf32>
    %491 = arith.mulf %490, %490 : vector<16x64xf32>
    %cst_144 = arith.constant dense<0.000000e+00> : vector<16xf32>
    %492 = vector.multi_reduction <add>, %491, %cst_144 [1] : vector<16x64xf32> to vector<16xf32>
    %493 = vector.shape_cast %492 : vector<16xf32> to vector<16x1xf32>
    %cst_145 = arith.constant 6.400000e+01 : f32
    %494 = vector.broadcast %cst_145 : f32 to vector<16x1xf32>
    %495 = arith.divf %493, %494 : vector<16x1xf32>
    %496 = vector.broadcast %488 : vector<16x1xf32> to vector<16x64xf32>
    %497 = arith.subf %480, %496 : vector<16x64xf32>
    %cst_146 = arith.constant 9.99999974E-6 : f32
    %498 = vector.broadcast %cst_146 : f32 to vector<16x1xf32>
    %499 = arith.addf %495, %498 : vector<16x1xf32>
    %500 = math.rsqrt %499 : vector<16x1xf32>
    %501 = vector.broadcast %500 : vector<16x1xf32> to vector<16x64xf32>
    %502 = arith.mulf %497, %501 : vector<16x64xf32>
    %503 = vector.broadcast %482 : vector<1x64xf32> to vector<16x64xf32>
    %504 = arith.mulf %502, %503 : vector<16x64xf32>
    %505 = vector.broadcast %484 : vector<1x64xf32> to vector<16x64xf32>
    %506 = arith.addf %504, %505 : vector<16x64xf32>
    %c2_147 = arith.constant 2 : index
    %c0_148 = arith.constant 0 : index
    %c0_149 = arith.constant 0 : index
    %507 = vector.load %arg11[%c2_147, %c0_148, %c0_149] : memref<3x64x128xf32, #tpu.memory_space<vmem>>, vector<1x64x128xf32>
    %508 = vector.shape_cast %507 : vector<1x64x128xf32> to vector<64x128xf32>
    %509 = arith.truncf %506 : vector<16x64xf32> to vector<16x64xbf16>
    %510 = arith.truncf %508 : vector<64x128xf32> to vector<64x128xbf16>
    %cst_150 = arith.constant dense<0.000000e+00> : vector<16x128xf32>
    %511 = tpu.matmul %509, %510, %cst_150 {dimension_numbers = #tpu.dot_dimension_numbers<[1], [0], [0], [1], [0, 0, 1, 1], [], []>} : vector<16x64xbf16>, vector<64x128xbf16>, vector<16x128xf32> -> vector<16x128xf32>
    %c2_151 = arith.constant 2 : index
    %c0_152 = arith.constant 0 : index
    %c0_153 = arith.constant 0 : index
    %512 = vector.load %arg12[%c2_151, %c0_152, %c0_153] : memref<3x1x128xf32, #tpu.memory_space<vmem>>, vector<1x1x128xf32>
    %513 = vector.shape_cast %512 : vector<1x1x128xf32> to vector<1x128xf32>
    %514 = vector.broadcast %513 : vector<1x128xf32> to vector<16x128xf32>
    %515 = arith.addf %511, %514 : vector<16x128xf32>
    %cst_154 = arith.constant 0.000000e+00 : f32
    %516 = vector.broadcast %cst_154 : f32 to vector<16x128xf32>
    %517 = arith.maximumf %515, %516 : vector<16x128xf32>
    %c2_155 = arith.constant 2 : index
    %c0_156 = arith.constant 0 : index
    %c0_157 = arith.constant 0 : index
    %518 = vector.load %arg13[%c2_155, %c0_156, %c0_157] : memref<3x128x64xf32, #tpu.memory_space<vmem>>, vector<1x128x64xf32>
    %519 = vector.shape_cast %518 : vector<1x128x64xf32> to vector<128x64xf32>
    %520 = arith.truncf %517 : vector<16x128xf32> to vector<16x128xbf16>
    %521 = arith.truncf %519 : vector<128x64xf32> to vector<128x64xbf16>
    %cst_158 = arith.constant dense<0.000000e+00> : vector<16x64xf32>
    %522 = tpu.matmul %520, %521, %cst_158 {dimension_numbers = #tpu.dot_dimension_numbers<[1], [0], [0], [1], [0, 0, 1, 1], [], []>} : vector<16x128xbf16>, vector<128x64xbf16>, vector<16x64xf32> -> vector<16x64xf32>
    %c2_159 = arith.constant 2 : index
    %c0_160 = arith.constant 0 : index
    %c0_161 = arith.constant 0 : index
    %523 = vector.load %arg14[%c2_159, %c0_160, %c0_161] : memref<3x1x64xf32, #tpu.memory_space<vmem>>, vector<1x1x64xf32>
    %524 = vector.shape_cast %523 : vector<1x1x64xf32> to vector<1x64xf32>
    %525 = vector.broadcast %524 : vector<1x64xf32> to vector<16x64xf32>
    %526 = arith.addf %522, %525 : vector<16x64xf32>
    %527 = arith.addf %506, %526 : vector<16x64xf32>
    %c2_162 = arith.constant 2 : index
    %c0_163 = arith.constant 0 : index
    %c0_164 = arith.constant 0 : index
    %528 = vector.load %arg15[%c2_162, %c0_163, %c0_164] : memref<3x1x64xf32, #tpu.memory_space<vmem>>, vector<1x1x64xf32>
    %529 = vector.shape_cast %528 : vector<1x1x64xf32> to vector<1x64xf32>
    %c2_165 = arith.constant 2 : index
    %c0_166 = arith.constant 0 : index
    %c0_167 = arith.constant 0 : index
    %530 = vector.load %arg16[%c2_165, %c0_166, %c0_167] : memref<3x1x64xf32, #tpu.memory_space<vmem>>, vector<1x1x64xf32>
    %531 = vector.shape_cast %530 : vector<1x1x64xf32> to vector<1x64xf32>
    %cst_168 = arith.constant dense<0.000000e+00> : vector<16xf32>
    %532 = vector.multi_reduction <add>, %527, %cst_168 [1] : vector<16x64xf32> to vector<16xf32>
    %533 = vector.shape_cast %532 : vector<16xf32> to vector<16x1xf32>
    %cst_169 = arith.constant 6.400000e+01 : f32
    %534 = vector.broadcast %cst_169 : f32 to vector<16x1xf32>
    %535 = arith.divf %533, %534 : vector<16x1xf32>
    %536 = vector.broadcast %535 : vector<16x1xf32> to vector<16x64xf32>
    %537 = arith.subf %527, %536 : vector<16x64xf32>
    %538 = arith.mulf %537, %537 : vector<16x64xf32>
    %cst_170 = arith.constant dense<0.000000e+00> : vector<16xf32>
    %539 = vector.multi_reduction <add>, %538, %cst_170 [1] : vector<16x64xf32> to vector<16xf32>
    %540 = vector.shape_cast %539 : vector<16xf32> to vector<16x1xf32>
    %cst_171 = arith.constant 6.400000e+01 : f32
    %541 = vector.broadcast %cst_171 : f32 to vector<16x1xf32>
    %542 = arith.divf %540, %541 : vector<16x1xf32>
    %543 = vector.broadcast %535 : vector<16x1xf32> to vector<16x64xf32>
    %544 = arith.subf %527, %543 : vector<16x64xf32>
    %cst_172 = arith.constant 9.99999974E-6 : f32
    %545 = vector.broadcast %cst_172 : f32 to vector<16x1xf32>
    %546 = arith.addf %542, %545 : vector<16x1xf32>
    %547 = math.rsqrt %546 : vector<16x1xf32>
    %548 = vector.broadcast %547 : vector<16x1xf32> to vector<16x64xf32>
    %549 = arith.mulf %544, %548 : vector<16x64xf32>
    %550 = vector.broadcast %529 : vector<1x64xf32> to vector<16x64xf32>
    %551 = arith.mulf %549, %550 : vector<16x64xf32>
    %552 = vector.broadcast %531 : vector<1x64xf32> to vector<16x64xf32>
    %553 = arith.addf %551, %552 : vector<16x64xf32>
    %cst_173 = arith.constant dense<0.000000e+00> : vector<64xf32>
    %554 = vector.multi_reduction <add>, %553, %cst_173 [0] : vector<16x64xf32> to vector<64xf32>
    %555 = vector.shape_cast %554 : vector<64xf32> to vector<1x64xf32>
    %cst_174 = arith.constant 1.600000e+01 : f32
    %556 = vector.broadcast %cst_174 : f32 to vector<1x64xf32>
    %557 = arith.divf %555, %556 : vector<1x64xf32>
    %c0_175 = arith.constant 0 : index
    %c0_176 = arith.constant 0 : index
    %558 = vector.load %arg17[%c0_175, %c0_176] : memref<64x32xf32, #tpu.memory_space<vmem>>, vector<64x32xf32>
    %559 = arith.truncf %557 : vector<1x64xf32> to vector<1x64xbf16>
    %560 = arith.truncf %558 : vector<64x32xf32> to vector<64x32xbf16>
    %cst_177 = arith.constant dense<0.000000e+00> : vector<1x32xf32>
    %561 = tpu.matmul %559, %560, %cst_177 {dimension_numbers = #tpu.dot_dimension_numbers<[1], [0], [0], [1], [0, 0, 1, 1], [], []>} : vector<1x64xbf16>, vector<64x32xbf16>, vector<1x32xf32> -> vector<1x32xf32>
    %c0_178 = arith.constant 0 : index
    %c0_179 = arith.constant 0 : index
    %562 = vector.load %arg18[%c0_178, %c0_179] : memref<1x32xf32, #tpu.memory_space<vmem>>, vector<1x32xf32>
    %563 = arith.addf %561, %562 : vector<1x32xf32>
    %cst_180 = arith.constant 0.000000e+00 : f32
    %564 = vector.broadcast %cst_180 : f32 to vector<1x32xf32>
    %565 = arith.maximumf %563, %564 : vector<1x32xf32>
    %c0_181 = arith.constant 0 : index
    %c0_182 = arith.constant 0 : index
    %566 = vector.load %arg19[%c0_181, %c0_182] : memref<32x1xf32, #tpu.memory_space<vmem>>, vector<32x1xf32>
    %567 = arith.truncf %565 : vector<1x32xf32> to vector<1x32xbf16>
    %568 = arith.truncf %566 : vector<32x1xf32> to vector<32x1xbf16>
    %cst_183 = arith.constant dense<0.000000e+00> : vector<1x1xf32>
    %569 = tpu.matmul %567, %568, %cst_183 {dimension_numbers = #tpu.dot_dimension_numbers<[1], [0], [0], [1], [0, 0, 1, 1], [], []>} : vector<1x32xbf16>, vector<32x1xbf16>, vector<1x1xf32> -> vector<1x1xf32>
    %c0_184 = arith.constant 0 : index
    %c0_185 = arith.constant 0 : index
    %570 = vector.load %arg20[%c0_184, %c0_185] : memref<1x1xf32, #tpu.memory_space<vmem>>, vector<1x1xf32>
    %571 = arith.addf %569, %570 : vector<1x1xf32>
    %572 = vector.shape_cast %571 : vector<1x1xf32> to vector<1x1x1xf32>
    %c0_186 = arith.constant 0 : index
    %c0_187 = arith.constant 0 : index
    %c0_188 = arith.constant 0 : index
    %573 = vector.load %arg21[%c0_186, %c0_187, %c0_188] : memref<1x1x1xf32, #tpu.memory_space<vmem>>, vector<1x1x1xf32>
    tpu.vector_store %arg21[%c0_186, %c0_187, %c0_188], %572 {strides = array<i32>} : memref<1x1x1xf32, #tpu.memory_space<vmem>>, vector<1x1x1xf32>,
    return
  }
  func.func @transform_0(%arg0: i32) -> (i32, i32, i32) {
    %c0_i32 = arith.constant 0 : i32
    %c0_i32_0 = arith.constant 0 : i32
    %c0_i32_1 = arith.constant 0 : i32
    return %arg0, %c0_i32, %c0_i32_0 : i32, i32, i32
  }
  func.func @transform_1(%arg0: i32) -> (i32, i32) {
    %c0_i32 = arith.constant 0 : i32
    %c0_i32_0 = arith.constant 0 : i32
    %c0_i32_1 = arith.constant 0 : i32
    return %c0_i32, %c0_i32_0 : i32, i32
  }
  func.func @transform_2(%arg0: i32) -> (i32, i32) {
    %c0_i32 = arith.constant 0 : i32
    %c0_i32_0 = arith.constant 0 : i32
    %c0_i32_1 = arith.constant 0 : i32
    return %c0_i32, %c0_i32_0 : i32, i32
  }
  func.func @transform_3(%arg0: i32) -> (i32, i32) {
    %c0_i32 = arith.constant 0 : i32
    %c0_i32_0 = arith.constant 0 : i32
    %c0_i32_1 = arith.constant 0 : i32
    return %c0_i32, %c0_i32_0 : i32, i32
  }
  func.func @transform_4(%arg0: i32) -> (i32, i32, i32) {
    %c0_i32 = arith.constant 0 : i32
    %c0_i32_0 = arith.constant 0 : i32
    %c0_i32_1 = arith.constant 0 : i32
    %c0_i32_2 = arith.constant 0 : i32
    return %c0_i32, %c0_i32_0, %c0_i32_1 : i32, i32, i32
  }
  func.func @transform_5(%arg0: i32) -> (i32, i32, i32) {
    %c0_i32 = arith.constant 0 : i32
    %c0_i32_0 = arith.constant 0 : i32
    %c0_i32_1 = arith.constant 0 : i32
    %c0_i32_2 = arith.constant 0 : i32
    return %c0_i32, %c0_i32_0, %c0_i32_1 : i32, i32, i32
  }
  func.func @transform_6(%arg0: i32) -> (i32, i32, i32) {
    %c0_i32 = arith.constant 0 : i32
    %c0_i32_0 = arith.constant 0 : i32
    %c0_i32_1 = arith.constant 0 : i32
    %c0_i32_2 = arith.constant 0 : i32
    return %c0_i32, %c0_i32_0, %c0_i32_1 : i32, i32, i32
  }
  func.func @transform_7(%arg0: i32) -> (i32, i32, i32) {
    %c0_i32 = arith.constant 0 : i32
    %c0_i32_0 = arith.constant 0 : i32
    %c0_i32_1 = arith.constant 0 : i32
    %c0_i32_2 = arith.constant 0 : i32
    return %c0_i32, %c0_i32_0, %c0_i32_1 : i32, i32, i32
  }
  func.func @transform_8(%arg0: i32) -> (i32, i32, i32) {
    %c0_i32 = arith.constant 0 : i32
    %c0_i32_0 = arith.constant 0 : i32
    %c0_i32_1 = arith.constant 0 : i32
    %c0_i32_2 = arith.constant 0 : i32
    return %c0_i32, %c0_i32_0, %c0_i32_1 : i32, i32, i32
  }
  func.func @transform_9(%arg0: i32) -> (i32, i32, i32) {
    %c0_i32 = arith.constant 0 : i32
    %c0_i32_0 = arith.constant 0 : i32
    %c0_i32_1 = arith.constant 0 : i32
    %c0_i32_2 = arith.constant 0 : i32
    return %c0_i32, %c0_i32_0, %c0_i32_1 : i32, i32, i32
  }
  func.func @transform_10(%arg0: i32) -> (i32, i32, i32) {
    %c0_i32 = arith.constant 0 : i32
    %c0_i32_0 = arith.constant 0 : i32
    %c0_i32_1 = arith.constant 0 : i32
    %c0_i32_2 = arith.constant 0 : i32
    return %c0_i32, %c0_i32_0, %c0_i32_1 : i32, i32, i32
  }
  func.func @transform_11(%arg0: i32) -> (i32, i32, i32) {
    %c0_i32 = arith.constant 0 : i32
    %c0_i32_0 = arith.constant 0 : i32
    %c0_i32_1 = arith.constant 0 : i32
    %c0_i32_2 = arith.constant 0 : i32
    return %c0_i32, %c0_i32_0, %c0_i32_1 : i32, i32, i32
  }
  func.func @transform_12(%arg0: i32) -> (i32, i32, i32) {
    %c0_i32 = arith.constant 0 : i32
    %c0_i32_0 = arith.constant 0 : i32
    %c0_i32_1 = arith.constant 0 : i32
    %c0_i32_2 = arith.constant 0 : i32
    return %c0_i32, %c0_i32_0, %c0_i32_1 : i32, i32, i32
  }
  func.func @transform_13(%arg0: i32) -> (i32, i32, i32) {
    %c0_i32 = arith.constant 0 : i32
    %c0_i32_0 = arith.constant 0 : i32
    %c0_i32_1 = arith.constant 0 : i32
    %c0_i32_2 = arith.constant 0 : i32
    return %c0_i32, %c0_i32_0, %c0_i32_1 : i32, i32, i32
  }
  func.func @transform_14(%arg0: i32) -> (i32, i32, i32) {
    %c0_i32 = arith.constant 0 : i32
    %c0_i32_0 = arith.constant 0 : i32
    %c0_i32_1 = arith.constant 0 : i32
    %c0_i32_2 = arith.constant 0 : i32
    return %c0_i32, %c0_i32_0, %c0_i32_1 : i32, i32, i32
  }
  func.func @transform_15(%arg0: i32) -> (i32, i32, i32) {
    %c0_i32 = arith.constant 0 : i32
    %c0_i32_0 = arith.constant 0 : i32
    %c0_i32_1 = arith.constant 0 : i32
    %c0_i32_2 = arith.constant 0 : i32
    return %c0_i32, %c0_i32_0, %c0_i32_1 : i32, i32, i32
  }
  func.func @transform_16(%arg0: i32) -> (i32, i32) {
    %c0_i32 = arith.constant 0 : i32
    %c0_i32_0 = arith.constant 0 : i32
    %c0_i32_1 = arith.constant 0 : i32
    return %c0_i32, %c0_i32_0 : i32, i32
  }
  func.func @transform_17(%arg0: i32) -> (i32, i32) {
    %c0_i32 = arith.constant 0 : i32
    %c0_i32_0 = arith.constant 0 : i32
    %c0_i32_1 = arith.constant 0 : i32
    return %c0_i32, %c0_i32_0 : i32, i32
  }
  func.func @transform_18(%arg0: i32) -> (i32, i32) {
    %c0_i32 = arith.constant 0 : i32
    %c0_i32_0 = arith.constant 0 : i32
    %c0_i32_1 = arith.constant 0 : i32
    return %c0_i32, %c0_i32_0 : i32, i32
  }
  func.func @transform_19(%arg0: i32) -> (i32, i32) {
    %c0_i32 = arith.constant 0 : i32
    %c0_i32_0 = arith.constant 0 : i32
    %c0_i32_1 = arith.constant 0 : i32
    return %c0_i32, %c0_i32_0 : i32, i32
  }
  func.func @transform_20(%arg0: i32) -> (i32, i32, i32) {
    %c0_i32 = arith.constant 0 : i32
    %c0_i32_0 = arith.constant 0 : i32
    %c0_i32_1 = arith.constant 0 : i32
    return %arg0, %c0_i32, %c0_i32_0 : i32, i32, i32
  }
}

</mosaic_0001>

<bundles_post_ra>
// kernel: transformer_classifier_forward.1
= control target key start
LH: loop header
LB: loop body
LE: loop exit
PB: predicated region body
PF: predicated region fallthrough
CT: control target
= control target key end

     0   :  { %s9517_s0 = inlined_call_operand.vmem [shape: f32[2,16,1], index: 0, kind: input, shape index: {}]   ;;  %s9518_s1 = inlined_call_operand.vmem [shape: f32[16,64], index: 1, kind: input, shape index: {}]   ;;  %s9519_s2 = inlined_call_operand.hbm [shape: f32[1,64], index: 2, kind: input, shape index: {}]   ;;  %s9520_s3 = inlined_call_operand.hbm [shape: f32[1,64], index: 3, kind: input, shape index: {}]   ;;  %s9521_s4 = inlined_call_operand.vmem [shape: f32[3,64,192], index: 4, kind: input, shape index: {}]   ;;  %s9522_s5 = inlined_call_operand.hbm [shape: f32[3,1,192], index: 5, kind: input, shape index: {}]   ;;  %s9523_s6 = inlined_call_operand.vmem [shape: f32[3,64,64], index: 6, kind: input, shape index: {}]   ;;  %s9524_s7 = inlined_call_operand.hbm [shape: f32[3,1,64], index: 7, kind: input, shape index: {}]   ;;  %s9525_s8 = inlined_call_operand.hbm [shape: f32[3,1,64], index: 8, kind: input, shape index: {}]   ;;  %s9526_s9 = inlined_call_operand.hbm [shape: f32[3,1,64], index: 9, kind: input, shape index: {}]   ;;  %s9527_s10 = inlined_call_operand.vmem [shape: f32[3,64,128], index: 10, kind: input, shape index: {}]   ;;  %s9528_s11 = inlined_call_operand.hbm [shape: f32[3,1,128], index: 11, kind: input, shape index: {}]   ;;  %s9529_s12 = inlined_call_operand.vmem [shape: f32[3,128,64], index: 12, kind: input, shape index: {}]   ;;  %s9530_s13 = inlined_call_operand.hbm [shape: f32[3,1,64], index: 13, kind: input, shape index: {}]   ;;  %s9531_s14 = inlined_call_operand.hbm [shape: f32[3,1,64], index: 14, kind: input, shape index: {}]   ;;  %s9532_s15 = inlined_call_operand.hbm [shape: f32[3,1,64], index: 15, kind: input, shape index: {}]   ;;  %s9533_s16 = inlined_call_operand.vmem [shape: f32[64,32], index: 16, kind: input, shape index: {}]   ;;  %s9534_s17 = inlined_call_operand.hbm [shape: f32[1,32], index: 17, kind: input, shape index: {}]   ;;  %s9535_s18 = inlined_call_operand.vmem [shape: f32[32,1], index: 18, kind: input, shape index: {}]   ;;  %s9536_s19 = inlined_call_operand.<no memory space> [shape: f32[1,1], index: 19, kind: input, shape index: {}]   ;;  %s9537_s20 = inlined_call_operand.vmem [shape: f32[2,1,1], index: 20, kind: output, shape index: {}]  }
   0x1   :  { %9582 = sst [smem:[#allocation27_spill]] %s9517_s0  ;;  %v25_v0 = vstv %s9536_s19 }
   0x2   :  { %9583 = sst [smem:[#allocation28_spill]] %s9518_s1  ;;  %26 = vst [vmem:[#allocation2] sm:$0x1] %v25_v0 }
   0x3   :  { %9584 = sst [smem:[#allocation29_spill]] %s9519_s2 }
   0x4   :  { %9585 = sst [smem:[#allocation30_spill]] %s9520_s3 }
   0x5   :  { %9586 = sst [smem:[#allocation31_spill]] %s9521_s4 }
   0x6   :  { %9587 = sst [smem:[#allocation32_spill]] %s9522_s5 }
   0x7   :  { %9588 = sst [smem:[#allocation33_spill]] %s9524_s7 }
   0x8   :  { %9589 = sst [smem:[#allocation34_spill]] %s9525_s8 }
   0x9   :  { %9590 = sst [smem:[#allocation35_spill]] %s9526_s9 }
   0xa   :  { %9591 = sst [smem:[#allocation36_spill]] %s9528_s11 }
   0xb   :  { %9592 = sst [smem:[#allocation37_spill]] %s9535_s18 }
   0xc   :  { %9593 = sst [smem:[#allocation38_spill]] %s9537_s20 }
   0xd   :  { %27 = vsyncpa [#allocation4], 0 }
   0xe   :  { %28 = vsyncpa [#allocation6], 0 }
   0xf   :  { %29 = vsyncpa [#allocation9], 0 }
  0x10   :  { %30 = vsyncpa [#allocation12], 0 }
  0x11   :  { %31 = vsyncpa [#allocation15], 0 }
  0x12   :  { %32 = vsyncpa [#allocation18], 0  ;;  %s7603_s23 = smov 0  }
  0x13 LB: > { %9594 = sst [smem:[#allocation26_spill]] %s7460_s23  ;;  %s7462_s24 = smov [#allocation5]   ;;  %s7460_s23 = sphi %s7603_s23, %s38_s23  }
  0x14   : > { %s521_s2 = sshll.u32 %s7462_s24, 4  ;;  %s7609_s19 = sadd.s32 4294967295, %s7460_s23   ;;  %s7614_s2 = int_to_ptr.vmem [resolvable:$true] %s521_s2 }
  0x15   : > { %p5640_p0 = scmp.ge.s32.totalorder %s7460_s23, 1  ;;  %p494_p1 = scmp.lt.s32.totalorder %s7460_s23, 3 }
  0x16   : > { %p9545_p2 = scmp.eq.s32.totalorder %s7609_s19, 0  ;;  %s7463_s3 = smov [#allocation8]  }
  0x17   : > { %p7616_p3 = pnand %p5640_p0, %p494_p1  ;;  %s550_s26 = sshll.u32 %s7463_s3, 4  ;;  %s7622_s26 = int_to_ptr.vmem [resolvable:$true] %s550_s26 }
  0x18   : > { %s7464_s28 = smov [#allocation11]   ;;  %s7465_s29 = smov [#allocation14]  }
  0x19   : > { %s9595_s25 = scalar_select %p7616_p3, 1, 0 }
  0x1a   : > { %p6493_p4 = pneg %p7616_p3  ;;  %s576_s4 = sshll.u32 %s7464_s28, 4  ;;  %s7630_s4 = int_to_ptr.vmem [resolvable:$true] %s576_s4 }
  0x1b   : > { %s7632_s30 = sshll.u32 %s7465_s29, 4  ;;  %s9597_s1 = sld [smem:[#allocation30_spill]]  ;;  %s609_s30 = int_to_ptr.vmem [resolvable:$true] %s7632_s30 }
  0x1c   : > { %p7626_p5 = pnand %p9545_p2, %p6493_p4 }
  0x1e   : > { %p7642_p7 = pneg %p7626_p5 }
  0x21   : > { %s7122_s22 = scalar_lea.hbm %s9597_s1, 16 }
  0x22   : > { %p7123_p6 = scmp.ne.s32.totalorder %s9597_s1, %s7122_s22  ;;  %p7129_p10 = scmp.lt.u32.totalorder %s7122_s22, %s9597_s1 }
  0x24   : > { %p7125_p8 = pnand %p7642_p7, %p7123_p6 }
  0x26   : > { %p7126_p9 = pneg %p7125_p8 }
  0x28   : > { %p7131_p11 = pnand %p7129_p10, %p7126_p9 }
  0x2a   : > { %7134 = shalt.err (!%p7131_p11)
}
  0x2b   : > { %s7135_s0 = scalar_lea.vmem %s7614_s2, 16  ;;  %s7142_s21 = scalar_lea.vmem %s7614_s2, 32 }
  0x2c   : > { %p7136_p12 = scmp.ne.s32.totalorder %s7614_s2, %s7135_s0  ;;  %p7143_p1 = scmp.lt.s32.totalorder %s7614_s2, %s7614_s2 }
  0x2d   : > { %p7144_p4 = scmp.lt.s32.totalorder %s7142_s21, %s7135_s0 }
  0x2e   : > { %p7138_p13 = pnand %p7136_p12, %p7642_p7 }
  0x2f   : > { %p7145_p6 = por %p7144_p4, %p7143_p1 }
  0x30   : > { %p7139_p0 = pneg %p7138_p13 }
  0x32   : > { %p7146_p8 = pnand %p7145_p6, %p7139_p0 }
  0x34   : > { %7149 = shalt.err (!%p7146_p8)
}
  0x35   : > { %6499 = dma.hbm_to_vmem [thread:$0]  (!%p7626_p5), %s9597_s1, 16, %s7614_s2, [#allocation6]  }
  0x36   : > { %s9599_s7 = sld [smem:[#allocation33_spill]] }
  0x3c   : > { %s7150_s29 = scalar_lea.hbm %s9599_s7, 48 }
  0x3d   : > { %p7151_p9 = scmp.ne.s32.totalorder %s9599_s7, %s7150_s29  ;;  %p7157_p12 = scmp.lt.u32.totalorder %s7150_s29, %s9599_s7 }
  0x3f   : > { %p7153_p10 = pnand %p7151_p9, %p7642_p7 }
  0x41   : > { %p7154_p11 = pneg %p7153_p10 }
  0x43   : > { %p7159_p13 = pnand %p7157_p12, %p7154_p11 }
  0x45   : > { %7162 = shalt.err (!%p7159_p13)
}
  0x46   : > { %s7163_s2 = scalar_lea.vmem %s7622_s26, 48  ;;  %s7170_s18 = scalar_lea.vmem %s7622_s26, 64 }
  0x47   : > { %p7164_p0 = scmp.ne.s32.totalorder %s7622_s26, %s7163_s2  ;;  %p7171_p6 = scmp.lt.s32.totalorder %s7622_s26, %s7622_s26 }
  0x48   : > { %p7172_p8 = scmp.lt.s32.totalorder %s7170_s18, %s7163_s2 }
  0x49   : > { %p7166_p1 = pnand %p7164_p0, %p7642_p7 }
  0x4a   : > { %p7173_p9 = por %p7172_p8, %p7171_p6 }
  0x4b   : > { %p7167_p4 = pneg %p7166_p1 }
  0x4d   : > { %p7174_p10 = pnand %p7173_p9, %p7167_p4 }
  0x4f   : > { %7177 = shalt.err (!%p7174_p10)
}
  0x50   : > { %s9547_s20 = smov 16   ;;  %s9549_s22 = smov 1  }
  0x51   : > { %6505 = dma.hbm_to_vmem [thread:$0]  (!%p7626_p5), %s9599_s7, 48, %s7622_s26, [#allocation9], %s9547_s20, %s9547_s20, %s9549_s22  }
  0x52   : > { %s9600_s9 = sld [smem:[#allocation35_spill]] }
  0x58   : > { %s7178_s0 = scalar_lea.hbm %s9600_s9, 48 }
  0x59   : > { %p7179_p11 = scmp.ne.s32.totalorder %s9600_s9, %s7178_s0  ;;  %p7185_p0 = scmp.lt.u32.totalorder %s7178_s0, %s9600_s9 }
  0x5b   : > { %p7181_p12 = pnand %p7179_p11, %p7642_p7 }
  0x5d   : > { %p7182_p13 = pneg %p7181_p12 }
  0x5f   : > { %p7187_p1 = pnand %p7185_p0, %p7182_p13 }
  0x61   : > { %7190 = shalt.err (!%p7187_p1)
}
  0x62   : > { %s7191_s26 = scalar_lea.vmem %s7630_s4, 48  ;;  %s7198_s24 = scalar_lea.vmem %s7630_s4, 64 }
  0x63   : > { %p7192_p4 = scmp.ne.s32.totalorder %s7630_s4, %s7191_s26  ;;  %p7199_p9 = scmp.lt.s32.totalorder %s7630_s4, %s7630_s4 }
  0x64   : > { %p7200_p10 = scmp.lt.s32.totalorder %s7198_s24, %s7191_s26 }
  0x65   : > { %p7194_p6 = pnand %p7192_p4, %p7642_p7 }
  0x66   : > { %p7201_p11 = por %p7200_p10, %p7199_p9 }
  0x67   : > { %p7195_p8 = pneg %p7194_p6 }
  0x69   : > { %p7202_p12 = pnand %p7201_p11, %p7195_p8 }
  0x6b   : > { %7205 = shalt.err (!%p7202_p12)
}
  0x6c   : > { %6511 = dma.hbm_to_vmem [thread:$0]  (!%p7626_p5), %s9600_s9, 48, %s7630_s4, [#allocation12], %s9547_s20, %s9547_s20, %s9549_s22  }
  0x6d   : > { %s7206_s0 = scalar_lea.hbm %s9530_s13, 48 }
  0x6e   : > { %p7207_p13 = scmp.ne.s32.totalorder %s9530_s13, %s7206_s0  ;;  %p7213_p4 = scmp.lt.u32.totalorder %s7206_s0, %s9530_s13 }
  0x70   : > { %p7209_p0 = pnand %p7207_p13, %p7642_p7 }
  0x72   : > { %p7210_p1 = pneg %p7209_p0 }
  0x74   : > { %p7215_p6 = pnand %p7213_p4, %p7210_p1 }
  0x76   : > { %7218 = shalt.err (!%p7215_p6)
}
  0x77   : > { %s7219_s24 = scalar_lea.vmem %s609_s30, 48  ;;  %s7226_s4 = scalar_lea.vmem %s609_s30, 64 }
  0x78   : > { %p7220_p8 = scmp.ne.s32.totalorder %s609_s30, %s7219_s24  ;;  %p7227_p11 = scmp.lt.s32.totalorder %s609_s30, %s609_s30 }
  0x79   : > { %p7228_p12 = scmp.lt.s32.totalorder %s7226_s4, %s7219_s24 }
  0x7a   : > { %p7222_p9 = pnand %p7220_p8, %p7642_p7 }
  0x7b   : > { %p7229_p2 = por %p7228_p12, %p7227_p11 }
  0x7c   : > { %p7223_p10 = pneg %p7222_p9 }
  0x7e   : > { %p7230_p3 = pnand %p7229_p2, %p7223_p10 }
  0x80   : > { %7233 = shalt.err (!%p7230_p3)
}
  0x81   : > { %6517 = dma.hbm_to_vmem [thread:$0]  (!%p7626_p5), %s9530_s13, 48, %s609_s30, [#allocation15], %s9547_s20, %s9547_s20, %s9549_s22  }
  0x82   : > { %s7468_s28 = smov [#allocation17]   ;;  %s7469_s0 = smov [#allocation3]  }
  0x83   : > { %s634_s29 = sshll.u32 %s7468_s28, 4  ;;  %s510_s21 = sshll.u32 %s7469_s0, 4  ;;  %s635_s29 = int_to_ptr.vmem [resolvable:$true] %s634_s29  ;;  %s511_s21 = int_to_ptr.vmem [resolvable:$true] %s510_s21 }
  0x84   : > { %s7234_s26 = scalar_lea.hbm %s9532_s15, 48 }
  0x85   : > { %p7235_p2 = scmp.ne.s32.totalorder %s9532_s15, %s7234_s26  ;;  %p7241_p0 = scmp.lt.u32.totalorder %s7234_s26, %s9532_s15 }
  0x87   : > { %p7237_p3 = pnand %p7235_p2, %p7642_p7 }
  0x89   : > { %p7238_p13 = pneg %p7237_p3 }
  0x8b   : > { %p7243_p1 = pnand %p7241_p0, %p7238_p13 }
  0x8d   : > { %7246 = shalt.err (!%p7243_p1)
}
  0x8e   : > { %s7247_s30 = scalar_lea.vmem %s635_s29, 48  ;;  %s7254_s3 = scalar_lea.vmem %s635_s29, 64 }
  0x8f   : > { %p7248_p4 = scmp.ne.s32.totalorder %s635_s29, %s7247_s30  ;;  %p7255_p9 = scmp.lt.s32.totalorder %s635_s29, %s635_s29 }
  0x90   : > { %p7256_p10 = scmp.lt.s32.totalorder %s7254_s3, %s7247_s30 }
  0x91   : > { %p7250_p6 = pnand %p7248_p4, %p7642_p7 }
  0x92   : > { %p7257_p11 = por %p7256_p10, %p7255_p9 }
  0x93   : > { %p7251_p8 = pneg %p7250_p6 }
  0x95   : > { %p7258_p12 = pnand %p7257_p11, %p7251_p8 }
  0x97   : > { %7261 = shalt.err (!%p7258_p12)
}
  0x98   : > { %6523 = dma.hbm_to_vmem [thread:$0]  (!%p7626_p5), %s9532_s15, 48, %s635_s29, [#allocation18], %s9547_s20, %s9547_s20, %s9549_s22  }
  0x99   : > { %s9601_s18 = sld [smem:[#allocation29_spill]] }
  0x9f   : > { %s7262_s26 = scalar_lea.hbm %s9601_s18, 16 }
  0xa0   : > { %p7263_p2 = scmp.ne.s32.totalorder %s9601_s18, %s7262_s26  ;;  %p7269_p0 = scmp.lt.u32.totalorder %s7262_s26, %s9601_s18 }
  0xa2   : > { %p7265_p3 = pnand %p7263_p2, %p7642_p7 }
  0xa4   : > { %p7266_p13 = pneg %p7265_p3 }
  0xa6   : > { %p7271_p1 = pnand %p7269_p0, %p7266_p13 }
  0xa8   : > { %7274 = shalt.err (!%p7271_p1)
}
  0xa9   : > { %s7275_s3 = scalar_lea.vmem %s511_s21, 16  ;;  %s7282_s29 = scalar_lea.vmem %s511_s21, 32 }
  0xaa   : > { %p7276_p4 = scmp.ne.s32.totalorder %s511_s21, %s7275_s3  ;;  %p7283_p9 = scmp.lt.s32.totalorder %s511_s21, %s511_s21 }
  0xab   : > { %p7284_p10 = scmp.lt.s32.totalorder %s7282_s29, %s7275_s3 }
  0xac   : > { %p7278_p6 = pnand %p7276_p4, %p7642_p7 }
  0xad   : > { %p7285_p11 = por %p7284_p10, %p7283_p9 }
  0xae   : > { %p7279_p8 = pneg %p7278_p6 }
  0xb0   : > { %p7286_p12 = pnand %p7285_p11, %p7279_p8 }
  0xb2   : > { %7289 = shalt.err (!%p7286_p12)
}
  0xb3   : > { %6496 = dma.hbm_to_vmem [thread:$0]  (!%p7626_p5), %s9601_s18, 16, %s511_s21, [#allocation4]  }
  0xb4   : > { %s7470_s0 = smov [#allocation7]   ;;  %s9602_s5 = sld [smem:[#allocation32_spill]] }
  0xb5   : > { %s534_s2 = sshll.u32 %s7470_s0, 4  ;;  %s535_s2 = int_to_ptr.vmem [resolvable:$true] %s534_s2 }
  0xba   : > { %s7290_s4 = scalar_lea.hbm %s9602_s5, 96 }
  0xbb   : > { %p7291_p2 = scmp.ne.s32.totalorder %s9602_s5, %s7290_s4  ;;  %p7297_p0 = scmp.lt.u32.totalorder %s7290_s4, %s9602_s5 }
  0xbd   : > { %p7293_p3 = pnand %p7291_p2, %p7642_p7 }
  0xbf   : > { %p7294_p13 = pneg %p7293_p3 }
  0xc1   : > { %p7299_p1 = pnand %p7297_p0, %p7294_p13 }
  0xc3   : > { %7302 = shalt.err (!%p7299_p1)
}
  0xc4   : > { %s7303_s21 = scalar_lea.vmem %s535_s2, 96  ;;  %p7311_p9 = scmp.lt.s32.totalorder %s535_s2, %s535_s2 }
  0xc5   : > { %p7304_p4 = scmp.ne.s32.totalorder %s535_s2, %s7303_s21  ;;  %p7312_p10 = scmp.lt.s32.totalorder %s7303_s21, %s7303_s21 }
  0xc7   : > { %p7306_p6 = pnand %p7304_p4, %p7642_p7  ;;  %p7313_p11 = por %p7312_p10, %p7311_p9 }
  0xc9   : > { %p7307_p8 = pneg %p7306_p6 }
  0xcb   : > { %p7314_p12 = pnand %p7313_p11, %p7307_p8 }
  0xcd   : > { %7317 = shalt.err (!%p7314_p12)
}
  0xce   : > { %s7471_s7 = smov 32   ;;  %s7472_s28 = smov 2  }
  0xcf   : > { %6502 = dma.hbm_to_vmem [thread:$0]  (!%p7626_p5), %s9602_s5, 96, %s535_s2, [#allocation6], %s7471_s7, %s7471_s7, %s7472_s28  }
  0xd0   : > { %s7473_s24 = smov [#allocation10]   ;;  %s7474_s1 = smov [#allocation13]  }
  0xd1   : > { %s563_s4 = sshll.u32 %s7473_s24, 4  ;;  %s592_s30 = sshll.u32 %s7474_s1, 4  ;;  %s564_s4 = int_to_ptr.vmem [resolvable:$true] %s563_s4  ;;  %s7797_s30 = int_to_ptr.vmem [resolvable:$true] %s592_s30 }
  0xd2   : > { %s9603_s8 = sld [smem:[#allocation34_spill]] }
  0xd8   : > { %s7318_s21 = scalar_lea.hbm %s9603_s8, 48 }
  0xd9   : > { %p7319_p2 = scmp.ne.s32.totalorder %s9603_s8, %s7318_s21  ;;  %p7325_p0 = scmp.lt.u32.totalorder %s7318_s21, %s9603_s8 }
  0xdb   : > { %p7321_p3 = pnand %p7319_p2, %p7642_p7 }
  0xdd   : > { %p7322_p13 = pneg %p7321_p3 }
  0xdf   : > { %p7327_p1 = pnand %p7325_p0, %p7322_p13 }
  0xe1   : > { %7330 = shalt.err (!%p7327_p1)
}
  0xe2   : > { %s7331_s7 = scalar_lea.vmem %s564_s4, 48  ;;  %s7338_s28 = scalar_lea.vmem %s564_s4, 64 }
  0xe3   : > { %p7332_p4 = scmp.ne.s32.totalorder %s564_s4, %s7331_s7  ;;  %p7339_p9 = scmp.lt.s32.totalorder %s564_s4, %s564_s4 }
  0xe4   : > { %p7340_p10 = scmp.lt.s32.totalorder %s7338_s28, %s7331_s7 }
  0xe5   : > { %p7334_p6 = pnand %p7332_p4, %p7642_p7 }
  0xe6   : > { %p7341_p11 = por %p7340_p10, %p7339_p9 }
  0xe7   : > { %p7335_p8 = pneg %p7334_p6 }
  0xe9   : > { %p7342_p12 = pnand %p7341_p11, %p7335_p8 }
  0xeb   : > { %7345 = shalt.err (!%p7342_p12)
}
  0xec   : > { %s9604_s20 = smov 1   ;;  %s9605_s22 = smov 16  }
  0xed   : > { %6508 = dma.hbm_to_vmem [thread:$0]  (!%p7626_p5), %s9603_s8, 48, %s564_s4, [#allocation9], %s9605_s22, %s9605_s22, %s9604_s20  }
  0xee   : > { %s9606_s11 = sld [smem:[#allocation36_spill]] }
  0xf4   : > { %s7346_s29 = scalar_lea.hbm %s9606_s11, 48 }
  0xf5   : > { %p7347_p2 = scmp.ne.s32.totalorder %s9606_s11, %s7346_s29  ;;  %p7353_p0 = scmp.lt.u32.totalorder %s7346_s29, %s9606_s11 }
  0xf7   : > { %p7349_p3 = pnand %p7347_p2, %p7642_p7 }
  0xf9   : > { %p7350_p13 = pneg %p7349_p3 }
  0xfb   : > { %p7355_p1 = pnand %p7353_p0, %p7350_p13 }
  0xfd   : > { %7358 = shalt.err (!%p7355_p1)
}
  0xfe   : > { %s7359_s4 = scalar_lea.vmem %s7797_s30, 48  ;;  %s7366_s28 = scalar_lea.vmem %s7797_s30, 64 }
  0xff   : > { %p7360_p4 = scmp.ne.s32.totalorder %s7797_s30, %s7359_s4  ;;  %p7367_p9 = scmp.lt.s32.totalorder %s7797_s30, %s7797_s30 }
 0x100   : > { %p7368_p10 = scmp.lt.s32.totalorder %s7366_s28, %s7359_s4 }
 0x101   : > { %p7362_p6 = pnand %p7360_p4, %p7642_p7 }
 0x102   : > { %p7369_p11 = por %p7368_p10, %p7367_p9 }
 0x103   : > { %p7363_p8 = pneg %p7362_p6 }
 0x105   : > { %p7370_p12 = pnand %p7369_p11, %p7363_p8 }
 0x107   : > { %7373 = shalt.err (!%p7370_p12)
}
 0x108   : > { %6514 = dma.hbm_to_vmem [thread:$0]  (!%p7626_p5), %s9606_s11, 48, %s7797_s30, [#allocation12], %s9605_s22, %s9605_s22, %s9604_s20  }
 0x109   : > { %s7475_s1 = smov [#allocation16]   ;;  %s7476_s29 = smov [#allocation19]  }
 0x10a   : > { %s621_s3 = sshll.u32 %s7475_s1, 4  ;;  %s651_s21 = sshll.u32 %s7476_s29, 4  ;;  %s622_s3 = int_to_ptr.vmem [resolvable:$true] %s621_s3  ;;  %s7847_s21 = int_to_ptr.vmem [resolvable:$true] %s651_s21 }
 0x10b   : > { %s7374_s7 = scalar_lea.hbm %s9531_s14, 48 }
 0x10c   : > { %p7375_p2 = scmp.ne.s32.totalorder %s9531_s14, %s7374_s7  ;;  %p7381_p0 = scmp.lt.u32.totalorder %s7374_s7, %s9531_s14 }
 0x10e   : > { %p7377_p3 = pnand %p7375_p2, %p7642_p7 }
 0x110   : > { %p7378_p13 = pneg %p7377_p3 }
 0x112   : > { %p7383_p1 = pnand %p7381_p0, %p7378_p13 }
 0x114   : > { %7386 = shalt.err (!%p7383_p1)
}
 0x115   : > { %s7387_s24 = scalar_lea.vmem %s622_s3, 48  ;;  %s7394_s1 = scalar_lea.vmem %s622_s3, 64 }
 0x116   : > { %p7388_p4 = scmp.ne.s32.totalorder %s622_s3, %s7387_s24  ;;  %p7395_p9 = scmp.lt.s32.totalorder %s622_s3, %s622_s3 }
 0x117   : > { %p7396_p10 = scmp.lt.s32.totalorder %s7394_s1, %s7387_s24 }
 0x118   : > { %p7390_p6 = pnand %p7388_p4, %p7642_p7 }
 0x119   : > { %p7397_p11 = por %p7396_p10, %p7395_p9 }
 0x11a   : > { %p7391_p8 = pneg %p7390_p6 }
 0x11c   : > { %p7398_p12 = pnand %p7397_p11, %p7391_p8 }
 0x11e   : > { %7401 = shalt.err (!%p7398_p12)
}
 0x11f   : > { %6520 = dma.hbm_to_vmem [thread:$0]  (!%p7626_p5), %s9531_s14, 48, %s622_s3, [#allocation15], %s9605_s22, %s9605_s22, %s9604_s20  }
 0x120   : > { %s7402_s4 = scalar_lea.hbm %s9534_s17, 16 }
 0x121   : > { %p7403_p2 = scmp.ne.s32.totalorder %s9534_s17, %s7402_s4  ;;  %p7409_p0 = scmp.lt.u32.totalorder %s7402_s4, %s9534_s17 }
 0x123   : > { %p7405_p3 = pnand %p7403_p2, %p7642_p7 }
 0x125   : > { %p7406_p13 = pneg %p7405_p3 }
 0x127   : > { %p7411_p1 = pnand %p7409_p0, %p7406_p13 }
 0x129   : > { %7414 = shalt.err (!%p7411_p1)
}
 0x12a   : > { %s7415_s20 = scalar_lea.vmem %s7847_s21, 16  ;;  %s7422_s22 = scalar_lea.vmem %s7847_s21, 32 }
 0x12b   : > { %p7416_p4 = scmp.ne.s32.totalorder %s7847_s21, %s7415_s20  ;;  %p7423_p9 = scmp.lt.s32.totalorder %s7847_s21, %s7847_s21 }
 0x12c   : > { %p7424_p10 = scmp.lt.s32.totalorder %s7422_s22, %s7415_s20 }
 0x12d   : > { %p7418_p6 = pnand %p7416_p4, %p7642_p7 }
 0x12e   : > { %p7425_p11 = por %p7424_p10, %p7423_p9 }
 0x12f   : > { %p7419_p8 = pneg %p7418_p6 }
 0x131   : > { %p7426_p12 = pnand %p7425_p11, %p7419_p8 }
 0x133   : > { %7429 = shalt.err (!%p7426_p12)
}
 0x134   : > { %6526 = dma.hbm_to_vmem [thread:$0]  (!%p7626_p5), %s9534_s17, 16, %s7847_s21, [#allocation18]  }
 0x135   : > { %p9607_p2 = scmp.ne.s32.totalorder %s9595_s25, 0 }
 0x136   : > { %p9608_p7 = scmp.eq.s32.totalorder (!%p9607_p2), %s7609_s19, 0 }
 0x137   : > { %678 = sbr.rel (%p9607_p2) target bundleno = 8865 (0x22a1), region = 100 }
 0x13e   : > { %7435 = dma.done.wait (%p9608_p7), [#allocation4], 16   ;;  %p9609_p3 = pmov %p9608_p7 }
 0x140   : > { %7437 = vsyncadd (%p9609_p3), [#allocation4], 4294967280  ;;  %p9610_p13 = pmov %p9609_p3 }
 0x141   : > { %p9611_p0 = pmov %p9609_p3 }
 0x142   : > { %7439 = dma.done.wait (%p9610_p13), [#allocation6], 112  }
 0x143   : > { %7441 = vsyncadd (%p9611_p0), [#allocation6], 4294967184  ;;  %p9612_p1 = pmov %p9611_p0 }
 0x144   : > { %p9613_p5 = pmov %p9611_p0 }
 0x145   : > { %7443 = dma.done.wait (%p9612_p1), [#allocation9], 96  }
 0x146   : > { %7445 = vsyncadd (%p9613_p5), [#allocation9], 4294967200  ;;  %p9614_p4 = pmov %p9611_p0 }
 0x147   : > { %p9615_p6 = pmov %p9611_p0 }
 0x148   : > { %7447 = dma.done.wait (%p9614_p4), [#allocation12], 96  }
 0x149   : > { %7449 = vsyncadd (%p9615_p6), [#allocation12], 4294967200  ;;  %p9616_p8 = pmov %p9611_p0 }
 0x14a   : > { %p9617_p9 = pmov %p9611_p0 }
 0x14b   : > { %7451 = dma.done.wait (%p9616_p8), [#allocation15], 96  }
 0x14c   : > { %7453 = vsyncadd (%p9617_p9), [#allocation15], 4294967200  ;;  %p9618_p10 = pmov %p9611_p0 }
 0x14d   : > { %p9619_p11 = pmov %p9611_p0 }
 0x14e   : > { %7455 = dma.done.wait (%p9618_p10), [#allocation18], 64  }
 0x14f   : > { %7457 = vsyncadd (%p9619_p11), [#allocation18], 4294967232  ;;  %p774_p12 = scmp.lt.s32.totalorder %s7609_s19, 1  ;;  %v7477_v1 = vmov 0   ;;  %s9620_s21 = sld [smem:[#allocation27_spill]]  ;;  %vm854_vm0 = vcmask 523264   ;;  %v844_v41 = vlaneseq }
 0x150   : > { %6590 = vset.pattern.permute.xlu0 %v7477_v1  ;;  %890 = vmatprep.mubr.bf16.mxu0 %v7477_v1  ;;  %s9621_s7 = sld [smem:[#allocation31_spill]]  ;;  %v5667_v28 = vld [vmem:[#allocation3] ss:$0 sm:$0xff]  ;;  %v5668_v31 = vld [vmem:[#allocation5] ss:$0 sm:$0xff]  ;;  %s9622_s4 = sld [smem:[#allocation28_spill]] }
 0x151   : > { %s9642_s19 = smov (!%p774_p12, %s7609_s19), 1  ;;  %v845_v42 = vshrl.u32 %v844_v41, 7  ;;  %v842_v44 = vld [vmem:[#allocation7] sm:$0x3]  ;;  %s9573_s30 = smov 104   ;;  %v7480_v60 = vmov 0.0  }
 0x152   : > { %s5847_s23 = sshll.u32 %s9642_s19, 4  ;;  %s9577_s24 = smov 120   ;;  %6009 = vmatprep.subr.bf16.mxu1 %v7480_v60  ;;  %vm7485_vm1 = vmmov 0   ;;  %vm1008_vm2 = vcmask 64512   ;;  %vm1422_vm3 = vcmask 130048   ;;  %vm2019_vm4 = vcmask 195584  }
 0x153   : > { %v7991_v43 = vsub.s32 0, %v845_v42  ;;  %v7993_v45 = vsub.s32 1, %v845_v42  ;;  %s9575_s20 = smov 88   ;;  %s9579_s22 = smov 112   ;;  %6011 = vmatprep.mubr.msk.bf16.mxu1 %vm7485_vm1, %v7480_v60  ;;  %vm2022_vm5 = vcmask 261120   ;;  %vm2025_vm6 = vcmask 326656  }
 0x154   : > { %s9559_s3 = smov 72   ;;  %s9571_s1 = smov 96   ;;  %vm2028_vm7 = vcmask 392192   ;;  %vm2031_vm8 = vcmask 457728   ;;  %vm5482_vm9 = vcmask 0  }
 0x155   : > { %s778_s29 = scalar_lea.vmem %s9620_s21, %s5847_s23  ;;  %v847_v46 = vrot.slane %v842_v44, %v7991_v43  ;;  %v851_v48 = vrot.slane %v842_v44, %v7993_v45  ;;  %s9569_s23 = smov 80  }
 0x156   : > { %v783_v2 = vld [vmem:[%s778_s29] sm:$0xff]  ;;  %v818_v3 = vld [vmem:[%s9621_s7 + $0x8] sm:$0xff]  ;;  %v820_v4 = vld [vmem:[%s9621_s7 + $0x18] sm:$0xff]  ;;  %s9557_s25 = smov 64   ;;  %s9553_s27 = smov 8  }
 0x157   : > { %788 = vperm.xlu0 %6590, %v783_v2   ;;  %v817_v5 = vld [vmem:[%s9621_s7] sm:$0xff]  ;;  %v819_v6 = vld [vmem:[%s9621_s7 + $0x10] sm:$0xff]  ;;  %v784_v7 = vld [vmem:[%s778_s29 + $0x8] sm:$0xff]  ;;  %v835_v8 = vpack.c.bf16 %v820_v4, %v818_v3  ;;  %s9551_s21 = smov 16   ;;  %s9555_s26 = smov 24  }
 0x158   : > { %v834_v9 = vpack.c.bf16 %v819_v6, %v817_v5  ;;  %v822_v10 = vld [vmem:[%s9621_s7 + $0x28] sm:$0xff]  ;;  %v824_v11 = vld [vmem:[%s9621_s7 + $0x38] sm:$0xff]  ;;  %v821_v12 = vld [vmem:[%s9621_s7 + $0x20] sm:$0xff]  ;;  %s9563_s29 = smov 48   ;;  %s9561_s2 = smov 56  }
 0x159   : > { %858 = vmatprep.subr.bf16.mxu0 %v835_v8  ;;  %v837_v13 = vpack.c.bf16 %v824_v11, %v822_v10  ;;  %v823_v14 = vld [vmem:[%s9621_s7 + $0x30] sm:$0xff]  ;;  %v826_v15 = vld [vmem:[%s9621_s7 + $0x48] sm:$0xff]  ;;  %v828_v16 = vld [vmem:[%s9621_s7 + $0x58] sm:$0xff]  ;;  %s9623_s0 = smov 80   ;;  %s9626_s28 = smov 8  }
 0x15a   : > { %859 = vmatpush1.bf16.msra.mxu0 %v834_v9  ;;  %v836_v17 = vpack.c.bf16 %v823_v14, %v821_v12  ;;  %v839_v18 = vpack.c.bf16 %v828_v16, %v826_v15  ;;  %v825_v19 = vld [vmem:[%s9621_s7 + $0x40] sm:$0xff]  ;;  %v827_v20 = vld [vmem:[%s9621_s7 + $0x50] sm:$0xff]  ;;  %v830_v21 = vld [vmem:[%s9621_s7 + $0x68] sm:$0xff]  ;;  %s9634_s5 = smov 120   ;;  %s9635_s8 = smov 88  }
 0x15b   : > { %793 = vperm.xlu0 %6590, %v784_v7   ;;  %860 = vmatprep.subr.bf16.mxu0 %v837_v13  ;;  %v832_v22 = vld [vmem:[%s9621_s7 + $0x78] sm:$0xff]  ;;  %v838_v23 = vpack.c.bf16 %v827_v20, %v825_v19  ;;  %v829_v25 = vld [vmem:[%s9621_s7 + $0x60] sm:$0xff]  ;;  %v831_v26 = vld [vmem:[%s9621_s7 + $0x70] sm:$0xff] }
 0x15c   : > { %v841_v24 = vpack.c.bf16 %v832_v22, %v830_v21  ;;  %v840_v27 = vpack.c.bf16 %v831_v26, %v829_v25  ;;  %v813_v35 = vld [vmem:[%s9622_s4] sm:$0xff]  ;;  %v814_v36 = vld [vmem:[%s9622_s4 + $0x8] sm:$0xff] }
 0x15e   : > { %861 = vmatpush1.bf16.msra.mxu0 %v836_v17 }
 0x15f   : > { %862 = vmatprep.subr.bf16.mxu0 %v839_v18 }
 0x162   : > { %863 = vmatpush1.bf16.msra.mxu0 %v838_v23 }
 0x163   : > { %864 = vmatprep.subr.bf16.mxu0 %v841_v24 }
 0x166   : > { %865 = vmatpush1.bf16.msra.mxu0 %v840_v27 }
 0x167   : > { %6021 = vmatprep.subr.bf16.mxu0 %v7480_v60 }
 0x1d6   : > { %v789_v29 = vpop.permute.xlu0 %788 }
 0x1d7   : > { %v802_v30 = vmul.f32 %v5667_v28, %v789_v29 }
 0x1d9   : > { %v811_v33 = vadd.f32 %v5668_v31, %v802_v30 }
 0x1da   : > { %v794_v32 = vpop.permute.xlu0 %793 }
 0x1db   : > { %v803_v34 = vmul.f32 %v5667_v28, %v794_v32  ;;  %v7984_v38 = vadd.f32 %v813_v35, %v811_v33 }
 0x1dd   : > { %v812_v37 = vadd.f32 %v5668_v31, %v803_v34 }
 0x1df   : > { %v7986_v39 = vadd.f32 %v814_v36, %v812_v37 }
 0x1e1   : > { %v833_v40 = vpack.c.bf16 %v7986_v39, %v7984_v38 }
 0x1e3   : > { %5669 = vmatmul.mubr.msk.bf16.vlgmr.msra.gmra.mrb[0].mxu0 %vm854_vm0, %v833_v40 }
 0x1e4   : > { %6023 = vmatprep.mubr.msk.bf16.mxu0 %vm7485_vm1, %v7480_v60 }
 0x2b6   : > { %v892_v47 = vpop.f32.mrb[0].mxu0 }
 0x2b7   : > { %v894_v49 = vpop.f32.mrb[1].mxu0  ;;  %v893_v51 = vadd.f32 %v892_v47, %v847_v46 }
 0x2b8   : > { %v896_v50 = vpop.f32.mrb[2].mxu0  ;;  %v7997_v54 = vadd.f32 %v894_v49, %v851_v48 }
 0x2b9   : > { %v897_v52 = vadd.f32 %v896_v50, %v847_v46  ;;  %v898_v53 = vpop.f32.mrb[3].mxu0 }
 0x2ba   : > { %v7999_v55 = vadd.f32 %v898_v53, %v851_v48 }
 0x2bb   : > { %v6601_v56 = vpack.i.bf16 %v897_v52, %v893_v51  ;;  %v8001_v57 = vpack.c.bf16 %v897_v52, %v893_v51 }
 0x2bc   : > { %v8007_v58 = vpack.i.bf16 %v7999_v55, %v7997_v54  ;;  %v997_v59 = vpack.c.bf16 %v7999_v55, %v7997_v54 }
 0x2bd   : > { %6602 = vrot.lane.b32.xlu0 %v6601_v56, %s9573_s30  ;;  %6592 = vrot.lane.b32.xlu1 %v6601_v56, %s9577_s24 }
 0x2c1   : > { %6612 = vrot.lane.b32.xlu0 %v6601_v56, %s9575_s20  ;;  %6597 = vrot.lane.b32.xlu1 %v6601_v56, %s9579_s22 }
 0x2c5   : > { %6622 = vrot.lane.b32.xlu0 %v6601_v56, %s9559_s3  ;;  %6607 = vrot.lane.b32.xlu1 %v6601_v56, %s9571_s1 }
 0x2c9   : > { %6617 = vrot.lane.b32.xlu1 %v6601_v56, %s9569_s23 }
 0x2cd   : > { %1006 = vrot.lane.b32.xlu1 %v8001_v57, %s9557_s25 }
 0x32f   : > { %v6603_v61 = vpop.permute.xlu0 %6602  ;;  %v6593_v62 = vpop.permute.xlu1 %6592 }
 0x330   : > { %v6595_v63 = vunpack.i.h.bf16 %v6593_v62  ;;  %v6594_v0 = vunpack.i.l.bf16 %v6593_v62  ;;  %v6605_v2 = vunpack.i.h.bf16 %v6603_v61  ;;  %v6604_v3 = vunpack.i.l.bf16 %v6603_v61 }
 0x332   : > { %v946_v4 = vpack.c.bf16 %v6595_v63, %v6594_v0  ;;  %v948_v11 = vpack.c.bf16 %v6605_v2, %v6604_v3 }
 0x333   : > { %v6613_v5 = vpop.permute.xlu0 %6612  ;;  %v6598_v6 = vpop.permute.xlu1 %6597 }
 0x334   : > { %v6600_v7 = vunpack.i.h.bf16 %v6598_v6  ;;  %v6599_v8 = vunpack.i.l.bf16 %v6598_v6  ;;  %1057 = vrot.lane.b32.xlu0 %v946_v4, %s9557_s25  ;;  %v6615_v9 = vunpack.i.h.bf16 %v6613_v5  ;;  %v6614_v10 = vunpack.i.l.bf16 %v6613_v5 }
 0x336   : > { %v947_v12 = vpack.c.bf16 %v6600_v7, %v6599_v8  ;;  %v950_v19 = vpack.c.bf16 %v6615_v9, %v6614_v10 }
 0x337   : > { %v6623_v13 = vpop.permute.xlu0 %6622  ;;  %v6608_v14 = vpop.permute.xlu1 %6607 }
 0x338   : > { %v6610_v15 = vunpack.i.h.bf16 %v6608_v14  ;;  %v6609_v16 = vunpack.i.l.bf16 %v6608_v14  ;;  %1157 = vrot.lane.b32.xlu0 %v948_v11, %s9557_s25  ;;  %1107 = vrot.lane.b32.xlu1 %v947_v12, %s9557_s25  ;;  %v6625_v17 = vunpack.i.h.bf16 %v6623_v13  ;;  %v6624_v18 = vunpack.i.l.bf16 %v6623_v13 }
 0x33a   : > { %v949_v20 = vpack.c.bf16 %v6610_v15, %v6609_v16  ;;  %v952_v24 = vpack.c.bf16 %v6625_v17, %v6624_v18 }
 0x33b   : > { %v6618_v21 = vpop.permute.xlu1 %6617 }
 0x33c   : > { %v6620_v22 = vunpack.i.h.bf16 %v6618_v21  ;;  %v6619_v23 = vunpack.i.l.bf16 %v6618_v21  ;;  %1257 = vrot.lane.b32.xlu0 %v950_v19, %s9557_s25  ;;  %1207 = vrot.lane.b32.xlu1 %v949_v20, %s9557_s25 }
 0x33e   : > { %v951_v25 = vpack.c.bf16 %v6620_v22, %v6619_v23 }
 0x33f   : > { %v1007_v26 = vpop.permute.xlu1 %1006 }
 0x340   : > { %1357 = vrot.lane.b32.xlu0 %v952_v24, %s9557_s25  ;;  %1307 = vrot.lane.b32.xlu1 %v951_v25, %s9557_s25  ;;  %v1013_v27 = vsel %vm1008_vm2, %v1007_v26, 0  ;;  %s9627_s25 = smov 16  }
 0x341   : > { %6010 = vmatpush3.bf16.xpose.msra.mxu1 %v1013_v27 }
 0x342   : > { %6015 = vmatprep.subr.bf16.mxu1 %v7480_v60 }
 0x344   : > { %6627 = vrot.lane.b32.xlu0 %v8007_v58, %s9577_s24  ;;  %6632 = vrot.lane.b32.xlu1 %v8007_v58, %s9579_s22 }
 0x348   : > { %6012 = vmatmul.mubr.msk.bf16.vlgmr.msra.gmra.mrb[0].mxu1 %vm1008_vm2, %v8001_v57 }
 0x349   : > { %6017 = vmatprep.mubr.msk.bf16.mxu1 %vm7485_vm1, %v7480_v60 }
 0x3a6   : > { %v1058_v28 = vpop.permute.xlu0 %1057 }
 0x3a7   : > { %v1063_v29 = vsel %vm1008_vm2, %v1058_v28, 0 }
 0x3a8   : > { %6016 = vmatpush3.bf16.xpose.msra.mxu1 %v1063_v29 }
 0x3a9   : > { %6027 = vmatprep.subr.bf16.mxu1 %v7480_v60 }
 0x3aa   : > { %v1108_v30 = vpop.permute.xlu1 %1107  ;;  %v1158_v32 = vpop.permute.xlu0 %1157 }
 0x3ab   : > { %v1113_v31 = vsel %vm1008_vm2, %v1108_v30, 0  ;;  %v1163_v33 = vsel %vm1008_vm2, %v1158_v32, 0 }
 0x3ac   : > { %6022 = vmatpush3.bf16.xpose.msra.mxu0 %v1113_v31 }
 0x3ad   : > { %6033 = vmatprep.subr.bf16.mxu0 %v7480_v60 }
 0x3ae   : > { %v1208_v34 = vpop.permute.xlu1 %1207  ;;  %v1258_v35 = vpop.permute.xlu0 %1257 }
 0x3af   : > { %6018 = vmatmul.mubr.msk.bf16.vlgmr.msra.gmra.mrb[4].mxu1 %vm1008_vm2, %v946_v4  ;;  %v1213_v36 = vsel %vm1008_vm2, %v1208_v34, 0  ;;  %v1263_v37 = vsel %vm1008_vm2, %v1258_v35, 0 }
 0x3b0   : > { %6028 = vmatpush3.bf16.xpose.msra.mxu1 %v1163_v33  ;;  %6029 = vmatprep.mubr.msk.bf16.mxu1 %vm7485_vm1, %v7480_v60 }
 0x3b1   : > { %6039 = vmatprep.subr.bf16.mxu1 %v7480_v60 }
 0x3b2   : > { %v1308_v40 = vpop.permute.xlu1 %1307  ;;  %v1358_v41 = vpop.permute.xlu0 %1357 }
 0x3b3   : > { %6024 = vmatmul.mubr.msk.bf16.vlgmr.msra.gmra.mrb[4].mxu0 %vm1008_vm2, %v947_v12  ;;  %v1313_v42 = vsel %vm1008_vm2, %v1308_v40, 0  ;;  %v1363_v44 = vsel %vm1008_vm2, %v1358_v41, 0 }
 0x3b4   : > { %6034 = vmatpush3.bf16.xpose.msra.mxu0 %v1213_v36  ;;  %6035 = vmatprep.mubr.msk.bf16.mxu0 %vm7485_vm1, %v7480_v60 }
 0x3b5   : > { %6045 = vmatprep.subr.bf16.mxu0 %v7480_v60 }
 0x3b6   : > { %v6628_v46 = vpop.permute.xlu0 %6627 }
 0x3b7   : > { %6030 = vmatmul.mubr.msk.bf16.vlgmr.msra.gmra.mrb[8].mxu1 %vm1008_vm2, %v948_v11  ;;  %v6630_v47 = vunpack.i.h.bf16 %v6628_v46  ;;  %v6629_v48 = vunpack.i.l.bf16 %v6628_v46 }
 0x3b8   : > { %6040 = vmatpush3.bf16.xpose.msra.mxu1 %v1263_v37  ;;  %6041 = vmatprep.mubr.msk.bf16.mxu1 %vm7485_vm1, %v7480_v60 }
 0x3b9   : > { %6051 = vmatprep.subr.bf16.mxu1 %v7480_v60  ;;  %v998_v49 = vpack.c.bf16 %v6630_v47, %v6629_v48 }
 0x3bb   : > { %6036 = vmatmul.mubr.msk.bf16.vlgmr.msra.gmra.mrb[8].mxu0 %vm1008_vm2, %v949_v20 }
 0x3bc   : > { %6046 = vmatpush3.bf16.xpose.msra.mxu0 %v1313_v42  ;;  %6047 = vmatprep.mubr.msk.bf16.mxu0 %vm7485_vm1, %v7480_v60 }
 0x3bd   : > { %6057 = vmatprep.subr.bf16.mxu0 %v7480_v60 }
 0x3bf   : > { %6042 = vmatmul.mubr.msk.bf16.vlgmr.msra.gmra.mrb[12].mxu1 %vm1008_vm2, %v950_v19 }
 0x3c0   : > { %6052 = vmatpush3.bf16.xpose.msra.mxu1 %v1363_v44  ;;  %6053 = vmatprep.mubr.msk.bf16.mxu1 %vm7485_vm1, %v7480_v60 }
 0x3c1   : > { %6063 = vmatprep.subr.bf16.mxu1 %v7480_v60 }
 0x3c3   : > { %6048 = vmatmul.mubr.msk.bf16.vlgmr.msra.gmra.mrb[12].mxu0 %vm1008_vm2, %v951_v25 }
 0x3c4   : > { %6058 = vmatpush3.bf16.msra.mxu0 %v997_v59  ;;  %6059 = vmatprep.mubr.msk.bf16.mxu0 %vm7485_vm1, %v7480_v60 }
 0x3c5   : > { %6069 = vmatprep.subr.bf16.mxu0 %v7480_v60 }
 0x3c7   : > { %6054 = vmatmul.mubr.msk.bf16.vlgmr.msra.gmra.mrb[16].mxu1 %vm1008_vm2, %v952_v24 }
 0x3c8   : > { %6064 = vmatpush3.bf16.msra.mxu1 %v998_v49  ;;  %6065 = vmatprep.mubr.msk.bf16.mxu1 %vm7485_vm1, %v7480_v60 }
 0x3c9   : > { %6075 = vmatprep.subr.bf16.mxu1 %v7480_v60 }
 0x41b   : > { %v1049_v50 = vpop.f32.mrb[0].mxu1 }
 0x41c   : > { %v8081_v51 = vmul.f32 0.35355338, %v1049_v50  ;;  %v6013_v52 = vpop.f32.mrb[1].mxu1 }
 0x41d   : > { %v1052_v53 = vpop.f32.mrb[2].mxu1 }
 0x41e   : > { %v8083_v54 = vmul.f32 0.35355338, %v1052_v53  ;;  %v6014_v55 = vpop.f32.mrb[3].mxu1  ;;  %v1423_v56 = vsel %vm1422_vm3, %v8081_v51, -inf }
 0x41f   : > { %1424 = vmax.xlane.f32.xlu1 %v1423_v56 }
 0x420   : > { %v1426_v57 = vsel %vm1422_vm3, %v8083_v54, -inf }
 0x421   : > { %1427 = vmax.xlane.f32.xlu0 %v1426_v57 }
 0x482   : > { %v1099_v59 = vpop.f32.mrb[4].mxu1 }
 0x483   : > { %v8089_v61 = vmul.f32 0.35355338, %v1099_v59  ;;  %v6019_v62 = vpop.f32.mrb[5].mxu1 }
 0x484   : > { %v1102_v63 = vpop.f32.mrb[6].mxu1  ;;  %v8151_v62 = vpop.permute.xlu1 %6632 }
 0x485   : > { %v8091_v0 = vmul.f32 0.35355338, %v1102_v63  ;;  %v6020_v2 = vpop.f32.mrb[7].mxu1  ;;  %v1429_v3 = vsel %vm1422_vm3, %v8089_v61, -inf }
 0x486   : > { %1430 = vmax.xlane.f32.xlu0 %v1429_v3  ;;  %v1149_v4 = vpop.f32.mrb[4].mxu0 }
 0x487   : > { %v8095_v5 = vmul.f32 0.35355338, %v1149_v4  ;;  %v6025_v6 = vpop.f32.mrb[5].mxu0  ;;  %v1432_v7 = vsel %vm1422_vm3, %v8091_v0, -inf }
 0x488   : > { %1433 = vmax.xlane.f32.xlu1 %v1432_v7  ;;  %v1152_v8 = vpop.f32.mrb[6].mxu0 }
 0x489   : > { %v8099_v9 = vmul.f32 0.35355338, %v1152_v8  ;;  %v6026_v10 = vpop.f32.mrb[7].mxu0  ;;  %v1435_v11 = vsel %vm1422_vm3, %v8095_v5, -inf }
 0x48a   : > { %v1199_v12 = vpop.f32.mrb[8].mxu1  ;;  %1436 = vmax.xlane.f32.xlu0 %v1435_v11 }
 0x48b   : > { %v8103_v13 = vmul.f32 0.35355338, %v1199_v12  ;;  %v6031_v14 = vpop.f32.mrb[9].mxu1  ;;  %v1438_v15 = vsel %vm1422_vm3, %v8099_v9, -inf }
 0x48c   : > { %v1202_v16 = vpop.f32.mrb[10].mxu1  ;;  %1439 = vmax.xlane.f32.xlu1 %v1438_v15 }
 0x48d   : > { %v8107_v17 = vmul.f32 0.35355338, %v1202_v16  ;;  %v6032_v18 = vpop.f32.mrb[11].mxu1  ;;  %v1441_v19 = vsel %vm1422_vm3, %v8103_v13, -inf }
 0x48e   : > { %1442 = vmax.xlane.f32.xlu0 %v1441_v19  ;;  %v1249_v20 = vpop.f32.mrb[8].mxu0 }
 0x48f   : > { %v8111_v21 = vmul.f32 0.35355338, %v1249_v20  ;;  %v6037_v22 = vpop.f32.mrb[9].mxu0  ;;  %v1444_v23 = vsel %vm1422_vm3, %v8107_v17, -inf }
 0x490   : > { %1445 = vmax.xlane.f32.xlu1 %v1444_v23  ;;  %v1252_v24 = vpop.f32.mrb[10].mxu0 }
 0x491   : > { %v8115_v25 = vmul.f32 0.35355338, %v1252_v24  ;;  %v6038_v26 = vpop.f32.mrb[11].mxu0  ;;  %v1447_v27 = vsel %vm1422_vm3, %v8111_v21, -inf }
 0x492   : > { %v1299_v28 = vpop.f32.mrb[12].mxu1  ;;  %1448 = vmax.xlane.f32.xlu0 %v1447_v27 }
 0x493   : > { %v8119_v29 = vmul.f32 0.35355338, %v1299_v28  ;;  %v6043_v30 = vpop.f32.mrb[13].mxu1  ;;  %v1450_v31 = vsel %vm1422_vm3, %v8115_v25, -inf }
 0x494   : > { %v1302_v32 = vpop.f32.mrb[14].mxu1  ;;  %1451 = vmax.xlane.f32.xlu1 %v1450_v31 }
 0x495   : > { %v8123_v33 = vmul.f32 0.35355338, %v1302_v32  ;;  %v6044_v34 = vpop.f32.mrb[15].mxu1  ;;  %v1453_v35 = vsel %vm1422_vm3, %v8119_v29, -inf }
 0x496   : > { %1454 = vmax.xlane.f32.xlu0 %v1453_v35  ;;  %v1349_v36 = vpop.f32.mrb[12].mxu0 }
 0x497   : > { %v8127_v37 = vmul.f32 0.35355338, %v1349_v36  ;;  %v6049_v40 = vpop.f32.mrb[13].mxu0  ;;  %v1456_v41 = vsel %vm1422_vm3, %v8123_v33, -inf }
 0x498   : > { %1457 = vmax.xlane.f32.xlu1 %v1456_v41  ;;  %v1352_v42 = vpop.f32.mrb[14].mxu0 }
 0x499   : > { %v8131_v44 = vmul.f32 0.35355338, %v1352_v42  ;;  %v6050_v46 = vpop.f32.mrb[15].mxu0  ;;  %v1459_v47 = vsel %vm1422_vm3, %v8127_v37, -inf }
 0x49a   : > { %v1399_v48 = vpop.f32.mrb[16].mxu1  ;;  %1460 = vmax.xlane.f32.xlu0 %v1459_v47 }
 0x49b   : > { %v8135_v49 = vmul.f32 0.35355338, %v1399_v48  ;;  %v6055_v50 = vpop.f32.mrb[17].mxu1  ;;  %v1462_v52 = vsel %vm1422_vm3, %v8131_v44, -inf }
 0x49c   : > { %v1402_v53 = vpop.f32.mrb[18].mxu1  ;;  %1463 = vmax.xlane.f32.xlu1 %v1462_v52 }
 0x49d   : > { %v8139_v55 = vmul.f32 0.35355338, %v1402_v53  ;;  %v6056_v56 = vpop.f32.mrb[19].mxu1  ;;  %v1465_v57 = vsel %vm1422_vm3, %v8135_v49, -inf }
 0x49e   : > { %1466 = vmax.xlane.f32.xlu0 %v1465_v57 }
 0x49f   : > { %v1468_v59 = vsel %vm1422_vm3, %v8139_v55, -inf }
 0x4a0   : > { %1469 = vmax.xlane.f32.xlu1 %v1468_v59 }
 0x4ac   : > { %v1425_v2 = vpop.xlane.xlu1 %1424 }
 0x4ad   : > { %v1471_v4 = vsub.f32 %v8081_v51, %v1425_v2 }
 0x4ae   : > { %v1428_v63 = vpop.xlane.xlu0 %1427 }
 0x4af   : > { %v1472_v3 = vsub.f32 %v8083_v54, %v1428_v63  ;;  %v1487_v7 = vmul.f32 1.442695, %v1471_v4 }
 0x4b1   : > { %6647 = vrot.lane.b32.xlu1 %v8007_v58, %s9575_s20  ;;  %v1489_v6 = vmul.f32 1.442695, %v1472_v3 }
 0x4b3   : > { %6906 = vpow2.f32 %v1489_v6 }
 0x4b4   : > { %6637 = vrot.lane.b32.xlu0 %v8007_v58, %s9573_s30  ;;  %6908 = vpow2.f32 %v1487_v7 }
 0x4b8   : > { %6642 = vrot.lane.b32.xlu0 %v8007_v58, %s9571_s1 }
 0x4bd   : > { %v8155_v8 = vpop.eup %6906 }
 0x4be   : > { %v8157_v10 = vpop.eup %6908  ;;  %v1522_v11 = vsel %vm1422_vm3, %v8155_v8, 0.0 }
 0x4bf   : > { %v1519_v12 = vsel %vm1422_vm3, %v8157_v10, 0.0 }
 0x4d5   : > { %1523 = vadd.xlane.f32.xlu1 %v1522_v11 }
 0x4d7   : > { %1520 = vadd.xlane.f32.xlu0 %v1519_v12 }
 0x513   : > { %v1431_v14 = vpop.xlane.xlu0 %1430 }
 0x514   : > { %v1473_v54 = vsub.f32 %v8089_v61, %v1431_v14 }
 0x515   : > { %v1434_v51 = vpop.xlane.xlu1 %1433 }
 0x516   : > { %v1491_v15 = vmul.f32 1.442695, %v1473_v54  ;;  %v1474_v16 = vsub.f32 %v8091_v0, %v1434_v51 }
 0x517   : > { %v1437_v18 = vpop.xlane.xlu0 %1436 }
 0x518   : > { %6910 = vpow2.f32 %v1491_v15  ;;  %v1493_v19 = vmul.f32 1.442695, %v1474_v16  ;;  %v1475_v20 = vsub.f32 %v8095_v5, %v1437_v18 }
 0x519   : > { %v1440_v22 = vpop.xlane.xlu1 %1439 }
 0x51a   : > { %6912 = vpow2.f32 %v1493_v19  ;;  %v1495_v23 = vmul.f32 1.442695, %v1475_v20  ;;  %v1476_v24 = vsub.f32 %v8099_v9, %v1440_v22 }
 0x51b   : > { %v1443_v26 = vpop.xlane.xlu0 %1442 }
 0x51c   : > { %6914 = vpow2.f32 %v1495_v23  ;;  %v1497_v27 = vmul.f32 1.442695, %v1476_v24  ;;  %v1477_v28 = vsub.f32 %v8103_v13, %v1443_v26 }
 0x51d   : > { %v1446_v61 = vpop.xlane.xlu1 %1445 }
 0x51e   : > { %6916 = vpow2.f32 %v1497_v27  ;;  %v1499_v30 = vmul.f32 1.442695, %v1477_v28  ;;  %v1478_v0 = vsub.f32 %v8107_v17, %v1446_v61 }
 0x51f   : > { %v1449_v31 = vpop.xlane.xlu0 %1448 }
 0x520   : > { %6918 = vpow2.f32 %v1499_v30  ;;  %v1501_v32 = vmul.f32 1.442695, %v1478_v0  ;;  %v1479_v5 = vsub.f32 %v8111_v21, %v1449_v31 }
 0x521   : > { %v1452_v34 = vpop.xlane.xlu1 %1451 }
 0x522   : > { %v8170_v35 = vpop.eup %6910  ;;  %6920 = vpow2.f32 %v1501_v32  ;;  %v1503_v9 = vmul.f32 1.442695, %v1479_v5  ;;  %v1480_v36 = vsub.f32 %v8115_v25, %v1452_v34 }
 0x523   : > { %v1455_v40 = vpop.xlane.xlu0 %1454  ;;  %v1525_v13 = vsel %vm1422_vm3, %v8170_v35, 0.0 }
 0x524   : > { %v8175_v41 = vpop.eup %6912  ;;  %6922 = vpow2.f32 %v1503_v9  ;;  %v1505_v17 = vmul.f32 1.442695, %v1480_v36  ;;  %v1481_v42 = vsub.f32 %v8119_v29, %v1455_v40  ;;  %1526 = vadd.xlane.f32.xlu0 %v1525_v13  ;;  %v6635_v40 = vunpack.i.h.bf16 %v8151_v62 }
 0x525   : > { %v1458_v46 = vpop.xlane.xlu1 %1457  ;;  %v1528_v21 = vsel %vm1422_vm3, %v8175_v41, 0.0  ;;  %v6634_v13 = vunpack.i.l.bf16 %v8151_v62 }
 0x526   : > { %v8180_v47 = vpop.eup %6914  ;;  %6924 = vpow2.f32 %v1505_v17  ;;  %v1507_v48 = vmul.f32 1.442695, %v1481_v42  ;;  %v1482_v25 = vsub.f32 %v8123_v33, %v1458_v46  ;;  %1529 = vadd.xlane.f32.xlu1 %v1528_v21 }
 0x527   : > { %v1461_v50 = vpop.xlane.xlu0 %1460  ;;  %v1531_v52 = vsel %vm1422_vm3, %v8180_v47, 0.0 }
 0x528   : > { %v8185_v53 = vpop.eup %6916  ;;  %6926 = vpow2.f32 %v1507_v48  ;;  %v1509_v29 = vmul.f32 1.442695, %v1482_v25  ;;  %v1483_v56 = vsub.f32 %v8127_v37, %v1461_v50  ;;  %1532 = vadd.xlane.f32.xlu0 %v1531_v52 }
 0x529   : > { %v1464_v57 = vpop.xlane.xlu1 %1463  ;;  %v1534_v59 = vsel %vm1422_vm3, %v8185_v53, 0.0 }
 0x52a   : > { %v8190_v63 = vpop.eup %6918  ;;  %6928 = vpow2.f32 %v1509_v29  ;;  %v1511_v33 = vmul.f32 1.442695, %v1483_v56  ;;  %v1484_v2 = vsub.f32 %v8131_v44, %v1464_v57  ;;  %1535 = vadd.xlane.f32.xlu1 %v1534_v59 }
 0x52b   : > { %v1467_v3 = vpop.xlane.xlu0 %1466  ;;  %v1537_v4 = vsel %vm1422_vm3, %v8190_v63, 0.0 }
 0x52c   : > { %v8195_v6 = vpop.eup %6920  ;;  %6930 = vpow2.f32 %v1511_v33  ;;  %v1513_v37 = vmul.f32 1.442695, %v1484_v2  ;;  %v1485_v7 = vsub.f32 %v8135_v49, %v1467_v3  ;;  %1538 = vadd.xlane.f32.xlu0 %v1537_v4 }
 0x52d   : > { %v1470_v11 = vpop.xlane.xlu1 %1469  ;;  %v1540_v12 = vsel %vm1422_vm3, %v8195_v6, 0.0 }
 0x52e   : > { %v8200_v14 = vpop.eup %6922  ;;  %6932 = vpow2.f32 %v1513_v37  ;;  %v1515_v44 = vmul.f32 1.442695, %v1485_v7  ;;  %v1486_v54 = vsub.f32 %v8139_v55, %v1470_v11  ;;  %1541 = vadd.xlane.f32.xlu1 %v1540_v12 }
 0x52f   : > { %v1543_v51 = vsel %vm1422_vm3, %v8200_v14, 0.0  ;;  %v6638_v0 = vpop.permute.xlu0 %6637 }
 0x530   : > { %v8205_v15 = vpop.eup %6924  ;;  %6934 = vpow2.f32 %v1515_v44  ;;  %v1517_v16 = vmul.f32 1.442695, %v1486_v54  ;;  %1544 = vadd.xlane.f32.xlu0 %v1543_v51  ;;  %v6640_v56 = vunpack.i.h.bf16 %v6638_v0  ;;  %v6639_v57 = vunpack.i.l.bf16 %v6638_v0 }
 0x531   : > { %v1546_v49 = vsel %vm1422_vm3, %v8205_v15, 0.0  ;;  %v8237_v31 = vpop.permute.xlu1 %6647 }
 0x532   : > { %v8209_v18 = vpop.eup %6926  ;;  %1547 = vadd.xlane.f32.xlu1 %v1546_v49  ;;  %6936 = vpow2.f32 %v1517_v16  ;;  %v1000_v11 = vpack.c.bf16 %v6640_v56, %v6639_v57 }
 0x533   : > { %v1549_v19 = vsel %vm1422_vm3, %v8209_v18, 0.0  ;;  %v6643_v32 = vpop.permute.xlu0 %6642 }
 0x534   : > { %v8213_v20 = vpop.eup %6928  ;;  %1550 = vadd.xlane.f32.xlu0 %v1549_v19  ;;  %v6645_v12 = vunpack.i.h.bf16 %v6643_v32  ;;  %v6644_v44 = vunpack.i.l.bf16 %v6643_v32 }
 0x535   : > { %v1552_v55 = vsel %vm1422_vm3, %v8213_v20, 0.0 }
 0x536   : > { %v8217_v22 = vpop.eup %6930  ;;  %1553 = vadd.xlane.f32.xlu1 %v1552_v55  ;;  %v6650_v55 = vunpack.i.h.bf16 %v8237_v31 }
 0x537   : > { %v1555_v23 = vsel %vm1422_vm3, %v8217_v22, 0.0 }
 0x538   : > { %v8221_v24 = vpop.eup %6932  ;;  %1556 = vadd.xlane.f32.xlu0 %v1555_v23  ;;  %v1001_v23 = vpack.c.bf16 %v6645_v12, %v6644_v44 }
 0x539   : > { %v1558_v26 = vsel %vm1422_vm3, %v8221_v24, 0.0 }
 0x53a   : > { %v8225_v27 = vpop.eup %6934  ;;  %1559 = vadd.xlane.f32.xlu1 %v1558_v26 }
 0x53b   : > { %v1561_v28 = vsel %vm1422_vm3, %v8225_v27, 0.0 }
 0x53c   : > { %v8229_v61 = vpop.eup %6936 }
 0x53d   : > { %v1564_v30 = vsel %vm1422_vm3, %v8229_v61, 0.0 }
 0x53e   : > { %1562 = vadd.xlane.f32.xlu1 %v1561_v28 }
 0x542   : > { %1565 = vadd.xlane.f32.xlu1 %v1564_v30 }
 0x54e   : > { %6652 = vrot.lane.b32.xlu0 %v8007_v58, %s9569_s23  ;;  %s9630_s23 = smov 40  }
 0x553   : > { %6657 = vrot.lane.b32.xlu1 %v8007_v58, %s9559_s3  ;;  %v999_v58 = vpack.c.bf16 %v6635_v40, %v6634_v13  ;;  %s9567_s3 = smov 32  }
 0x562   : > { %v1524_v5 = vpop.xlane.xlu1 %1523 }
 0x563   : > { %6938 = vrcp.f32 %v1524_v5 }
 0x564   : > { %v1521_v34 = vpop.xlane.xlu0 %1520 }
 0x565   : > { %6940 = vrcp.f32 %v1521_v34 }
 0x56d   : > { %v6939_v9 = vpop.eup %6938 }
 0x56e   : > { %v1584_v17 = vmul.f32 %v6939_v9, %v8155_v8 }
 0x56f   : > { %v6941_v36 = vpop.eup %6940 }
 0x570   : > { %v1583_v42 = vmul.f32 %v6941_v36, %v8157_v10 }
 0x572   : > { %v1599_v46 = vpack.c.bf16 %v1584_v17, %v1583_v42 }
 0x574   : > { %6060 = vmatmul.mubr.msk.bf16.vlgmr.msra.gmra.mrb[16].mxu0 %vm1422_vm3, %v1599_v46 }
 0x575   : > { %6070 = vmatpush3.bf16.msra.mxu0 %v999_v58  ;;  %6071 = vmatprep.mubr.msk.bf16.mxu0 %vm7485_vm1, %v7480_v60 }
 0x576   : > { %6081 = vmatprep.subr.bf16.mxu0 %v7480_v60 }
 0x5b1   : > { %v1527_v21 = vpop.xlane.xlu0 %1526 }
 0x5b2   : > { %6942 = vrcp.f32 %v1527_v21 }
 0x5b3   : > { %v1530_v48 = vpop.xlane.xlu1 %1529 }
 0x5b4   : > { %6944 = vrcp.f32 %v1530_v48 }
 0x5b5   : > { %v1533_v25 = vpop.xlane.xlu0 %1532 }
 0x5b6   : > { %6946 = vrcp.f32 %v1533_v25 }
 0x5b7   : > { %v1536_v62 = vpop.xlane.xlu1 %1535 }
 0x5b8   : > { %6948 = vrcp.f32 %v1536_v62 }
 0x5b9   : > { %v1539_v8 = vpop.xlane.xlu0 %1538 }
 0x5ba   : > { %6950 = vrcp.f32 %v1539_v8 }
 0x5bb   : > { %v1542_v10 = vpop.xlane.xlu1 %1541 }
 0x5bc   : > { %v6943_v50 = vpop.eup %6942  ;;  %6952 = vrcp.f32 %v1542_v10 }
 0x5bd   : > { %v1545_v52 = vpop.xlane.xlu0 %1544  ;;  %v1585_v59 = vmul.f32 %v6943_v50, %v8170_v35 }
 0x5be   : > { %v6945_v29 = vpop.eup %6944  ;;  %6954 = vrcp.f32 %v1545_v52 }
 0x5bf   : > { %v1586_v33 = vmul.f32 %v6945_v29, %v8175_v41  ;;  %v1548_v2 = vpop.xlane.xlu1 %1547 }
 0x5c0   : > { %v6947_v3 = vpop.eup %6946  ;;  %6956 = vrcp.f32 %v1548_v2 }
 0x5c1   : > { %v1551_v4 = vpop.xlane.xlu0 %1550  ;;  %v1600_v37 = vpack.c.bf16 %v1586_v33, %v1585_v59  ;;  %v1587_v54 = vmul.f32 %v6947_v3, %v8180_v47  ;;  %v6649_v47 = vunpack.i.l.bf16 %v8237_v31 }
 0x5c2   : > { %v6949_v7 = vpop.eup %6948  ;;  %6958 = vrcp.f32 %v1551_v4 }
 0x5c3   : > { %v1588_v51 = vmul.f32 %v6949_v7, %v8185_v53  ;;  %6066 = vmatmul.mubr.msk.bf16.vlgmr.msra.gmra.mrb[20].mxu1 %vm1422_vm3, %v1600_v37  ;;  %v1554_v16 = vpop.xlane.xlu1 %1553  ;;  %v1002_v5 = vpack.c.bf16 %v6650_v55, %v6649_v47 }
 0x5c4   : > { %v6951_v35 = vpop.eup %6950  ;;  %6076 = vmatpush3.bf16.msra.mxu1 %v1000_v11  ;;  %6960 = vrcp.f32 %v1554_v16  ;;  %6077 = vmatprep.mubr.msk.bf16.mxu1 %vm7485_vm1, %v7480_v60 }
 0x5c5   : > { %v1557_v41 = vpop.xlane.xlu0 %1556  ;;  %v1601_v49 = vpack.c.bf16 %v1588_v51, %v1587_v54  ;;  %6087 = vmatprep.subr.bf16.mxu1 %v7480_v60  ;;  %v1589_v53 = vmul.f32 %v6951_v35, %v8190_v63 }
 0x5c6   : > { %v6953_v19 = vpop.eup %6952  ;;  %6962 = vrcp.f32 %v1557_v41  ;;  %v2034_v41 = vld [vmem:[%s9523_s6] sm:$0xff] }
 0x5c7   : > { %v1590_v26 = vmul.f32 %v6953_v19, %v8195_v6  ;;  %v1560_v28 = vpop.xlane.xlu1 %1559  ;;  %6072 = vmatmul.mubr.msk.bf16.vlgmr.msra.gmra.mrb[20].mxu0 %vm1422_vm3, %v1601_v49  ;;  %v2035_v49 = vld [vmem:[%s9523_s6 + $0x8] sm:$0xff] }
 0x5c8   : > { %v6955_v30 = vpop.eup %6954  ;;  %6964 = vrcp.f32 %v1560_v28  ;;  %6082 = vmatpush3.bf16.msra.mxu0 %v1001_v23  ;;  %6083 = vmatprep.mubr.msk.bf16.mxu0 %vm7485_vm1, %v7480_v60  ;;  %v2043_v47 = vpack.c.bf16 %v2035_v49, %v2034_v41  ;;  %v2036_v28 = vld [vmem:[%s9523_s6 + $0x10] sm:$0xff] }
 0x5c9   : > { %v6653_v0 = vpop.permute.xlu0 %6652  ;;  %v1602_v32 = vpack.c.bf16 %v1590_v26, %v1589_v53  ;;  %6093 = vmatprep.subr.bf16.mxu0 %v7480_v60  ;;  %v1591_v63 = vmul.f32 %v6955_v30, %v8200_v14  ;;  %v2037_v30 = vld [vmem:[%s9523_s6 + $0x18] sm:$0xff] }
 0x5ca   : > { %v6957_v31 = vpop.eup %6956  ;;  %v6655_v34 = vunpack.i.h.bf16 %v6653_v0  ;;  %v6654_v9 = vunpack.i.l.bf16 %v6653_v0  ;;  %v2038_v0 = vld [vmem:[%s9523_s6 + $0x20] sm:$0xff] }
 0x5cb   : > { %v1592_v6 = vmul.f32 %v6957_v31, %v8205_v15  ;;  %6078 = vmatmul.mubr.msk.bf16.vlgmr.msra.gmra.mrb[24].mxu1 %vm1422_vm3, %v1602_v32  ;;  %v1563_v36 = vpop.xlane.xlu1 %1562 }
 0x5cc   : > { %v6959_v40 = vpop.eup %6958  ;;  %v1003_v13 = vpack.c.bf16 %v6655_v34, %v6654_v9  ;;  %6088 = vmatpush3.bf16.msra.mxu1 %v1002_v5  ;;  %6089 = vmatprep.mubr.msk.bf16.mxu1 %vm7485_vm1, %v7480_v60  ;;  %6966 = vrcp.f32 %v1563_v36  ;;  %v2044_v5 = vpack.c.bf16 %v2037_v30, %v2036_v28  ;;  %v2039_v34 = vld [vmem:[%s9523_s6 + $0x28] sm:$0xff] }
 0x5cd   : > { %v1603_v17 = vpack.c.bf16 %v1592_v6, %v1591_v63  ;;  %6099 = vmatprep.subr.bf16.mxu1 %v7480_v60  ;;  %v1593_v46 = vmul.f32 %v6959_v40, %v8209_v18  ;;  %v2045_v6 = vpack.c.bf16 %v2039_v34, %v2038_v0 }
 0x5ce   : > { %v6961_v42 = vpop.eup %6960 }
 0x5cf   : > { %v1594_v14 = vmul.f32 %v6961_v42, %v8213_v20  ;;  %v1566_v58 = vpop.xlane.xlu1 %1565  ;;  %6084 = vmatmul.mubr.msk.bf16.vlgmr.msra.gmra.mrb[24].mxu0 %vm1422_vm3, %v1603_v17 }
 0x5d0   : > { %v6963_v15 = vpop.eup %6962  ;;  %6968 = vrcp.f32 %v1566_v58  ;;  %6094 = vmatpush3.bf16.msra.mxu0 %v1003_v13  ;;  %6095 = vmatprep.mubr.msk.bf16.mxu0 %vm7485_vm1, %v7480_v60  ;;  %v2041_v58 = vld [vmem:[%s9523_s6 + $0x38] sm:$0xff] }
 0x5d1   : > { %v1604_v21 = vpack.c.bf16 %v1594_v14, %v1593_v46  ;;  %6105 = vmatprep.subr.bf16.mxu0 %v7480_v60  ;;  %v1595_v25 = vmul.f32 %v6963_v15, %v8217_v22  ;;  %v2040_v14 = vld [vmem:[%s9523_s6 + $0x30] sm:$0xff] }
 0x5d2   : > { %v6965_v48 = vpop.eup %6964 }
 0x5d3   : > { %v1596_v62 = vmul.f32 %v6965_v48, %v8221_v24  ;;  %v6658_v18 = vpop.permute.xlu1 %6657  ;;  %6090 = vmatmul.mubr.msk.bf16.vlgmr.msra.gmra.mrb[28].mxu1 %vm1422_vm3, %v1604_v21  ;;  %v2046_v48 = vpack.c.bf16 %v2041_v58, %v2040_v14 }
 0x5d4   : > { %v6660_v20 = vunpack.i.h.bf16 %v6658_v18  ;;  %v6659_v8 = vunpack.i.l.bf16 %v6658_v18  ;;  %6101 = vmatprep.mubr.msk.bf16.mxu1 %vm7485_vm1, %v7480_v60 }
 0x5d5   : > { %v1605_v10 = vpack.c.bf16 %v1596_v62, %v1595_v25 }
 0x5d6   : > { %v1004_v50 = vpack.c.bf16 %v6660_v20, %v6659_v8  ;;  %v6967_v52 = vpop.eup %6966 }
 0x5d7   : > { %6096 = vmatmul.mubr.msk.bf16.vlgmr.msra.gmra.mrb[28].mxu0 %vm1422_vm3, %v1605_v10  ;;  %v1597_v24 = vmul.f32 %v6967_v52, %v8225_v27 }
 0x5d8   : > { %6100 = vmatpush3.bf16.msra.mxu1 %v1004_v50  ;;  %6113 = vmatprep.mubr.msk.bf16.mxu0 %vm7485_vm1, %v7480_v60 }
 0x5d9   : > { %6117 = vmatprep.subr.bf16.mxu1 %v7480_v60  ;;  %6106 = vmatpush3.bf16.msra.mxu0 %v2043_v47 }
 0x5da   : > { %v6969_v22 = vpop.eup %6968  ;;  %6107 = vmatprep.subr.bf16.mxu0 %v7480_v60 }
 0x5db   : > { %v1598_v29 = vmul.f32 %v6969_v22, %v8229_v61 }
 0x5dd   : > { %v1606_v56 = vpack.c.bf16 %v1598_v29, %v1597_v24  ;;  %6108 = vmatpush3.bf16.msra.mxu0 %v2044_v5 }
 0x5de   : > { %6109 = vmatprep.subr.bf16.mxu0 %v7480_v60 }
 0x5df   : > { %6102 = vmatmul.mubr.msk.bf16.vlgmr.msra.gmra.mrb[32].mxu1 %vm1422_vm3, %v1606_v56 }
 0x5e0   : > { %6125 = vmatprep.mubr.msk.bf16.mxu1 %vm7485_vm1, %v7480_v60 }
 0x5e1   : > { %6110 = vmatpush3.bf16.msra.mxu0 %v2045_v6 }
 0x5e2   : > { %6111 = vmatprep.subr.bf16.mxu0 %v7480_v60 }
 0x5e5   : > { %6112 = vmatpush3.bf16.msra.mxu0 %v2046_v48 }
 0x5e6   : > { %6129 = vmatprep.subr.bf16.mxu0 %v7480_v60 }
 0x647   : > { %v8289_v57 = vpop.f32.mrb[16].mxu0 }
 0x648   : > { %v6061_v59 = vpop.f32.mrb[17].mxu0 }
 0x649   : > { %v8291_v33 = vpop.f32.mrb[18].mxu0 }
 0x64a   : > { %v6062_v2 = vpop.f32.mrb[19].mxu0 }
 0x696   : > { %v1688_v3 = vpop.f32.mrb[20].mxu1 }
 0x697   : > { %v6067_v4 = vpop.f32.mrb[21].mxu1 }
 0x698   : > { %v1691_v37 = vpop.f32.mrb[22].mxu1 }
 0x699   : > { %v6661_v7 = vpack.i.bf16 %v1691_v37, %v1688_v3  ;;  %v6068_v11 = vpop.f32.mrb[23].mxu1 }
 0x69a   : > { %v1732_v27 = vpop.f32.mrb[20].mxu0 }
 0x69b   : > { %6662 = vrot.lane.b32.xlu0 %v6661_v7, %s9553_s27  ;;  %v6073_v61 = vpop.f32.mrb[21].mxu0  ;;  %s9565_s27 = smov 40  }
 0x69c   : > { %v1735_v12 = vpop.f32.mrb[22].mxu0 }
 0x69d   : > { %v6666_v44 = vpack.i.bf16 %v1735_v12, %v1732_v27  ;;  %v6074_v54 = vpop.f32.mrb[23].mxu0 }
 0x69e   : > { %v1776_v51 = vpop.f32.mrb[24].mxu1 }
 0x69f   : > { %v6079_v16 = vpop.f32.mrb[25].mxu1  ;;  %6667 = vrot.lane.b32.xlu1 %v6666_v44, %s9551_s21 }
 0x6a0   : > { %v1779_v35 = vpop.f32.mrb[26].mxu1 }
 0x6a1   : > { %v6671_v19 = vpack.i.bf16 %v1779_v35, %v1776_v51  ;;  %v6080_v55 = vpop.f32.mrb[27].mxu1 }
 0x6a2   : > { %v1820_v23 = vpop.f32.mrb[24].mxu0 }
 0x6a3   : > { %6672 = vrot.lane.b32.xlu0 %v6671_v19, %s9555_s26  ;;  %v6085_v53 = vpop.f32.mrb[25].mxu0  ;;  %s9631_s26 = smov 48  }
 0x6a4   : > { %v1823_v26 = vpop.f32.mrb[26].mxu0 }
 0x6a5   : > { %v6676_v32 = vpack.i.bf16 %v1823_v26, %v1820_v23  ;;  %v6086_v31 = vpop.f32.mrb[27].mxu0 }
 0x6a6   : > { %v1864_v9 = vpop.f32.mrb[28].mxu1  ;;  %v5686_v31 = vld [vmem:[#allocation8] ss:$0 sm:$0xff] }
 0x6a7   : > { %v6091_v63 = vpop.f32.mrb[29].mxu1  ;;  %6677 = vrot.lane.b32.xlu1 %v6676_v32, %s9567_s3  ;;  %s9632_s3 = smov 56  }
 0x6a8   : > { %v1867_v36 = vpop.f32.mrb[30].mxu1 }
 0x6a9   : > { %v6681_v40 = vpack.i.bf16 %v1867_v36, %v1864_v9  ;;  %v6092_v13 = vpop.f32.mrb[31].mxu1 }
 0x6aa   : > { %v1908_v17 = vpop.f32.mrb[28].mxu0 }
 0x6ab   : > { %6682 = vrot.lane.b32.xlu0 %v6681_v40, %s9565_s27  ;;  %v6097_v42 = vpop.f32.mrb[29].mxu0  ;;  %s9624_s27 = smov 72  }
 0x6ac   : > { %v1911_v46 = vpop.f32.mrb[30].mxu0 }
 0x6ad   : > { %v6686_v15 = vpack.i.bf16 %v1911_v46, %v1908_v17  ;;  %v6098_v21 = vpop.f32.mrb[31].mxu0 }
 0x6af   : > { %6687 = vrot.lane.b32.xlu1 %v6686_v15, %s9563_s29  ;;  %s9625_s29 = smov 64  }
 0x6b2   : > { %v1952_v25 = vpop.f32.mrb[32].mxu1 }
 0x6b3   : > { %v6103_v62 = vpop.f32.mrb[33].mxu1 }
 0x6b4   : > { %v1955_v18 = vpop.f32.mrb[34].mxu1 }
 0x6b5   : > { %v6691_v20 = vpack.i.bf16 %v1955_v18, %v1952_v25  ;;  %v6104_v8 = vpop.f32.mrb[35].mxu1  ;;  %v2145_v18 = vld [vmem:[%s9527_s10] sm:$0xff] }
 0x6b7   : > { %6692 = vrot.lane.b32.xlu0 %v6691_v20, %s9561_s2  ;;  %v2146_v20 = vld [vmem:[%s9527_s10 + $0x8] sm:$0xff]  ;;  %s9628_s2 = smov 24  }
 0x6b8   : > { %v2154_v8 = vpack.c.bf16 %v2146_v20, %v2145_v18 }
 0x6ba   : > { %6118 = vmatpush3.bf16.msra.mxu1 %v2154_v8 }
 0x6bb   : > { %6119 = vmatprep.subr.bf16.mxu1 %v7480_v60 }
 0x70d   : > { %v6663_v10 = vpop.permute.xlu0 %6662 }
 0x70e   : > { %v6665_v24 = vunpack.i.h.bf16 %v6663_v10  ;;  %v6664_v29 = vunpack.i.l.bf16 %v6663_v10  ;;  %v2147_v10 = vld [vmem:[%s9527_s10 + $0x10] sm:$0xff] }
 0x710   : > { %v2016_v27 = vsel %vm1008_vm2, %v8291_v33, %v6665_v24  ;;  %v2015_v61 = vsel %vm1008_vm2, %v8289_v57, %v6664_v29  ;;  %v2150_v24 = vld [vmem:[%s9527_s10 + $0x28] sm:$0xff] }
 0x711   : > { %v6668_v50 = vpop.permute.xlu1 %6667 }
 0x712   : > { %v6670_v56 = vunpack.i.h.bf16 %v6668_v50  ;;  %v6669_v59 = vunpack.i.l.bf16 %v6668_v50  ;;  %v2148_v50 = vld [vmem:[%s9527_s10 + $0x18] sm:$0xff] }
 0x714   : > { %v2018_v54 = vsel %vm1422_vm3, %v2016_v27, %v6670_v56  ;;  %v2017_v51 = vsel %vm1422_vm3, %v2015_v61, %v6669_v59  ;;  %v2151_v56 = vld [vmem:[%s9527_s10 + $0x30] sm:$0xff]  ;;  %v2152_v59 = vld [vmem:[%s9527_s10 + $0x38] sm:$0xff]  ;;  %v2215_v61 = vld [vmem:[%s9529_s12 + $0x20] sm:$0xff] }
 0x715   : > { %v6673_v52 = vpop.permute.xlu0 %6672 }
 0x716   : > { %v6675_v3 = vunpack.i.h.bf16 %v6673_v52  ;;  %v6674_v4 = vunpack.i.l.bf16 %v6673_v52  ;;  %v2155_v52 = vpack.c.bf16 %v2148_v50, %v2147_v10  ;;  %v5692_v10 = vld [vmem:[#allocation14] ss:$0 sm:$0xff] }
 0x718   : > { %v2020_v41 = vsel %vm2019_vm4, %v2017_v51, %v6674_v4  ;;  %v2021_v49 = vsel %vm2019_vm4, %v2018_v54, %v6675_v3  ;;  %6120 = vmatpush3.bf16.msra.mxu1 %v2155_v52  ;;  %v2211_v3 = vld [vmem:[%s9529_s12] sm:$0xff]  ;;  %v2212_v4 = vld [vmem:[%s9529_s12 + $0x8] sm:$0xff]  ;;  %v2217_v54 = vld [vmem:[%s9529_s12 + $0x30] sm:$0xff] }
 0x719   : > { %v6678_v22 = vpop.permute.xlu1 %6677  ;;  %6121 = vmatprep.subr.bf16.mxu1 %v7480_v60  ;;  %v2218_v51 = vld [vmem:[%s9529_s12 + $0x38] sm:$0xff] }
 0x71a   : > { %v6680_v7 = vunpack.i.h.bf16 %v6678_v22  ;;  %v6679_v11 = vunpack.i.l.bf16 %v6678_v22  ;;  %v2149_v22 = vld [vmem:[%s9527_s10 + $0x20] sm:$0xff] }
 0x71b   : > { %v2156_v29 = vpack.c.bf16 %v2150_v24, %v2149_v22 }
 0x71c   : > { %v2024_v19 = vsel %vm2022_vm5, %v2021_v49, %v6680_v7  ;;  %v2023_v33 = vsel %vm2022_vm5, %v2020_v41, %v6679_v11  ;;  %v2228_v7 = vpack.c.bf16 %v2212_v4, %v2211_v3  ;;  %v2214_v11 = vld [vmem:[%s9529_s12 + $0x18] sm:$0xff]  ;;  %v2220_v41 = vld [vmem:[%s9529_s12 + $0x48] sm:$0xff] }
 0x71d   : > { %v6683_v2 = vpop.permute.xlu0 %6682  ;;  %6122 = vmatpush3.bf16.msra.mxu1 %v2156_v29 }
 0x71e   : > { %v6685_v12 = vunpack.i.h.bf16 %v6683_v2  ;;  %v6684_v44 = vunpack.i.l.bf16 %v6683_v2  ;;  %v2157_v2 = vpack.c.bf16 %v2152_v59, %v2151_v56  ;;  %6123 = vmatprep.subr.bf16.mxu1 %v7480_v60 }
 0x720   : > { %v2026_v57 = vsel %vm2025_vm6, %v2023_v33, %v6684_v44  ;;  %v2027_v47 = vsel %vm2025_vm6, %v2024_v19, %v6685_v12  ;;  %v2216_v12 = vld [vmem:[%s9529_s12 + $0x28] sm:$0xff]  ;;  %v2221_v19 = vld [vmem:[%s9529_s12 + $0x50] sm:$0xff]  ;;  %v2222_v33 = vld [vmem:[%s9529_s12 + $0x58] sm:$0xff] }
 0x721   : > { %v6688_v37 = vpop.permute.xlu1 %6687  ;;  %6124 = vmatpush3.bf16.msra.mxu1 %v2157_v2  ;;  %v2230_v44 = vpack.c.bf16 %v2216_v12, %v2215_v61 }
 0x722   : > { %v6690_v16 = vunpack.i.h.bf16 %v6688_v37  ;;  %v6689_v35 = vunpack.i.l.bf16 %v6688_v37  ;;  %v2213_v37 = vld [vmem:[%s9529_s12 + $0x10] sm:$0xff] }
 0x723   : > { %v2229_v27 = vpack.c.bf16 %v2214_v11, %v2213_v37 }
 0x724   : > { %v2030_v26 = vsel %vm2028_vm7, %v2027_v47, %v6690_v16  ;;  %v2029_v28 = vsel %vm2028_vm7, %v2026_v57, %v6689_v35  ;;  %v2231_v16 = vpack.c.bf16 %v2218_v51, %v2217_v54  ;;  %v2219_v35 = vld [vmem:[%s9529_s12 + $0x40] sm:$0xff] }
 0x725   : > { %v2232_v49 = vpack.c.bf16 %v2220_v41, %v2219_v35  ;;  %v5696_v35 = vld [vmem:[%s9621_s7 + $0x88] sm:$0xff]  ;;  %v5698_v41 = vld [vmem:[%s9621_s7 + $0x98] sm:$0xff] }
 0x729   : > { %v6693_v55 = vpop.permute.xlu0 %6692 }
 0x72a   : > { %v6695_v23 = vunpack.i.h.bf16 %v6693_v55  ;;  %v6694_v53 = vunpack.i.l.bf16 %v6693_v55  ;;  %v2233_v55 = vpack.c.bf16 %v2222_v33, %v2221_v19  ;;  %v5695_v19 = vld [vmem:[%s9621_s7 + $0x80] sm:$0xff]  ;;  %v5697_v33 = vld [vmem:[%s9621_s7 + $0x90] sm:$0xff] }
 0x72c   : > { %v2032_v30 = vsel %vm2031_vm8, %v2029_v28, %v6694_v53  ;;  %v2033_v0 = vsel %vm2031_vm8, %v2030_v26, %v6695_v23 }
 0x72d   : > { %v2042_v32 = vpack.c.bf16 %v2033_v0, %v2032_v30  ;;  %v5688_v0 = vld [vmem:[#allocation10] ss:$0 sm:$0xff] }
 0x72f   : > { %6114 = vmatmul.mubr.msk.bf16.vlgmr.msra.gmra.mrb[32].mxu0 %vm854_vm0, %v2042_v32 }
 0x730   : > { %6145 = vmatprep.mubr.msk.bf16.mxu0 %vm7485_vm1, %v7480_v60  ;;  %6130 = vmatpush3.bf16.msra.mxu0 %v2228_v7 }
 0x731   : > { %6131 = vmatprep.subr.bf16.mxu0 %v7480_v60 }
 0x734   : > { %6132 = vmatpush3.bf16.msra.mxu0 %v2229_v27 }
 0x735   : > { %6133 = vmatprep.subr.bf16.mxu0 %v7480_v60 }
 0x738   : > { %6134 = vmatpush3.bf16.msra.mxu0 %v2230_v44 }
 0x739   : > { %6135 = vmatprep.subr.bf16.mxu0 %v7480_v60 }
 0x73c   : > { %6136 = vmatpush3.bf16.msra.mxu0 %v2231_v16 }
 0x73d   : > { %6137 = vmatprep.subr.bf16.mxu0 %v7480_v60 }
 0x740   : > { %6138 = vmatpush3.bf16.msra.mxu0 %v2232_v49  ;;  %v2349_v49 = vpack.c.bf16 %v5698_v41, %v5696_v35 }
 0x741   : > { %6139 = vmatprep.subr.bf16.mxu0 %v7480_v60 }
 0x742   : > { %2372 = vmatprep.subr.bf16.mxu1 %v2349_v49 }
 0x744   : > { %6140 = vmatpush3.bf16.msra.mxu0 %v2233_v55  ;;  %v2348_v55 = vpack.c.bf16 %v5697_v33, %v5695_v19 }
 0x745   : > { %6141 = vmatprep.subr.bf16.mxu0 %v7480_v60 }
 0x802   : > { %v2091_v5 = vpop.f32.mrb[32].mxu0 }
 0x803   : > { %v2092_v34 = vadd.f32 %v5686_v31, %v2091_v5  ;;  %v6115_v9 = vpop.f32.mrb[33].mxu0 }
 0x804   : > { %v2094_v63 = vpop.f32.mrb[34].mxu0  ;;  %v5689_v9 = vld [vmem:[#allocation11] ss:$0 sm:$0xff] }
 0x805   : > { %v2095_v6 = vadd.f32 %v5686_v31, %v2094_v63  ;;  %v6116_v36 = vpop.f32.mrb[35].mxu0  ;;  %v2098_v40 = vadd.f32 %v2092_v34, %v7984_v38 }
 0x807   : > { %v2102_v13 = vsel %vm854_vm0, %v2098_v40, 0.0  ;;  %v2099_v17 = vadd.f32 %v2095_v6, %v7986_v39 }
 0x808   : > { %2103 = vadd.xlane.f32.xlu1 %v2102_v13  ;;  %v2223_v13 = vld [vmem:[%s9529_s12 + $0x60] sm:$0xff] }
 0x809   : > { %v2105_v42 = vsel %vm854_vm0, %v2099_v17, 0.0 }
 0x80a   : > { %2106 = vadd.xlane.f32.xlu0 %v2105_v42 }
 0x895   : > { %v2104_v46 = vpop.xlane.xlu1 %2103 }
 0x896   : > { %v2109_v14 = vmul.f32 0.015625, %v2104_v46  ;;  %v2225_v46 = vld [vmem:[%s9529_s12 + $0x70] sm:$0xff] }
 0x897   : > { %v2107_v58 = vpop.xlane.xlu0 %2106 }
 0x898   : > { %v8351_v15 = vsub.f32 %v2098_v40, %v2109_v14  ;;  %v2110_v21 = vmul.f32 0.015625, %v2107_v58  ;;  %v2226_v14 = vld [vmem:[%s9529_s12 + $0x78] sm:$0xff] }
 0x899   : > { %v2235_v58 = vpack.c.bf16 %v2226_v14, %v2225_v46 }
 0x89a   : > { %v8353_v48 = vsub.f32 %v2099_v17, %v2110_v21  ;;  %v2113_v25 = vmul.f32 %v8351_v15, %v8351_v15  ;;  %v2224_v17 = vld [vmem:[%s9529_s12 + $0x68] sm:$0xff] }
 0x89b   : > { %v2234_v42 = vpack.c.bf16 %v2224_v17, %v2223_v13 }
 0x89c   : > { %v2115_v38 = vsel %vm854_vm0, %v2113_v25, 0.0  ;;  %v2114_v39 = vmul.f32 %v8353_v48, %v8353_v48 }
 0x89d   : > { %2116 = vadd.xlane.f32.xlu0 %v2115_v38  ;;  %6142 = vmatpush3.bf16.msra.mxu0 %v2234_v42 }
 0x89e   : > { %v2118_v62 = vsel %vm854_vm0, %v2114_v39, 0.0  ;;  %6143 = vmatprep.subr.bf16.mxu0 %v7480_v60 }
 0x89f   : > { %2119 = vadd.xlane.f32.xlu1 %v2118_v62 }
 0x8a1   : > { %6144 = vmatpush3.bf16.msra.mxu0 %v2235_v58 }
 0x8a2   : > { %6161 = vmatprep.subr.bf16.mxu0 %v7480_v60 }
 0x92a   : > { %v2117_v57 = vpop.xlane.xlu0 %2116 }
 0x92b   : > { %v2121_v47 = vmul.f32 0.015625, %v2117_v57  ;;  %v5700_v57 = vld [vmem:[%s9621_s7 + $0xa8] sm:$0xff] }
 0x92c   : > { %v2120_v23 = vpop.xlane.xlu1 %2119 }
 0x92d   : > { %v2123_v53 = vadd.f32 1e-05, %v2121_v47  ;;  %v2122_v26 = vmul.f32 0.015625, %v2120_v23  ;;  %v5702_v47 = vld [vmem:[%s9621_s7 + $0xb8] sm:$0xff] }
 0x92e   : > { %v2351_v23 = vpack.c.bf16 %v5702_v47, %v5700_v57 }
 0x92f   : > { %6970 = vrsqrt.f32 %v2123_v53  ;;  %v2124_v28 = vadd.f32 1e-05, %v2122_v26  ;;  %v5699_v53 = vld [vmem:[%s9621_s7 + $0xa0] sm:$0xff]  ;;  %v5701_v26 = vld [vmem:[%s9621_s7 + $0xb0] sm:$0xff] }
 0x931   : > { %6972 = vrsqrt.f32 %v2124_v28  ;;  %v2350_v28 = vpack.c.bf16 %v5701_v26, %v5699_v53 }
 0x939   : > { %v6971_v30 = vpop.eup %6970 }
 0x93a   : > { %v2127_v32 = vmul.f32 %v6971_v30, %v8351_v15  ;;  %v5690_v15 = vld [vmem:[#allocation13] ss:$0 sm:$0xff]  ;;  %v5704_v30 = vld [vmem:[%s9621_s7 + $0xc8] sm:$0xff] }
 0x93b   : > { %v6973_v31 = vpop.eup %6972 }
 0x93c   : > { %v2135_v5 = vmul.f32 %v5688_v0, %v2127_v32  ;;  %v2128_v34 = vmul.f32 %v6973_v31, %v8353_v48  ;;  %v5703_v31 = vld [vmem:[%s9621_s7 + $0xc0] sm:$0xff] }
 0x93e   : > { %v2136_v63 = vmul.f32 %v5688_v0, %v2128_v34  ;;  %v2143_v6 = vadd.f32 %v5689_v9, %v2135_v5  ;;  %v5706_v0 = vld [vmem:[%s9621_s7 + $0xd8] sm:$0xff]  ;;  %v5705_v5 = vld [vmem:[%s9621_s7 + $0xd0] sm:$0xff] }
 0x93f   : > { %v2353_v32 = vpack.c.bf16 %v5706_v0, %v5704_v30  ;;  %v2352_v34 = vpack.c.bf16 %v5705_v5, %v5703_v31 }
 0x940   : > { %v2144_v36 = vadd.f32 %v5689_v9, %v2136_v63  ;;  %v5708_v9 = vld [vmem:[%s9621_s7 + $0xe8] sm:$0xff]  ;;  %v5710_v63 = vld [vmem:[%s9621_s7 + $0xf8] sm:$0xff] }
 0x942   : > { %v2153_v40 = vpack.c.bf16 %v2144_v36, %v2143_v6 }
 0x944   : > { %6126 = vmatmul.mubr.msk.bf16.vlgmr.msra.gmra.mrb[36].mxu1 %vm854_vm0, %v2153_v40  ;;  %v5709_v40 = vld [vmem:[%s9621_s7 + $0xf0] sm:$0xff] }
 0x945   : > { %2404 = vmatprep.mubr.bf16.mxu1 %v7477_v1  ;;  %2373 = vmatpush1.bf16.msra.mxu1 %v2348_v55 }
 0x946   : > { %2374 = vmatprep.subr.bf16.mxu1 %v2351_v23 }
 0x949   : > { %2375 = vmatpush1.bf16.msra.mxu1 %v2350_v28 }
 0x94a   : > { %2376 = vmatprep.subr.bf16.mxu1 %v2353_v32 }
 0x94d   : > { %2377 = vmatpush1.bf16.msra.mxu1 %v2352_v34 }
 0xa17   : > { %v2202_v21 = vpop.f32.mrb[36].mxu1 }
 0xa18   : > { %v2203_v48 = vadd.f32 %v5690_v15, %v2202_v21  ;;  %v6127_v25 = vpop.f32.mrb[37].mxu1 }
 0xa19   : > { %v2205_v38 = vpop.f32.mrb[38].mxu1 }
 0xa1a   : > { %v2206_v39 = vadd.f32 %v5690_v15, %v2205_v38  ;;  %v6128_v62 = vpop.f32.mrb[39].mxu1  ;;  %v2209_v18 = vmax.f32 %v2203_v48, 0.0  ;;  %v5693_v48 = vld [vmem:[#allocation16] ss:$0 sm:$0xff] }
 0xa1c   : > { %v2210_v20 = vmax.f32 %v2206_v39, 0.0 }
 0xa1e   : > { %v2227_v8 = vpack.c.bf16 %v2210_v20, %v2209_v18  ;;  %v5694_v18 = vld [vmem:[#allocation17] ss:$0 sm:$0xff] }
 0xa20   : > { %6146 = vmatmul.mubr.bf16.vlgmr.msra.gmra.mrb[36].mxu0 %v2227_v8 }
 0xa21   : > { %6163 = vmatprep.mubr.msk.bf16.mxu0 %vm7485_vm1, %v7480_v60 }
 0xaf3   : > { %v2277_v50 = vpop.f32.mrb[36].mxu0 }
 0xaf4   : > { %v2278_v52 = vadd.f32 %v5692_v10, %v2277_v50  ;;  %v6147_v22 = vpop.f32.mrb[37].mxu0 }
 0xaf5   : > { %v2280_v24 = vpop.f32.mrb[38].mxu0 }
 0xaf6   : > { %v2281_v29 = vadd.f32 %v5692_v10, %v2280_v24  ;;  %v6148_v56 = vpop.f32.mrb[39].mxu0  ;;  %v2284_v59 = vadd.f32 %v2278_v52, %v2143_v6  ;;  %v5707_v6 = vld [vmem:[%s9621_s7 + $0xe0] sm:$0xff] }
 0xaf7   : > { %v2354_v13 = vpack.c.bf16 %v5709_v40, %v5707_v6  ;;  %v2357_v52 = vld [vmem:[#allocation7 + $0x2] sm:$0x3] }
 0xaf8   : > { %v2288_v2 = vsel %vm854_vm0, %v2284_v59, 0.0  ;;  %v2285_v3 = vadd.f32 %v2281_v29, %v2144_v36  ;;  %v2355_v36 = vpack.c.bf16 %v5710_v63, %v5708_v9  ;;  %v2362_v22 = vrot.slane %v2357_v52, %v7991_v43 }
 0xaf9   : > { %2289 = vadd.xlane.f32.xlu0 %v2288_v2  ;;  %v2366_v29 = vrot.slane %v2357_v52, %v7993_v45 }
 0xafa   : > { %v2291_v4 = vsel %vm854_vm0, %v2285_v3, 0.0  ;;  %2378 = vmatprep.subr.bf16.mxu1 %v2355_v36 }
 0xafb   : > { %2292 = vadd.xlane.f32.xlu1 %v2291_v4  ;;  %2379 = vmatpush1.bf16.msra.mxu1 %v2354_v13 }
 0xafc   : > { %6149 = vmatprep.subr.bf16.mxu1 %v7480_v60 }
 0xb86   : > { %v2290_v37 = vpop.xlane.xlu0 %2289 }
 0xb87   : > { %v2294_v7 = vmul.f32 0.015625, %v2290_v37 }
 0xb88   : > { %v2293_v11 = vpop.xlane.xlu1 %2292 }
 0xb89   : > { %v2296_v27 = vsub.f32 %v2284_v59, %v2294_v7  ;;  %v2295_v61 = vmul.f32 0.015625, %v2293_v11 }
 0xb8b   : > { %v2297_v12 = vsub.f32 %v2285_v3, %v2295_v61  ;;  %v2298_v44 = vmul.f32 %v2296_v27, %v2296_v27 }
 0xb8d   : > { %v2300_v54 = vsel %vm854_vm0, %v2298_v44, 0.0  ;;  %v2299_v51 = vmul.f32 %v2297_v12, %v2297_v12 }
 0xb8e   : > { %2301 = vadd.xlane.f32.xlu0 %v2300_v54 }
 0xb8f   : > { %v2303_v16 = vsel %vm854_vm0, %v2299_v51, 0.0 }
 0xb90   : > { %2304 = vadd.xlane.f32.xlu1 %v2303_v16 }
 0xc1b   : > { %v2302_v17 = vpop.xlane.xlu0 %2301 }
 0xc1c   : > { %v2306_v42 = vmul.f32 0.015625, %v2302_v17 }
 0xc1d   : > { %v2305_v46 = vpop.xlane.xlu1 %2304 }
 0xc1e   : > { %v2308_v14 = vadd.f32 1e-05, %v2306_v42  ;;  %v2307_v58 = vmul.f32 0.015625, %v2305_v46 }
 0xc20   : > { %6974 = vrsqrt.f32 %v2308_v14  ;;  %v2309_v15 = vadd.f32 1e-05, %v2307_v58 }
 0xc22   : > { %6976 = vrsqrt.f32 %v2309_v15 }
 0xc2a   : > { %v6975_v21 = vpop.eup %6974 }
 0xc2b   : > { %v2312_v25 = vmul.f32 %v6975_v21, %v2296_v27 }
 0xc2c   : > { %v6977_v38 = vpop.eup %6976 }
 0xc2d   : > { %v2320_v39 = vmul.f32 %v5693_v48, %v2312_v25  ;;  %v2313_v62 = vmul.f32 %v6977_v38, %v2297_v12 }
 0xc2f   : > { %v2321_v20 = vmul.f32 %v5693_v48, %v2313_v62  ;;  %v8503_v8 = vadd.f32 %v5694_v18, %v2320_v39 }
 0xc31   : > { %v8505_v10 = vadd.f32 %v5694_v18, %v2321_v20 }
 0xc33   : > { %v2347_v50 = vpack.c.bf16 %v8505_v10, %v8503_v8 }
 0xc35   : > { %5711 = vmatmul.mubr.msk.bf16.vlgmr.msra.gmra.mrb[40].mxu1 %vm854_vm0, %v2347_v50 }
 0xc36   : > { %6151 = vmatprep.mubr.msk.bf16.mxu1 %vm7485_vm1, %v7480_v60 }
 0xd08   : > { %v2406_v24 = vpop.f32.mrb[40].mxu1 }
 0xd09   : > { %v2408_v56 = vpop.f32.mrb[41].mxu1  ;;  %v2407_v2 = vadd.f32 %v2406_v24, %v2362_v22 }
 0xd0a   : > { %v2410_v59 = vpop.f32.mrb[42].mxu1  ;;  %v8514_v37 = vadd.f32 %v2408_v56, %v2366_v29 }
 0xd0b   : > { %v2411_v3 = vadd.f32 %v2410_v59, %v2362_v22  ;;  %v2412_v4 = vpop.f32.mrb[43].mxu1 }
 0xd0c   : > { %v8516_v7 = vadd.f32 %v2412_v4, %v2366_v29 }
 0xd0d   : > { %v6701_v11 = vpack.i.bf16 %v2411_v3, %v2407_v2  ;;  %v2459_v27 = vpack.c.bf16 %v2411_v3, %v2407_v2 }
 0xd0e   : > { %v8522_v61 = vpack.i.bf16 %v8516_v7, %v8514_v37  ;;  %v2511_v12 = vpack.c.bf16 %v8516_v7, %v8514_v37 }
 0xd0f   : > { %6702 = vrot.lane.b32.xlu1 %v6701_v11, %s9579_s22  ;;  %6697 = vrot.lane.b32.xlu0 %v6701_v11, %s9577_s24 }
 0xd13   : > { %6707 = vrot.lane.b32.xlu1 %v6701_v11, %s9573_s30  ;;  %6712 = vrot.lane.b32.xlu0 %v6701_v11, %s9571_s1 }
 0xd17   : > { %6717 = vrot.lane.b32.xlu1 %v6701_v11, %s9575_s20  ;;  %6722 = vrot.lane.b32.xlu0 %v6701_v11, %s9623_s0 }
 0xd1b   : > { %6727 = vrot.lane.b32.xlu1 %v6701_v11, %s9624_s27  ;;  %2520 = vrot.lane.b32.xlu0 %v2459_v27, %s9625_s29 }
 0xd81   : > { %v6703_v44 = vpop.permute.xlu1 %6702  ;;  %v6698_v54 = vpop.permute.xlu0 %6697 }
 0xd82   : > { %v6705_v51 = vunpack.i.h.bf16 %v6703_v44  ;;  %v6704_v16 = vunpack.i.l.bf16 %v6703_v44  ;;  %v6700_v35 = vunpack.i.h.bf16 %v6698_v54  ;;  %v6699_v41 = vunpack.i.l.bf16 %v6698_v54 }
 0xd84   : > { %v2460_v49 = vpack.c.bf16 %v6700_v35, %v6699_v41  ;;  %v2461_v19 = vpack.c.bf16 %v6705_v51, %v6704_v16 }
 0xd85   : > { %v6708_v33 = vpop.permute.xlu1 %6707  ;;  %v6713_v55 = vpop.permute.xlu0 %6712 }
 0xd86   : > { %v6710_v57 = vunpack.i.h.bf16 %v6708_v33  ;;  %v6709_v47 = vunpack.i.l.bf16 %v6708_v33  ;;  %v6715_v23 = vunpack.i.h.bf16 %v6713_v55  ;;  %v6714_v53 = vunpack.i.l.bf16 %v6713_v55  ;;  %2570 = vrot.lane.b32.xlu1 %v2460_v49, %s9625_s29  ;;  %2620 = vrot.lane.b32.xlu0 %v2461_v19, %s9625_s29 }
 0xd88   : > { %v2462_v26 = vpack.c.bf16 %v6710_v57, %v6709_v47  ;;  %v2463_v28 = vpack.c.bf16 %v6715_v23, %v6714_v53 }
 0xd89   : > { %v6718_v30 = vpop.permute.xlu1 %6717  ;;  %v6723_v0 = vpop.permute.xlu0 %6722 }
 0xd8a   : > { %v6720_v32 = vunpack.i.h.bf16 %v6718_v30  ;;  %v6719_v31 = vunpack.i.l.bf16 %v6718_v30  ;;  %v6725_v5 = vunpack.i.h.bf16 %v6723_v0  ;;  %v6724_v34 = vunpack.i.l.bf16 %v6723_v0  ;;  %2670 = vrot.lane.b32.xlu1 %v2462_v26, %s9625_s29  ;;  %2720 = vrot.lane.b32.xlu0 %v2463_v28, %s9625_s29 }
 0xd8c   : > { %v2464_v9 = vpack.c.bf16 %v6720_v32, %v6719_v31  ;;  %v2465_v63 = vpack.c.bf16 %v6725_v5, %v6724_v34 }
 0xd8d   : > { %v6728_v6 = vpop.permute.xlu1 %6727  ;;  %v2521_v36 = vpop.permute.xlu0 %2520 }
 0xd8e   : > { %v6730_v40 = vunpack.i.h.bf16 %v6728_v6  ;;  %v6729_v13 = vunpack.i.l.bf16 %v6728_v6  ;;  %v2526_v17 = vsel %vm1008_vm2, %v2521_v36, 0  ;;  %2770 = vrot.lane.b32.xlu1 %v2464_v9, %s9625_s29  ;;  %2820 = vrot.lane.b32.xlu0 %v2465_v63, %s9625_s29 }
 0xd8f   : > { %6150 = vmatpush3.bf16.xpose.msra.mxu1 %v2526_v17 }
 0xd90   : > { %v2466_v42 = vpack.c.bf16 %v6730_v40, %v6729_v13  ;;  %6155 = vmatprep.subr.bf16.mxu1 %v7480_v60 }
 0xd92   : > { %2870 = vrot.lane.b32.xlu1 %v2466_v42, %s9625_s29 }
 0xd96   : > { %6732 = vrot.lane.b32.xlu1 %v8522_v61, %s9577_s24  ;;  %6152 = vmatmul.mubr.msk.bf16.vlgmr.msra.gmra.mrb[44].mxu1 %vm1008_vm2, %v2459_v27  ;;  %s9637_s24 = smov 96  }
 0xd97   : > { %6157 = vmatprep.mubr.msk.bf16.mxu1 %vm7485_vm1, %v7480_v60 }
 0xdf8   : > { %v2571_v46 = vpop.permute.xlu1 %2570  ;;  %v2621_v14 = vpop.permute.xlu0 %2620 }
 0xdf9   : > { %v2576_v58 = vsel %vm1008_vm2, %v2571_v46, 0  ;;  %v2626_v15 = vsel %vm1008_vm2, %v2621_v14, 0 }
 0xdfa   : > { %6156 = vmatpush3.bf16.xpose.msra.mxu1 %v2576_v58  ;;  %6162 = vmatpush3.bf16.xpose.msra.mxu0 %v2626_v15 }
 0xdfb   : > { %6167 = vmatprep.subr.bf16.mxu1 %v7480_v60  ;;  %6173 = vmatprep.subr.bf16.mxu0 %v7480_v60 }
 0xdfc   : > { %v2671_v21 = vpop.permute.xlu1 %2670  ;;  %v2721_v48 = vpop.permute.xlu0 %2720 }
 0xdfd   : > { %v2676_v25 = vsel %vm1008_vm2, %v2671_v21, 0  ;;  %v2726_v38 = vsel %vm1008_vm2, %v2721_v48, 0 }
 0xe00   : > { %v2771_v39 = vpop.permute.xlu1 %2770  ;;  %v2821_v62 = vpop.permute.xlu0 %2820 }
 0xe01   : > { %6158 = vmatmul.mubr.msk.bf16.vlgmr.msra.gmra.mrb[48].mxu1 %vm1008_vm2, %v2460_v49  ;;  %6164 = vmatmul.mubr.msk.bf16.vlgmr.msra.gmra.mrb[40].mxu0 %vm1008_vm2, %v2461_v19  ;;  %v2776_v18 = vsel %vm1008_vm2, %v2771_v39, 0  ;;  %v2826_v20 = vsel %vm1008_vm2, %v2821_v62, 0 }
 0xe02   : > { %6168 = vmatpush3.bf16.xpose.msra.mxu1 %v2676_v25  ;;  %6174 = vmatpush3.bf16.xpose.msra.mxu0 %v2726_v38 }
 0xe03   : > { %6169 = vmatprep.mubr.msk.bf16.mxu1 %vm7485_vm1, %v7480_v60  ;;  %6175 = vmatprep.mubr.msk.bf16.mxu0 %vm7485_vm1, %v7480_v60 }
 0xe04   : > { %6179 = vmatprep.subr.bf16.mxu1 %v7480_v60  ;;  %6185 = vmatprep.subr.bf16.mxu0 %v7480_v60  ;;  %v2871_v50 = vpop.permute.xlu1 %2870 }
 0xe05   : > { %v2876_v52 = vsel %vm1008_vm2, %v2871_v50, 0 }
 0xe08   : > { %v6733_v22 = vpop.permute.xlu1 %6732 }
 0xe09   : > { %6170 = vmatmul.mubr.msk.bf16.vlgmr.msra.gmra.mrb[52].mxu1 %vm1008_vm2, %v2462_v26  ;;  %6176 = vmatmul.mubr.msk.bf16.vlgmr.msra.gmra.mrb[44].mxu0 %vm1008_vm2, %v2463_v28  ;;  %v6735_v24 = vunpack.i.h.bf16 %v6733_v22  ;;  %v6734_v29 = vunpack.i.l.bf16 %v6733_v22 }
 0xe0a   : > { %6180 = vmatpush3.bf16.xpose.msra.mxu1 %v2776_v18  ;;  %6186 = vmatpush3.bf16.xpose.msra.mxu0 %v2826_v20 }
 0xe0b   : > { %6181 = vmatprep.mubr.msk.bf16.mxu1 %vm7485_vm1, %v7480_v60  ;;  %6187 = vmatprep.mubr.msk.bf16.mxu0 %vm7485_vm1, %v7480_v60  ;;  %v2512_v56 = vpack.c.bf16 %v6735_v24, %v6734_v29 }
 0xe0c   : > { %6191 = vmatprep.subr.bf16.mxu1 %v7480_v60  ;;  %6197 = vmatprep.subr.bf16.mxu0 %v7480_v60 }
 0xe11   : > { %6182 = vmatmul.mubr.msk.bf16.vlgmr.msra.gmra.mrb[56].mxu1 %vm1008_vm2, %v2464_v9  ;;  %6188 = vmatmul.mubr.msk.bf16.vlgmr.msra.gmra.mrb[48].mxu0 %vm1008_vm2, %v2465_v63 }
 0xe12   : > { %6192 = vmatpush3.bf16.xpose.msra.mxu1 %v2876_v52  ;;  %6198 = vmatpush3.bf16.msra.mxu0 %v2511_v12 }
 0xe13   : > { %6193 = vmatprep.mubr.msk.bf16.mxu1 %vm7485_vm1, %v7480_v60  ;;  %6203 = vmatprep.subr.bf16.mxu1 %v7480_v60 }
 0xe14   : > { %6199 = vmatprep.mubr.msk.bf16.mxu0 %vm7485_vm1, %v7480_v60  ;;  %6209 = vmatprep.subr.bf16.mxu0 %v7480_v60 }
 0xe19   : > { %6194 = vmatmul.mubr.msk.bf16.vlgmr.msra.gmra.mrb[60].mxu1 %vm1008_vm2, %v2466_v42 }
 0xe1a   : > { %6204 = vmatpush3.bf16.msra.mxu1 %v2512_v56  ;;  %6205 = vmatprep.mubr.msk.bf16.mxu1 %vm7485_vm1, %v7480_v60 }
 0xe1b   : > { %6215 = vmatprep.subr.bf16.mxu1 %v7480_v60 }
 0xe69   : > { %v2562_v59 = vpop.f32.mrb[44].mxu1 }
 0xe6a   : > { %v8586_v2 = vmul.f32 0.35355338, %v2562_v59  ;;  %v6153_v3 = vpop.f32.mrb[45].mxu1 }
 0xe6b   : > { %v2565_v4 = vpop.f32.mrb[46].mxu1 }
 0xe6c   : > { %v8588_v37 = vmul.f32 0.35355338, %v2565_v4  ;;  %v6154_v7 = vpop.f32.mrb[47].mxu1  ;;  %v2935_v11 = vsel %vm1422_vm3, %v8586_v2, -inf }
 0xe6d   : > { %2936 = vmax.xlane.f32.xlu0 %v2935_v11 }
 0xe6e   : > { %v2938_v27 = vsel %vm1422_vm3, %v8588_v37, -inf }
 0xe6f   : > { %2939 = vmax.xlane.f32.xlu1 %v2938_v27 }
 0xed4   : > { %v2612_v12 = vpop.f32.mrb[48].mxu1  ;;  %v2662_v44 = vpop.f32.mrb[40].mxu0 }
 0xed5   : > { %v8594_v54 = vmul.f32 0.35355338, %v2612_v12  ;;  %v8596_v51 = vmul.f32 0.35355338, %v2662_v44  ;;  %v6159_v16 = vpop.f32.mrb[49].mxu1  ;;  %v6165_v35 = vpop.f32.mrb[41].mxu0 }
 0xed6   : > { %v2615_v41 = vpop.f32.mrb[50].mxu1  ;;  %v2665_v49 = vpop.f32.mrb[42].mxu0 }
 0xed7   : > { %v6160_v19 = vpop.f32.mrb[51].mxu1  ;;  %v6166_v33 = vpop.f32.mrb[43].mxu0  ;;  %v8598_v55 = vmul.f32 0.35355338, %v2615_v41  ;;  %v2941_v57 = vsel %vm1422_vm3, %v8594_v54, -inf  ;;  %v2947_v47 = vsel %vm1422_vm3, %v8596_v51, -inf }
 0xed8   : > { %2942 = vmax.xlane.f32.xlu0 %v2941_v57  ;;  %2948 = vmax.xlane.f32.xlu1 %v2947_v47  ;;  %v8604_v23 = vmul.f32 0.35355338, %v2665_v49 }
 0xed9   : > { %v2944_v53 = vsel %vm1422_vm3, %v8598_v55, -inf }
 0xeda   : > { %v2950_v40 = vsel %vm1422_vm3, %v8604_v23, -inf }
 0xedc   : > { %v2712_v26 = vpop.f32.mrb[52].mxu1  ;;  %v2762_v28 = vpop.f32.mrb[44].mxu0  ;;  %2945 = vmax.xlane.f32.xlu0 %v2944_v53 }
 0xedd   : > { %v8608_v30 = vmul.f32 0.35355338, %v2712_v26  ;;  %v6171_v0 = vpop.f32.mrb[53].mxu1  ;;  %v6177_v32 = vpop.f32.mrb[45].mxu0  ;;  %v8610_v63 = vmul.f32 0.35355338, %v2762_v28 }
 0xede   : > { %v2715_v31 = vpop.f32.mrb[54].mxu1  ;;  %v2765_v5 = vpop.f32.mrb[46].mxu0 }
 0xedf   : > { %v6172_v34 = vpop.f32.mrb[55].mxu1  ;;  %v6178_v9 = vpop.f32.mrb[47].mxu0  ;;  %v8612_v6 = vmul.f32 0.35355338, %v2715_v31  ;;  %v2953_v36 = vsel %vm1422_vm3, %v8608_v30, -inf  ;;  %v2959_v46 = vsel %vm1422_vm3, %v8610_v63, -inf }
 0xee0   : > { %2954 = vmax.xlane.f32.xlu1 %v2953_v36  ;;  %2951 = vmax.xlane.f32.xlu0 %v2950_v40  ;;  %v8618_v13 = vmul.f32 0.35355338, %v2765_v5 }
 0xee1   : > { %v2956_v42 = vsel %vm1422_vm3, %v8612_v6, -inf }
 0xee2   : > { %v2962_v50 = vsel %vm1422_vm3, %v8618_v13, -inf }
 0xee4   : > { %v2812_v17 = vpop.f32.mrb[56].mxu1  ;;  %v2862_v14 = vpop.f32.mrb[48].mxu0  ;;  %2957 = vmax.xlane.f32.xlu0 %v2956_v42  ;;  %2960 = vmax.xlane.f32.xlu1 %v2959_v46 }
 0xee5   : > { %v8624_v58 = vmul.f32 0.35355338, %v2812_v17  ;;  %v6183_v15 = vpop.f32.mrb[57].mxu1  ;;  %v6189_v21 = vpop.f32.mrb[49].mxu0  ;;  %v8626_v62 = vmul.f32 0.35355338, %v2862_v14 }
 0xee6   : > { %v2815_v48 = vpop.f32.mrb[58].mxu1  ;;  %v2865_v25 = vpop.f32.mrb[50].mxu0 }
 0xee7   : > { %v6184_v38 = vpop.f32.mrb[59].mxu1  ;;  %v6190_v39 = vpop.f32.mrb[51].mxu0  ;;  %v8628_v18 = vmul.f32 0.35355338, %v2815_v48  ;;  %v2965_v20 = vsel %vm1422_vm3, %v8624_v58, -inf  ;;  %v2971_v29 = vsel %vm1422_vm3, %v8626_v62, -inf }
 0xee8   : > { %2966 = vmax.xlane.f32.xlu1 %v2965_v20  ;;  %2963 = vmax.xlane.f32.xlu0 %v2962_v50  ;;  %v8634_v52 = vmul.f32 0.35355338, %v2865_v25 }
 0xee9   : > { %v2968_v24 = vsel %vm1422_vm3, %v8628_v18, -inf }
 0xeea   : > { %v2974_v27 = vsel %vm1422_vm3, %v8634_v52, -inf }
 0xeec   : > { %v2912_v22 = vpop.f32.mrb[60].mxu1  ;;  %2969 = vmax.xlane.f32.xlu0 %v2968_v24  ;;  %2972 = vmax.xlane.f32.xlu1 %v2971_v29 }
 0xeed   : > { %v8640_v56 = vmul.f32 0.35355338, %v2912_v22  ;;  %v6195_v59 = vpop.f32.mrb[61].mxu1 }
 0xeee   : > { %v2915_v3 = vpop.f32.mrb[62].mxu1 }
 0xeef   : > { %v6196_v4 = vpop.f32.mrb[63].mxu1  ;;  %v2977_v7 = vsel %vm1422_vm3, %v8640_v56, -inf  ;;  %v8644_v11 = vmul.f32 0.35355338, %v2915_v3 }
 0xef0   : > { %2978 = vmax.xlane.f32.xlu1 %v2977_v7  ;;  %2975 = vmax.xlane.f32.xlu0 %v2974_v27 }
 0xef1   : > { %v2980_v12 = vsel %vm1422_vm3, %v8644_v11, -inf }
 0xef4   : > { %2981 = vmax.xlane.f32.xlu0 %v2980_v12 }
 0xefa   : > { %v2937_v35 = vpop.xlane.xlu0 %2936 }
 0xefb   : > { %v2983_v41 = vsub.f32 %v8586_v2, %v2937_v35 }
 0xefc   : > { %v2940_v44 = vpop.xlane.xlu1 %2939 }
 0xefd   : > { %v2984_v16 = vsub.f32 %v8588_v37, %v2940_v44  ;;  %v2999_v19 = vmul.f32 1.442695, %v2983_v41 }
 0xeff   : > { %v3001_v49 = vmul.f32 1.442695, %v2984_v16 }
 0xf01   : > { %6742 = vrot.lane.b32.xlu1 %v8522_v61, %s9573_s30  ;;  %6978 = vpow2.f32 %v3001_v49  ;;  %s9629_s30 = smov 32  }
 0xf02   : > { %6980 = vpow2.f32 %v2999_v19 }
 0xf05   : > { %6747 = vrot.lane.b32.xlu1 %v8522_v61, %s9571_s1 }
 0xf09   : > { %6752 = vrot.lane.b32.xlu1 %v8522_v61, %s9575_s20  ;;  %s9636_s20 = smov 104  }
 0xf0a   : > { %6737 = vrot.lane.b32.xlu0 %v8522_v61, %s9579_s22  ;;  %s9633_s22 = smov 112  }
 0xf0b   : > { %v8660_v33 = vpop.eup %6978 }
 0xf0c   : > { %v3034_v57 = vsel %vm1422_vm3, %v8660_v33, 0.0  ;;  %v8664_v47 = vpop.eup %6980 }
 0xf0d   : > { %v3031_v53 = vsel %vm1422_vm3, %v8664_v47, 0.0 }
 0xf29   : > { %3035 = vadd.xlane.f32.xlu0 %v3034_v57 }
 0xf2d   : > { %3032 = vadd.xlane.f32.xlu1 %v3031_v53 }
 0xf65   : > { %v2943_v37 = vpop.xlane.xlu0 %2942  ;;  %v2949_v26 = vpop.xlane.xlu1 %2948 }
 0xf66   : > { %v2985_v2 = vsub.f32 %v8594_v54, %v2943_v37  ;;  %v2987_v28 = vsub.f32 %v8596_v51, %v2949_v26 }
 0xf68   : > { %v3003_v0 = vmul.f32 1.442695, %v2985_v2  ;;  %v3007_v32 = vmul.f32 1.442695, %v2987_v28 }
 0xf69   : > { %v2946_v31 = vpop.xlane.xlu0 %2945 }
 0xf6a   : > { %6982 = vpow2.f32 %v3003_v0  ;;  %v2986_v5 = vsub.f32 %v8598_v55, %v2946_v31 }
 0xf6b   : > { %6984 = vpow2.f32 %v3007_v32 }
 0xf6c   : > { %v3005_v34 = vmul.f32 1.442695, %v2986_v5 }
 0xf6d   : > { %v2955_v9 = vpop.xlane.xlu1 %2954  ;;  %v2952_v36 = vpop.xlane.xlu0 %2951 }
 0xf6e   : > { %6986 = vpow2.f32 %v3005_v34  ;;  %v2989_v40 = vsub.f32 %v8608_v30, %v2955_v9  ;;  %v2988_v17 = vsub.f32 %v8604_v23, %v2952_v36 }
 0xf70   : > { %v3011_v42 = vmul.f32 1.442695, %v2989_v40  ;;  %v3009_v46 = vmul.f32 1.442695, %v2988_v17 }
 0xf71   : > { %v2958_v54 = vpop.xlane.xlu0 %2957  ;;  %v2961_v14 = vpop.xlane.xlu1 %2960 }
 0xf72   : > { %6988 = vpow2.f32 %v3011_v42  ;;  %v2990_v51 = vsub.f32 %v8612_v6, %v2958_v54  ;;  %v2991_v15 = vsub.f32 %v8610_v63, %v2961_v14 }
 0xf73   : > { %6990 = vpow2.f32 %v3009_v46 }
 0xf74   : > { %v8675_v55 = vpop.eup %6982  ;;  %v3013_v21 = vmul.f32 1.442695, %v2990_v51  ;;  %v3015_v48 = vmul.f32 1.442695, %v2991_v15 }
 0xf75   : > { %v2967_v25 = vpop.xlane.xlu1 %2966  ;;  %v2964_v38 = vpop.xlane.xlu0 %2963  ;;  %v3037_v30 = vsel %vm1422_vm3, %v8675_v55, 0.0 }
 0xf76   : > { %v8679_v23 = vpop.eup %6984  ;;  %6992 = vpow2.f32 %v3013_v21  ;;  %v2993_v39 = vsub.f32 %v8624_v58, %v2967_v25  ;;  %v2992_v20 = vsub.f32 %v8618_v13, %v2964_v38  ;;  %3038 = vadd.xlane.f32.xlu1 %v3037_v30 }
 0xf77   : > { %6994 = vpow2.f32 %v3015_v48  ;;  %v3043_v29 = vsel %vm1422_vm3, %v8679_v23, 0.0 }
 0xf78   : > { %v8683_v63 = vpop.eup %6986  ;;  %v3019_v6 = vmul.f32 1.442695, %v2993_v39  ;;  %v3017_v50 = vmul.f32 1.442695, %v2992_v20 }
 0xf79   : > { %v2970_v22 = vpop.xlane.xlu0 %2969  ;;  %v2973_v24 = vpop.xlane.xlu1 %2972  ;;  %v3040_v59 = vsel %vm1422_vm3, %v8683_v63, 0.0 }
 0xf7a   : > { %6996 = vpow2.f32 %v3019_v6  ;;  %v2994_v3 = vsub.f32 %v8628_v18, %v2970_v22  ;;  %v2995_v58 = vsub.f32 %v8626_v62, %v2973_v24  ;;  %3044 = vadd.xlane.f32.xlu1 %v3043_v29  ;;  %3041 = vadd.xlane.f32.xlu0 %v3040_v59 }
 0xf7b   : > { %6998 = vpow2.f32 %v3017_v50 }
 0xf7c   : > { %v8691_v13 = vpop.eup %6988  ;;  %v3021_v4 = vmul.f32 1.442695, %v2994_v3  ;;  %v3023_v7 = vmul.f32 1.442695, %v2995_v58 }
 0xf7d   : > { %v8693_v27 = vpop.eup %6990  ;;  %v2979_v12 = vpop.xlane.xlu1 %2978  ;;  %v3049_v16 = vsel %vm1422_vm3, %v8691_v13, 0.0 }
 0xf7e   : > { %v2976_v44 = vpop.xlane.xlu0 %2975  ;;  %7000 = vpow2.f32 %v3021_v4  ;;  %v2997_v35 = vsub.f32 %v8640_v56, %v2979_v12  ;;  %3050 = vadd.xlane.f32.xlu1 %v3049_v16  ;;  %v3046_v62 = vsel %vm1422_vm3, %v8693_v27, 0.0 }
 0xf7f   : > { %v2996_v18 = vsub.f32 %v8634_v52, %v2976_v44  ;;  %7002 = vpow2.f32 %v3023_v7  ;;  %3047 = vadd.xlane.f32.xlu0 %v3046_v62 }
 0xf80   : > { %v8701_v41 = vpop.eup %6992  ;;  %v3027_v37 = vmul.f32 1.442695, %v2997_v35 }
 0xf81   : > { %v3025_v49 = vmul.f32 1.442695, %v2996_v18  ;;  %v8703_v19 = vpop.eup %6994  ;;  %v3052_v53 = vsel %vm1422_vm3, %v8701_v41, 0.0  ;;  %v6743_v54 = vpop.permute.xlu1 %6742 }
 0xf82   : > { %v2982_v57 = vpop.xlane.xlu0 %2981  ;;  %v3055_v52 = vsel %vm1422_vm3, %v8703_v19, 0.0  ;;  %v6745_v7 = vunpack.i.h.bf16 %v6743_v54  ;;  %v6744_v12 = vunpack.i.l.bf16 %v6743_v54 }
 0xf83   : > { %v2998_v56 = vsub.f32 %v8644_v11, %v2982_v57  ;;  %7004 = vpow2.f32 %v3025_v49  ;;  %3053 = vadd.xlane.f32.xlu0 %v3052_v53  ;;  %3056 = vadd.xlane.f32.xlu1 %v3055_v52 }
 0xf84   : > { %v8710_v26 = vpop.eup %6996  ;;  %7006 = vpow2.f32 %v3027_v37  ;;  %v2514_v53 = vpack.c.bf16 %v6745_v7, %v6744_v12 }
 0xf85   : > { %v8712_v2 = vpop.eup %6998  ;;  %v3061_v28 = vsel %vm1422_vm3, %v8710_v26, 0.0  ;;  %v3029_v0 = vmul.f32 1.442695, %v2998_v56  ;;  %v6748_v14 = vpop.permute.xlu1 %6747 }
 0xf86   : > { %v3058_v32 = vsel %vm1422_vm3, %v8712_v2, 0.0  ;;  %v6738_v51 = vpop.permute.xlu0 %6737  ;;  %v6750_v37 = vunpack.i.h.bf16 %v6748_v14  ;;  %v6749_v56 = vunpack.i.l.bf16 %v6748_v14 }
 0xf87   : > { %3062 = vadd.xlane.f32.xlu1 %v3061_v28  ;;  %3059 = vadd.xlane.f32.xlu0 %v3058_v32  ;;  %7008 = vpow2.f32 %v3029_v0  ;;  %v6740_v30 = vunpack.i.h.bf16 %v6738_v51  ;;  %v6739_v39 = vunpack.i.l.bf16 %v6738_v51 }
 0xf88   : > { %v8718_v31 = vpop.eup %7000 }
 0xf89   : > { %v8720_v11 = vpop.eup %7002  ;;  %v3064_v5 = vsel %vm1422_vm3, %v8718_v31, 0.0  ;;  %v8742_v15 = vpop.permute.xlu1 %6752  ;;  %v2513_v22 = vpack.c.bf16 %v6740_v30, %v6739_v39 }
 0xf8a   : > { %v3067_v34 = vsel %vm1422_vm3, %v8720_v11, 0.0 }
 0xf8b   : > { %3068 = vadd.xlane.f32.xlu1 %v3067_v34  ;;  %3065 = vadd.xlane.f32.xlu0 %v3064_v5  ;;  %v2515_v34 = vpack.c.bf16 %v6750_v37, %v6749_v56 }
 0xf8d   : > { %v8726_v9 = vpop.eup %7004 }
 0xf8e   : > { %v3070_v36 = vsel %vm1422_vm3, %v8726_v9, 0.0  ;;  %v8730_v40 = vpop.eup %7006 }
 0xf8f   : > { %3071 = vadd.xlane.f32.xlu0 %v3070_v36  ;;  %v3073_v17 = vsel %vm1422_vm3, %v8730_v40, 0.0  ;;  %v6755_v36 = vunpack.i.h.bf16 %v8742_v15 }
 0xf91   : > { %v8734_v42 = vpop.eup %7008 }
 0xf92   : > { %v3076_v46 = vsel %vm1422_vm3, %v8734_v42, 0.0 }
 0xf93   : > { %3074 = vadd.xlane.f32.xlu0 %v3073_v17 }
 0xf97   : > { %3077 = vadd.xlane.f32.xlu0 %v3076_v46 }
 0xf9c   : > { %6757 = vrot.lane.b32.xlu1 %v8522_v61, %s9623_s0 }
 0xfad   : > { %6762 = vrot.lane.b32.xlu0 %v8522_v61, %s9624_s27 }
 0xfb6   : > { %v3036_v21 = vpop.xlane.xlu0 %3035 }
 0xfb7   : > { %7010 = vrcp.f32 %v3036_v21 }
 0xfba   : > { %v3033_v48 = vpop.xlane.xlu1 %3032 }
 0xfbb   : > { %7012 = vrcp.f32 %v3033_v48 }
 0xfc1   : > { %v7011_v25 = vpop.eup %7010 }
 0xfc2   : > { %v3096_v20 = vmul.f32 %v7011_v25, %v8660_v33 }
 0xfc5   : > { %v7013_v38 = vpop.eup %7012 }
 0xfc6   : > { %v3095_v6 = vmul.f32 %v7013_v38, %v8664_v47 }
 0xfc8   : > { %v3111_v50 = vpack.c.bf16 %v3096_v20, %v3095_v6 }
 0xfca   : > { %6200 = vmatmul.mubr.msk.bf16.vlgmr.msra.gmra.mrb[52].mxu0 %vm1422_vm3, %v3111_v50 }
 0xfcb   : > { %6210 = vmatpush3.bf16.msra.mxu0 %v2513_v22  ;;  %6211 = vmatprep.mubr.msk.bf16.mxu0 %vm7485_vm1, %v7480_v60 }
 0xfcc   : > { %6221 = vmatprep.subr.bf16.mxu0 %v7480_v60 }
0x1003   : > { %v3039_v61 = vpop.xlane.xlu1 %3038 }
0x1004   : > { %7014 = vrcp.f32 %v3039_v61 }
0x1007   : > { %v3045_v24 = vpop.xlane.xlu1 %3044  ;;  %v3042_v29 = vpop.xlane.xlu0 %3041 }
0x1008   : > { %7016 = vrcp.f32 %v3042_v29 }
0x1009   : > { %7018 = vrcp.f32 %v3045_v24 }
0x100b   : > { %v3051_v59 = vpop.xlane.xlu1 %3050 }
0x100c   : > { %v3048_v33 = vpop.xlane.xlu0 %3047 }
0x100d   : > { %7020 = vrcp.f32 %v3048_v33 }
0x100e   : > { %7022 = vrcp.f32 %v3051_v59  ;;  %v7015_v3 = vpop.eup %7014 }
0x100f   : > { %v3097_v44 = vmul.f32 %v7015_v3, %v8675_v55 }
0x1010   : > { %v3054_v47 = vpop.xlane.xlu0 %3053  ;;  %v3057_v58 = vpop.xlane.xlu1 %3056 }
0x1011   : > { %7024 = vrcp.f32 %v3054_v47 }
0x1012   : > { %v7017_v4 = vpop.eup %7016  ;;  %7026 = vrcp.f32 %v3057_v58 }
0x1013   : > { %v3098_v16 = vmul.f32 %v7017_v4, %v8683_v63  ;;  %v7019_v35 = vpop.eup %7018 }
0x1014   : > { %v3063_v18 = vpop.xlane.xlu1 %3062  ;;  %v3060_v62 = vpop.xlane.xlu0 %3059  ;;  %v3099_v52 = vmul.f32 %v7019_v35, %v8679_v23  ;;  %v6754_v23 = vunpack.i.l.bf16 %v8742_v15 }
0x1015   : > { %v3112_v49 = vpack.c.bf16 %v3098_v16, %v3097_v44  ;;  %7028 = vrcp.f32 %v3060_v62 }
0x1016   : > { %7030 = vrcp.f32 %v3063_v18  ;;  %v2516_v15 = vpack.c.bf16 %v6755_v36, %v6754_v23 }
0x1017   : > { %v7021_v57 = vpop.eup %7020  ;;  %6206 = vmatmul.mubr.msk.bf16.vlgmr.msra.gmra.mrb[64].mxu1 %vm1422_vm3, %v3112_v49 }
0x1018   : > { %v3100_v28 = vmul.f32 %v7021_v57, %v8693_v27  ;;  %v7023_v0 = vpop.eup %7022  ;;  %v3069_v55 = vpop.xlane.xlu1 %3068  ;;  %6216 = vmatpush3.bf16.msra.mxu1 %v2514_v53  ;;  %6217 = vmatprep.mubr.msk.bf16.mxu1 %vm7485_vm1, %v7480_v60 }
0x1019   : > { %v3066_v63 = vpop.xlane.xlu0 %3065  ;;  %6227 = vmatprep.subr.bf16.mxu1 %v7480_v60  ;;  %v3101_v27 = vmul.f32 %v7023_v0, %v8691_v13 }
0x101a   : > { %v3113_v32 = vpack.c.bf16 %v3100_v28, %v3099_v52  ;;  %7032 = vrcp.f32 %v3066_v63  ;;  %v5728_v63 = vld [vmem:[%s9523_s6 + $0x40] sm:$0xff] }
0x101b   : > { %v7025_v5 = vpop.eup %7024  ;;  %7034 = vrcp.f32 %v3069_v55 }
0x101c   : > { %v3102_v17 = vmul.f32 %v7025_v5, %v8701_v41  ;;  %6212 = vmatmul.mubr.msk.bf16.vlgmr.msra.gmra.mrb[56].mxu0 %vm1422_vm3, %v3113_v32  ;;  %v6758_v54 = vpop.permute.xlu1 %6757  ;;  %v7027_v51 = vpop.eup %7026  ;;  %v5729_v32 = vld [vmem:[%s9523_s6 + $0x48] sm:$0xff] }
0x101d   : > { %v3072_v46 = vpop.xlane.xlu0 %3071  ;;  %6222 = vmatpush3.bf16.msra.mxu0 %v2515_v34  ;;  %6223 = vmatprep.mubr.msk.bf16.mxu0 %vm7485_vm1, %v7480_v60  ;;  %v6760_v21 = vunpack.i.h.bf16 %v6758_v54  ;;  %v6759_v41 = vunpack.i.l.bf16 %v6758_v54  ;;  %v3103_v25 = vmul.f32 %v7027_v51, %v8703_v19  ;;  %v3551_v36 = vpack.c.bf16 %v5729_v32, %v5728_v63  ;;  %v5732_v51 = vld [vmem:[%s9523_s6 + $0x60] sm:$0xff] }
0x101e   : > { %7036 = vrcp.f32 %v3072_v46  ;;  %v3114_v14 = vpack.c.bf16 %v3102_v17, %v3101_v27  ;;  %6233 = vmatprep.subr.bf16.mxu0 %v7480_v60  ;;  %v5730_v27 = vld [vmem:[%s9523_s6 + $0x50] sm:$0xff]  ;;  %v5731_v17 = vld [vmem:[%s9523_s6 + $0x58] sm:$0xff] }
0x101f   : > { %v7029_v13 = vpop.eup %7028  ;;  %v2517_v6 = vpack.c.bf16 %v6760_v21, %v6759_v41  ;;  %v3552_v54 = vpack.c.bf16 %v5731_v17, %v5730_v27 }
0x1020   : > { %6218 = vmatmul.mubr.msk.bf16.vlgmr.msra.gmra.mrb[68].mxu1 %vm1422_vm3, %v3114_v14  ;;  %v3104_v38 = vmul.f32 %v7029_v13, %v8712_v2  ;;  %v7031_v30 = vpop.eup %7030 }
0x1021   : > { %6228 = vmatpush3.bf16.msra.mxu1 %v2516_v15  ;;  %v3075_v48 = vpop.xlane.xlu0 %3074  ;;  %6229 = vmatprep.mubr.msk.bf16.mxu1 %vm7485_vm1, %v7480_v60  ;;  %v3105_v61 = vmul.f32 %v7031_v30, %v8710_v26  ;;  %v5733_v15 = vld [vmem:[%s9523_s6 + $0x68] sm:$0xff] }
0x1022   : > { %6239 = vmatprep.subr.bf16.mxu1 %v7480_v60  ;;  %7038 = vrcp.f32 %v3075_v48  ;;  %v3115_v39 = vpack.c.bf16 %v3104_v38, %v3103_v25  ;;  %v3553_v41 = vpack.c.bf16 %v5733_v15, %v5732_v51  ;;  %v5736_v15 = vld [vmem:[#allocation8 + $0x1] ss:$0 sm:$0xff] }
0x1024   : > { %v7033_v20 = vpop.eup %7032  ;;  %6224 = vmatmul.mubr.msk.bf16.vlgmr.msra.gmra.mrb[60].mxu0 %vm1422_vm3, %v3115_v39 }
0x1025   : > { %v3078_v50 = vpop.xlane.xlu0 %3077  ;;  %v7035_v22 = vpop.eup %7034  ;;  %v3106_v24 = vmul.f32 %v7033_v20, %v8718_v31  ;;  %6234 = vmatpush3.bf16.msra.mxu0 %v2517_v6  ;;  %6235 = vmatprep.mubr.msk.bf16.mxu0 %vm7485_vm1, %v7480_v60  ;;  %v5734_v6 = vld [vmem:[%s9523_s6 + $0x70] sm:$0xff] }
0x1026   : > { %7040 = vrcp.f32 %v3078_v50  ;;  %6245 = vmatprep.subr.bf16.mxu0 %v7480_v60  ;;  %v3107_v29 = vmul.f32 %v7035_v22, %v8720_v11  ;;  %v5735_v50 = vld [vmem:[%s9523_s6 + $0x78] sm:$0xff] }
0x1027   : > { %v3116_v2 = vpack.c.bf16 %v3106_v24, %v3105_v61  ;;  %v3554_v61 = vpack.c.bf16 %v5735_v50, %v5734_v6 }
0x1028   : > { %v7037_v19 = vpop.eup %7036 }
0x1029   : > { %v3108_v59 = vmul.f32 %v7037_v19, %v8726_v9  ;;  %v6763_v33 = vpop.permute.xlu0 %6762  ;;  %6230 = vmatmul.mubr.msk.bf16.vlgmr.msra.gmra.mrb[72].mxu1 %vm1422_vm3, %v3116_v2 }
0x102a   : > { %v6765_v26 = vunpack.i.h.bf16 %v6763_v33  ;;  %v6764_v31 = vunpack.i.l.bf16 %v6763_v33  ;;  %6241 = vmatprep.mubr.msk.bf16.mxu1 %vm7485_vm1, %v7480_v60 }
0x102b   : > { %v3117_v47 = vpack.c.bf16 %v3108_v59, %v3107_v29 }
0x102c   : > { %v2518_v3 = vpack.c.bf16 %v6765_v26, %v6764_v31  ;;  %v7039_v58 = vpop.eup %7038 }
0x102d   : > { %6236 = vmatmul.mubr.msk.bf16.vlgmr.msra.gmra.mrb[64].mxu0 %vm1422_vm3, %v3117_v47  ;;  %v3109_v9 = vmul.f32 %v7039_v58, %v8730_v40 }
0x102e   : > { %6240 = vmatpush3.bf16.msra.mxu1 %v2518_v3  ;;  %6253 = vmatprep.mubr.msk.bf16.mxu0 %vm7485_vm1, %v7480_v60 }
0x102f   : > { %6257 = vmatprep.subr.bf16.mxu1 %v7480_v60  ;;  %6246 = vmatpush3.bf16.msra.mxu0 %v3551_v36 }
0x1030   : > { %v7041_v11 = vpop.eup %7040  ;;  %6247 = vmatprep.subr.bf16.mxu0 %v7480_v60 }
0x1031   : > { %v3110_v4 = vmul.f32 %v7041_v11, %v8734_v42 }
0x1033   : > { %v3118_v7 = vpack.c.bf16 %v3110_v4, %v3109_v9  ;;  %6248 = vmatpush3.bf16.msra.mxu0 %v3552_v54 }
0x1034   : > { %6249 = vmatprep.subr.bf16.mxu0 %v7480_v60 }
0x1035   : > { %6242 = vmatmul.mubr.msk.bf16.vlgmr.msra.gmra.mrb[76].mxu1 %vm1422_vm3, %v3118_v7 }
0x1036   : > { %6265 = vmatprep.mubr.msk.bf16.mxu1 %vm7485_vm1, %v7480_v60 }
0x1037   : > { %6250 = vmatpush3.bf16.msra.mxu0 %v3553_v41 }
0x1038   : > { %6251 = vmatprep.subr.bf16.mxu0 %v7480_v60 }
0x103b   : > { %6252 = vmatpush3.bf16.msra.mxu0 %v3554_v61 }
0x103c   : > { %6269 = vmatprep.subr.bf16.mxu0 %v7480_v60 }
0x109d   : > { %v8792_v12 = vpop.f32.mrb[52].mxu0 }
0x109e   : > { %v6201_v44 = vpop.f32.mrb[53].mxu0 }
0x109f   : > { %v8794_v16 = vpop.f32.mrb[54].mxu0 }
0x10a0   : > { %v6202_v35 = vpop.f32.mrb[55].mxu0 }
0x10ea   : > { %v3200_v18 = vpop.f32.mrb[64].mxu1 }
0x10eb   : > { %v6207_v62 = vpop.f32.mrb[65].mxu1 }
0x10ec   : > { %v3203_v49 = vpop.f32.mrb[66].mxu1 }
0x10ed   : > { %v6766_v57 = vpack.i.bf16 %v3203_v49, %v3200_v18  ;;  %v6208_v53 = vpop.f32.mrb[67].mxu1 }
0x10ef   : > { %v3244_v40 = vpop.f32.mrb[56].mxu0  ;;  %6767 = vrot.lane.b32.xlu1 %v6766_v57, %s9626_s28 }
0x10f0   : > { %v6213_v42 = vpop.f32.mrb[57].mxu0 }
0x10f1   : > { %v3247_v37 = vpop.f32.mrb[58].mxu0 }
0x10f2   : > { %v6771_v56 = vpack.i.bf16 %v3247_v37, %v3244_v40  ;;  %v6214_v52 = vpop.f32.mrb[59].mxu0 }
0x10f3   : > { %v3288_v28 = vpop.f32.mrb[68].mxu1 }
0x10f4   : > { %v6219_v0 = vpop.f32.mrb[69].mxu1  ;;  %6772 = vrot.lane.b32.xlu0 %v6771_v56, %s9627_s25 }
0x10f5   : > { %v3291_v55 = vpop.f32.mrb[70].mxu1 }
0x10f6   : > { %v6776_v5 = vpack.i.bf16 %v3291_v55, %v3288_v28  ;;  %v6220_v34 = vpop.f32.mrb[71].mxu1 }
0x10f7   : > { %v3332_v23 = vpop.f32.mrb[60].mxu0 }
0x10f8   : > { %6777 = vrot.lane.b32.xlu1 %v6776_v5, %s9628_s2  ;;  %v6225_v46 = vpop.f32.mrb[61].mxu0 }
0x10f9   : > { %v3335_v14 = vpop.f32.mrb[62].mxu0 }
0x10fa   : > { %v6781_v13 = vpack.i.bf16 %v3335_v14, %v3332_v23  ;;  %v6226_v21 = vpop.f32.mrb[63].mxu0 }
0x10fc   : > { %v3376_v48 = vpop.f32.mrb[72].mxu1  ;;  %6782 = vrot.lane.b32.xlu0 %v6781_v13, %s9629_s30 }
0x10fd   : > { %v6231_v25 = vpop.f32.mrb[73].mxu1 }
0x10fe   : > { %v3379_v38 = vpop.f32.mrb[74].mxu1 }
0x10ff   : > { %v6786_v30 = vpack.i.bf16 %v3379_v38, %v3376_v48  ;;  %v6232_v39 = vpop.f32.mrb[75].mxu1 }
0x1100   : > { %v3420_v20 = vpop.f32.mrb[64].mxu0 }
0x1101   : > { %6787 = vrot.lane.b32.xlu1 %v6786_v30, %s9630_s23  ;;  %v6237_v22 = vpop.f32.mrb[65].mxu0 }
0x1102   : > { %v3423_v24 = vpop.f32.mrb[66].mxu0 }
0x1103   : > { %v6791_v19 = vpack.i.bf16 %v3423_v24, %v3420_v20  ;;  %v6238_v2 = vpop.f32.mrb[67].mxu0 }
0x1105   : > { %6792 = vrot.lane.b32.xlu0 %v6791_v19, %s9631_s26 }
0x1108   : > { %v3464_v29 = vpop.f32.mrb[76].mxu1 }
0x1109   : > { %v6243_v59 = vpop.f32.mrb[77].mxu1 }
0x110a   : > { %v3467_v33 = vpop.f32.mrb[78].mxu1 }
0x110b   : > { %v6796_v26 = vpack.i.bf16 %v3467_v33, %v3464_v29  ;;  %v6244_v31 = vpop.f32.mrb[79].mxu1  ;;  %v5740_v33 = vld [vmem:[%s9527_s10 + $0x40] sm:$0xff] }
0x110d   : > { %6797 = vrot.lane.b32.xlu1 %v6796_v26, %s9632_s3  ;;  %v5741_v26 = vld [vmem:[%s9527_s10 + $0x48] sm:$0xff] }
0x110e   : > { %v3665_v31 = vpack.c.bf16 %v5741_v26, %v5740_v33 }
0x1110   : > { %6258 = vmatpush3.bf16.msra.mxu1 %v3665_v31  ;;  %v5766_v31 = vld [vmem:[#allocation14 + $0x1] ss:$0 sm:$0xff] }
0x1111   : > { %6259 = vmatprep.subr.bf16.mxu1 %v7480_v60 }
0x1161   : > { %v6768_v47 = vpop.permute.xlu1 %6767 }
0x1162   : > { %v6770_v9 = vunpack.i.h.bf16 %v6768_v47  ;;  %v6769_v4 = vunpack.i.l.bf16 %v6768_v47  ;;  %v5742_v47 = vld [vmem:[%s9527_s10 + $0x50] sm:$0xff] }
0x1164   : > { %v3527_v40 = vsel %vm1008_vm2, %v8792_v12, %v6769_v4  ;;  %v3528_v42 = vsel %vm1008_vm2, %v8794_v16, %v6770_v9  ;;  %v5745_v9 = vld [vmem:[%s9527_s10 + $0x68] sm:$0xff] }
0x1166   : > { %v6773_v3 = vpop.permute.xlu0 %6772 }
0x1167   : > { %v6775_v7 = vunpack.i.h.bf16 %v6773_v3  ;;  %v6774_v44 = vunpack.i.l.bf16 %v6773_v3  ;;  %v5743_v3 = vld [vmem:[%s9527_s10 + $0x58] sm:$0xff] }
0x1169   : > { %v3530_v52 = vsel %vm1422_vm3, %v3528_v42, %v6775_v7  ;;  %v3529_v28 = vsel %vm1422_vm3, %v3527_v40, %v6774_v44  ;;  %v5746_v7 = vld [vmem:[%s9527_s10 + $0x70] sm:$0xff]  ;;  %v5747_v44 = vld [vmem:[%s9527_s10 + $0x78] sm:$0xff]  ;;  %v5754_v42 = vld [vmem:[%s9529_s12 + $0xa0] sm:$0xff] }
0x116a   : > { %v6778_v58 = vpop.permute.xlu1 %6777 }
0x116b   : > { %v6780_v18 = vunpack.i.h.bf16 %v6778_v58  ;;  %v6779_v62 = vunpack.i.l.bf16 %v6778_v58  ;;  %v3666_v58 = vpack.c.bf16 %v5743_v3, %v5742_v47 }
0x116d   : > { %v3531_v63 = vsel %vm2019_vm4, %v3529_v28, %v6779_v62  ;;  %v3532_v32 = vsel %vm2019_vm4, %v3530_v52, %v6780_v18  ;;  %6260 = vmatpush3.bf16.msra.mxu1 %v3666_v58  ;;  %v5750_v18 = vld [vmem:[%s9529_s12 + $0x80] sm:$0xff]  ;;  %v5751_v62 = vld [vmem:[%s9529_s12 + $0x88] sm:$0xff]  ;;  %v5756_v52 = vld [vmem:[%s9529_s12 + $0xb0] sm:$0xff] }
0x116e   : > { %v6783_v11 = vpop.permute.xlu0 %6782  ;;  %6261 = vmatprep.subr.bf16.mxu1 %v7480_v60  ;;  %v5757_v28 = vld [vmem:[%s9529_s12 + $0xb8] sm:$0xff] }
0x116f   : > { %v6785_v57 = vunpack.i.h.bf16 %v6783_v11  ;;  %v6784_v53 = vunpack.i.l.bf16 %v6783_v11  ;;  %v5744_v11 = vld [vmem:[%s9527_s10 + $0x60] sm:$0xff] }
0x1170   : > { %v3667_v4 = vpack.c.bf16 %v5745_v9, %v5744_v11 }
0x1171   : > { %v3534_v5 = vsel %vm2022_vm5, %v3532_v32, %v6785_v57  ;;  %v3533_v34 = vsel %vm2022_vm5, %v3531_v63, %v6784_v53  ;;  %v3741_v57 = vpack.c.bf16 %v5751_v62, %v5750_v18  ;;  %v5753_v53 = vld [vmem:[%s9529_s12 + $0x98] sm:$0xff]  ;;  %v5759_v63 = vld [vmem:[%s9529_s12 + $0xc8] sm:$0xff] }
0x1172   : > { %6262 = vmatpush3.bf16.msra.mxu1 %v3667_v4 }
0x1173   : > { %v6788_v35 = vpop.permute.xlu1 %6787  ;;  %6263 = vmatprep.subr.bf16.mxu1 %v7480_v60 }
0x1174   : > { %v6790_v37 = vunpack.i.h.bf16 %v6788_v35  ;;  %v6789_v56 = vunpack.i.l.bf16 %v6788_v35  ;;  %v3668_v35 = vpack.c.bf16 %v5747_v44, %v5746_v7 }
0x1176   : > { %v3535_v36 = vsel %vm2025_vm6, %v3533_v34, %v6789_v56  ;;  %v3536_v16 = vsel %vm2025_vm6, %v3534_v5, %v6790_v37  ;;  %6264 = vmatpush3.bf16.msra.mxu1 %v3668_v35  ;;  %v5755_v37 = vld [vmem:[%s9529_s12 + $0xa8] sm:$0xff]  ;;  %v5760_v5 = vld [vmem:[%s9529_s12 + $0xd0] sm:$0xff]  ;;  %v5761_v34 = vld [vmem:[%s9529_s12 + $0xd8] sm:$0xff] }
0x1177   : > { %v6793_v49 = vpop.permute.xlu0 %6792  ;;  %v3743_v56 = vpack.c.bf16 %v5755_v37, %v5754_v42 }
0x1178   : > { %v6795_v0 = vunpack.i.h.bf16 %v6793_v49  ;;  %v6794_v55 = vunpack.i.l.bf16 %v6793_v49  ;;  %v5752_v49 = vld [vmem:[%s9529_s12 + $0x90] sm:$0xff] }
0x1179   : > { %v3742_v40 = vpack.c.bf16 %v5753_v53, %v5752_v49 }
0x117a   : > { %v3538_v17 = vsel %vm2028_vm7, %v3536_v16, %v6795_v0  ;;  %v3537_v46 = vsel %vm2028_vm7, %v3535_v36, %v6794_v55  ;;  %v3744_v0 = vpack.c.bf16 %v5757_v28, %v5756_v52  ;;  %v5758_v55 = vld [vmem:[%s9529_s12 + $0xc0] sm:$0xff] }
0x117b   : > { %v3745_v32 = vpack.c.bf16 %v5759_v63, %v5758_v55  ;;  %v5772_v55 = vld [vmem:[%s9621_s7 + $0x118] sm:$0xff] }
0x117f   : > { %v6798_v12 = vpop.permute.xlu1 %6797 }
0x1180   : > { %v6800_v23 = vunpack.i.h.bf16 %v6798_v12  ;;  %v6799_v27 = vunpack.i.l.bf16 %v6798_v12  ;;  %v3746_v12 = vpack.c.bf16 %v5761_v34, %v5760_v5  ;;  %v5771_v5 = vld [vmem:[%s9621_s7 + $0x110] sm:$0xff] }
0x1182   : > { %v3539_v54 = vsel %vm2031_vm8, %v3537_v46, %v6799_v27  ;;  %v3540_v14 = vsel %vm2031_vm8, %v3538_v17, %v6800_v23 }
0x1183   : > { %v3550_v51 = vpack.c.bf16 %v3540_v14, %v3539_v54 }
0x1185   : > { %6254 = vmatmul.mubr.msk.bf16.vlgmr.msra.gmra.mrb[68].mxu0 %vm854_vm0, %v3550_v51  ;;  %v5738_v51 = vld [vmem:[#allocation10 + $0x1] ss:$0 sm:$0xff] }
0x1186   : > { %6285 = vmatprep.mubr.msk.bf16.mxu0 %vm7485_vm1, %v7480_v60  ;;  %6270 = vmatpush3.bf16.msra.mxu0 %v3741_v57 }
0x1187   : > { %6271 = vmatprep.subr.bf16.mxu0 %v7480_v60 }
0x118a   : > { %6272 = vmatpush3.bf16.msra.mxu0 %v3742_v40 }
0x118b   : > { %6273 = vmatprep.subr.bf16.mxu0 %v7480_v60 }
0x118e   : > { %6274 = vmatpush3.bf16.msra.mxu0 %v3743_v56 }
0x118f   : > { %6275 = vmatprep.subr.bf16.mxu0 %v7480_v60 }
0x1192   : > { %6276 = vmatpush3.bf16.msra.mxu0 %v3744_v0  ;;  %v5770_v0 = vld [vmem:[%s9621_s7 + $0x108] sm:$0xff] }
0x1193   : > { %6277 = vmatprep.subr.bf16.mxu0 %v7480_v60  ;;  %v3865_v63 = vpack.c.bf16 %v5772_v55, %v5770_v0 }
0x1195   : > { %3888 = vmatprep.subr.bf16.mxu1 %v3865_v63 }
0x1196   : > { %6278 = vmatpush3.bf16.msra.mxu0 %v3745_v32  ;;  %v5769_v32 = vld [vmem:[%s9621_s7 + $0x100] sm:$0xff] }
0x1197   : > { %6279 = vmatprep.subr.bf16.mxu0 %v7480_v60  ;;  %v3864_v34 = vpack.c.bf16 %v5771_v5, %v5769_v32 }
0x119a   : > { %6280 = vmatpush3.bf16.msra.mxu0 %v3746_v12  ;;  %v5774_v12 = vld [vmem:[%s9621_s7 + $0x128] sm:$0xff] }
0x119b   : > { %6281 = vmatprep.subr.bf16.mxu0 %v7480_v60 }
0x1258   : > { %v3600_v13 = vpop.f32.mrb[68].mxu0 }
0x1259   : > { %v3601_v21 = vadd.f32 %v5736_v15, %v3600_v13  ;;  %v6255_v41 = vpop.f32.mrb[69].mxu0 }
0x125a   : > { %v3603_v48 = vpop.f32.mrb[70].mxu0  ;;  %v5739_v41 = vld [vmem:[#allocation11 + $0x1] ss:$0 sm:$0xff] }
0x125b   : > { %v3607_v25 = vadd.f32 %v3601_v21, %v8503_v8  ;;  %v3604_v38 = vadd.f32 %v5736_v15, %v3603_v48  ;;  %v6256_v30 = vpop.f32.mrb[71].mxu0 }
0x125d   : > { %v3608_v39 = vadd.f32 %v3604_v38, %v8505_v10  ;;  %v3613_v20 = vsel %vm854_vm0, %v3607_v25, 0.0 }
0x125e   : > { %3614 = vadd.xlane.f32.xlu0 %v3613_v20  ;;  %v5763_v20 = vld [vmem:[%s9529_s12 + $0xe8] sm:$0xff] }
0x125f   : > { %v3616_v6 = vsel %vm854_vm0, %v3608_v39, 0.0 }
0x1260   : > { %3617 = vadd.xlane.f32.xlu1 %v3616_v6 }
0x12eb   : > { %v3615_v50 = vpop.xlane.xlu0 %3614 }
0x12ec   : > { %v3619_v22 = vmul.f32 0.015625, %v3615_v50  ;;  %v5764_v50 = vld [vmem:[%s9529_s12 + $0xf0] sm:$0xff] }
0x12ed   : > { %v3618_v61 = vpop.xlane.xlu1 %3617 }
0x12ee   : > { %v8854_v24 = vsub.f32 %v3607_v25, %v3619_v22  ;;  %v3620_v19 = vmul.f32 0.015625, %v3618_v61  ;;  %v5748_v61 = vld [vmem:[#allocation13 + $0x1] ss:$0 sm:$0xff] }
0x12f0   : > { %v8856_v2 = vsub.f32 %v3608_v39, %v3620_v19  ;;  %v3623_v8 = vmul.f32 %v8854_v24, %v8854_v24  ;;  %v5762_v39 = vld [vmem:[%s9529_s12 + $0xe0] sm:$0xff] }
0x12f1   : > { %v3747_v6 = vpack.c.bf16 %v5763_v20, %v5762_v39 }
0x12f2   : > { %v3625_v29 = vsel %vm854_vm0, %v3623_v8, 0.0  ;;  %v3624_v10 = vmul.f32 %v8856_v2, %v8856_v2 }
0x12f3   : > { %3626 = vadd.xlane.f32.xlu0 %v3625_v29  ;;  %6282 = vmatpush3.bf16.msra.mxu0 %v3747_v6 }
0x12f4   : > { %v3628_v59 = vsel %vm854_vm0, %v3624_v10, 0.0  ;;  %6283 = vmatprep.subr.bf16.mxu0 %v7480_v60 }
0x12f7   : > { %3629 = vadd.xlane.f32.xlu0 %v3628_v59 }
0x1380   : > { %v3627_v36 = vpop.xlane.xlu0 %3626 }
0x1381   : > { %v3631_v16 = vmul.f32 0.015625, %v3627_v36  ;;  %v5776_v36 = vld [vmem:[%s9621_s7 + $0x138] sm:$0xff] }
0x1383   : > { %v3633_v23 = vadd.f32 1e-05, %v3631_v16  ;;  %v3867_v16 = vpack.c.bf16 %v5776_v36, %v5774_v12 }
0x1384   : > { %v3630_v27 = vpop.xlane.xlu0 %3629 }
0x1385   : > { %7042 = vrsqrt.f32 %v3633_v23  ;;  %v3632_v17 = vmul.f32 0.015625, %v3630_v27  ;;  %v5773_v23 = vld [vmem:[%s9621_s7 + $0x120] sm:$0xff]  ;;  %v5775_v27 = vld [vmem:[%s9621_s7 + $0x130] sm:$0xff] }
0x1387   : > { %v3634_v46 = vadd.f32 1e-05, %v3632_v17  ;;  %v3866_v17 = vpack.c.bf16 %v5775_v27, %v5773_v23 }
0x1389   : > { %7044 = vrsqrt.f32 %v3634_v46  ;;  %v5778_v46 = vld [vmem:[%s9621_s7 + $0x148] sm:$0xff] }
0x138f   : > { %v7043_v54 = vpop.eup %7042 }
0x1390   : > { %v3637_v14 = vmul.f32 %v7043_v54, %v8854_v24  ;;  %v5780_v54 = vld [vmem:[%s9621_s7 + $0x158] sm:$0xff] }
0x1392   : > { %v3645_v13 = vmul.f32 %v5738_v51, %v3637_v14  ;;  %v3869_v14 = vpack.c.bf16 %v5780_v54, %v5778_v46 }
0x1393   : > { %v7045_v15 = vpop.eup %7044 }
0x1394   : > { %v3638_v21 = vmul.f32 %v7045_v15, %v8856_v2  ;;  %v3653_v25 = vadd.f32 %v5739_v41, %v3645_v13  ;;  %v5779_v15 = vld [vmem:[%s9621_s7 + $0x150] sm:$0xff] }
0x1396   : > { %v3646_v48 = vmul.f32 %v5738_v51, %v3638_v21  ;;  %v5777_v51 = vld [vmem:[%s9621_s7 + $0x140] sm:$0xff]  ;;  %v5782_v21 = vld [vmem:[%s9621_s7 + $0x168] sm:$0xff] }
0x1397   : > { %v3868_v13 = vpack.c.bf16 %v5779_v15, %v5777_v51 }
0x1398   : > { %v3654_v38 = vadd.f32 %v5739_v41, %v3646_v48  ;;  %v5784_v41 = vld [vmem:[%s9621_s7 + $0x178] sm:$0xff]  ;;  %v5781_v48 = vld [vmem:[%s9621_s7 + $0x160] sm:$0xff] }
0x139a   : > { %v3664_v30 = vpack.c.bf16 %v3654_v38, %v3653_v25 }
0x139c   : > { %6266 = vmatmul.mubr.msk.bf16.vlgmr.msra.gmra.mrb[80].mxu1 %vm854_vm0, %v3664_v30 }
0x139d   : > { %3920 = vmatprep.mubr.bf16.mxu1 %v7477_v1  ;;  %v5765_v1 = vld [vmem:[%s9529_s12 + $0xf8] sm:$0xff]  ;;  %3889 = vmatpush1.bf16.msra.mxu1 %v3864_v34 }
0x139e   : > { %v3748_v22 = vpack.c.bf16 %v5765_v1, %v5764_v50  ;;  %3890 = vmatprep.subr.bf16.mxu1 %v3867_v16 }
0x13a0   : > { %6284 = vmatpush3.bf16.msra.mxu0 %v3748_v22 }
0x13a1   : > { %6301 = vmatprep.subr.bf16.mxu0 %v7480_v60  ;;  %3891 = vmatpush1.bf16.msra.mxu1 %v3866_v17 }
0x13a2   : > { %3892 = vmatprep.subr.bf16.mxu1 %v3869_v14 }
0x13a5   : > { %3893 = vmatpush1.bf16.msra.mxu1 %v3868_v13 }
0x146f   : > { %v3714_v24 = vpop.f32.mrb[80].mxu1 }
0x1470   : > { %v3715_v19 = vadd.f32 %v5748_v61, %v3714_v24  ;;  %v6267_v2 = vpop.f32.mrb[81].mxu1  ;;  %v5767_v24 = vld [vmem:[#allocation16 + $0x1] ss:$0 sm:$0xff] }
0x1471   : > { %v3717_v8 = vpop.f32.mrb[82].mxu1 }
0x1472   : > { %v3718_v29 = vadd.f32 %v5748_v61, %v3717_v8  ;;  %v6268_v10 = vpop.f32.mrb[83].mxu1  ;;  %v3721_v59 = vmax.f32 %v3715_v19, 0.0 }
0x1473   : > { %v5768_v10 = vld [vmem:[#allocation17 + $0x1] ss:$0 sm:$0xff] }
0x1474   : > { %v3722_v33 = vmax.f32 %v3718_v29, 0.0 }
0x1476   : > { %v3740_v26 = vpack.c.bf16 %v3722_v33, %v3721_v59 }
0x1478   : > { %6286 = vmatmul.mubr.bf16.vlgmr.msra.gmra.mrb[72].mxu0 %v3740_v26 }
0x1479   : > { %6303 = vmatprep.mubr.msk.bf16.mxu0 %vm7485_vm1, %v7480_v60 }
0x154b   : > { %v3791_v47 = vpop.f32.mrb[72].mxu0 }
0x154c   : > { %v3792_v3 = vadd.f32 %v5766_v31, %v3791_v47  ;;  %v6287_v58 = vpop.f32.mrb[73].mxu0  ;;  %v3873_v47 = vld [vmem:[#allocation7 + $0x4] sm:$0x3] }
0x154d   : > { %v3794_v11 = vpop.f32.mrb[74].mxu0 }
0x154e   : > { %v3798_v9 = vadd.f32 %v3792_v3, %v3653_v25  ;;  %v3795_v4 = vadd.f32 %v5766_v31, %v3794_v11  ;;  %v6288_v7 = vpop.f32.mrb[75].mxu0  ;;  %v3871_v25 = vpack.c.bf16 %v5784_v41, %v5782_v21  ;;  %v3878_v3 = vrot.slane %v3873_v47, %v7991_v43 }
0x154f   : > { %v3882_v11 = vrot.slane %v3873_v47, %v7993_v45 }
0x1550   : > { %v3799_v44 = vadd.f32 %v3795_v4, %v3654_v38  ;;  %v3804_v35 = vsel %vm854_vm0, %v3798_v9, 0.0  ;;  %v5783_v38 = vld [vmem:[%s9621_s7 + $0x170] sm:$0xff]  ;;  %3894 = vmatprep.subr.bf16.mxu1 %v3871_v25 }
0x1551   : > { %3805 = vadd.xlane.f32.xlu1 %v3804_v35  ;;  %v3870_v30 = vpack.c.bf16 %v5783_v38, %v5781_v48 }
0x1552   : > { %v3807_v18 = vsel %vm854_vm0, %v3799_v44, 0.0 }
0x1553   : > { %3808 = vadd.xlane.f32.xlu0 %v3807_v18  ;;  %3895 = vmatpush1.bf16.msra.mxu1 %v3870_v30 }
0x1554   : > { %6289 = vmatprep.subr.bf16.mxu1 %v7480_v60 }
0x15de   : > { %v3806_v62 = vpop.xlane.xlu1 %3805 }
0x15df   : > { %v3810_v49 = vmul.f32 0.015625, %v3806_v62 }
0x15e0   : > { %v3809_v57 = vpop.xlane.xlu0 %3808 }
0x15e1   : > { %v3812_v53 = vsub.f32 %v3798_v9, %v3810_v49  ;;  %v3811_v40 = vmul.f32 0.015625, %v3809_v57 }
0x15e3   : > { %v3813_v42 = vsub.f32 %v3799_v44, %v3811_v40  ;;  %v3814_v37 = vmul.f32 %v3812_v53, %v3812_v53 }
0x15e5   : > { %v3816_v56 = vsel %vm854_vm0, %v3814_v37, 0.0  ;;  %v3815_v52 = vmul.f32 %v3813_v42, %v3813_v42 }
0x15e6   : > { %3817 = vadd.xlane.f32.xlu1 %v3816_v56 }
0x15e7   : > { %v3819_v28 = vsel %vm854_vm0, %v3815_v52, 0.0 }
0x15e8   : > { %3820 = vadd.xlane.f32.xlu0 %v3819_v28 }
0x1673   : > { %v3818_v39 = vpop.xlane.xlu1 %3817 }
0x1674   : > { %v3822_v20 = vmul.f32 0.015625, %v3818_v39 }
0x1675   : > { %v3821_v6 = vpop.xlane.xlu0 %3820 }
0x1676   : > { %v3824_v50 = vadd.f32 1e-05, %v3822_v20  ;;  %v3823_v1 = vmul.f32 0.015625, %v3821_v6 }
0x1678   : > { %7046 = vrsqrt.f32 %v3824_v50  ;;  %v3825_v22 = vadd.f32 1e-05, %v3823_v1 }
0x167a   : > { %7048 = vrsqrt.f32 %v3825_v22 }
0x1682   : > { %v7047_v61 = vpop.eup %7046 }
0x1683   : > { %v3828_v19 = vmul.f32 %v7047_v61, %v3812_v53 }
0x1684   : > { %v7049_v2 = vpop.eup %7048 }
0x1685   : > { %v3836_v8 = vmul.f32 %v5767_v24, %v3828_v19  ;;  %v3829_v29 = vmul.f32 %v7049_v2, %v3813_v42 }
0x1687   : > { %v3837_v59 = vmul.f32 %v5767_v24, %v3829_v29  ;;  %v9006_v33 = vadd.f32 %v5768_v10, %v3836_v8 }
0x1689   : > { %v9008_v26 = vadd.f32 %v5768_v10, %v3837_v59 }
0x168b   : > { %v3863_v31 = vpack.c.bf16 %v9008_v26, %v9006_v33 }
0x168d   : > { %5785 = vmatmul.mubr.msk.bf16.vlgmr.msra.gmra.mrb[84].mxu1 %vm854_vm0, %v3863_v31 }
0x168e   : > { %6291 = vmatprep.mubr.msk.bf16.mxu1 %vm7485_vm1, %v7480_v60 }
0x1760   : > { %v3922_v58 = vpop.f32.mrb[84].mxu1 }
0x1761   : > { %v3924_v9 = vpop.f32.mrb[85].mxu1  ;;  %v3923_v7 = vadd.f32 %v3922_v58, %v3878_v3 }
0x1762   : > { %v3926_v4 = vpop.f32.mrb[86].mxu1  ;;  %v9017_v18 = vadd.f32 %v3924_v9, %v3882_v11 }
0x1763   : > { %v3927_v44 = vadd.f32 %v3926_v4, %v3878_v3  ;;  %v3928_v35 = vpop.f32.mrb[87].mxu1 }
0x1764   : > { %v9019_v62 = vadd.f32 %v3928_v35, %v3882_v11 }
0x1765   : > { %v6806_v49 = vpack.i.bf16 %v3927_v44, %v3923_v7  ;;  %v3975_v57 = vpack.c.bf16 %v3927_v44, %v3923_v7 }
0x1766   : > { %v9025_v43 = vpack.i.bf16 %v9019_v62, %v9017_v18  ;;  %v4027_v45 = vpack.c.bf16 %v9019_v62, %v9017_v18 }
0x1767   : > { %6807 = vrot.lane.b32.xlu0 %v6806_v49, %s9633_s22  ;;  %6802 = vrot.lane.b32.xlu1 %v6806_v49, %s9634_s5 }
0x176b   : > { %6822 = vrot.lane.b32.xlu0 %v6806_v49, %s9635_s8  ;;  %6812 = vrot.lane.b32.xlu1 %v6806_v49, %s9636_s20 }
0x176f   : > { %6832 = vrot.lane.b32.xlu0 %v6806_v49, %s9624_s27  ;;  %6817 = vrot.lane.b32.xlu1 %v6806_v49, %s9637_s24 }
0x1773   : > { %6827 = vrot.lane.b32.xlu1 %v6806_v49, %s9623_s0 }
0x1777   : > { %4036 = vrot.lane.b32.xlu1 %v3975_v57, %s9625_s29 }
0x17d9   : > { %v6808_v53 = vpop.permute.xlu0 %6807  ;;  %v6803_v40 = vpop.permute.xlu1 %6802 }
0x17da   : > { %v6810_v42 = vunpack.i.h.bf16 %v6808_v53  ;;  %v6809_v37 = vunpack.i.l.bf16 %v6808_v53  ;;  %v6805_v56 = vunpack.i.h.bf16 %v6803_v40  ;;  %v6804_v52 = vunpack.i.l.bf16 %v6803_v40 }
0x17dc   : > { %v3977_v28 = vpack.c.bf16 %v6810_v42, %v6809_v37  ;;  %v3976_v0 = vpack.c.bf16 %v6805_v56, %v6804_v52 }
0x17dd   : > { %v6823_v55 = vpop.permute.xlu0 %6822  ;;  %v6813_v63 = vpop.permute.xlu1 %6812 }
0x17de   : > { %v6815_v32 = vunpack.i.h.bf16 %v6813_v63  ;;  %v6814_v5 = vunpack.i.l.bf16 %v6813_v63  ;;  %4086 = vrot.lane.b32.xlu0 %v3976_v0, %s9625_s29  ;;  %4136 = vrot.lane.b32.xlu1 %v3977_v28, %s9625_s29  ;;  %v6825_v34 = vunpack.i.h.bf16 %v6823_v55  ;;  %v6824_v12 = vunpack.i.l.bf16 %v6823_v55 }
0x17e0   : > { %v3978_v36 = vpack.c.bf16 %v6815_v32, %v6814_v5  ;;  %v3980_v46 = vpack.c.bf16 %v6825_v34, %v6824_v12 }
0x17e1   : > { %v6833_v16 = vpop.permute.xlu0 %6832  ;;  %v6818_v23 = vpop.permute.xlu1 %6817 }
0x17e2   : > { %v6820_v27 = vunpack.i.h.bf16 %v6818_v23  ;;  %v6819_v17 = vunpack.i.l.bf16 %v6818_v23  ;;  %4186 = vrot.lane.b32.xlu0 %v3978_v36, %s9625_s29  ;;  %v6835_v54 = vunpack.i.h.bf16 %v6833_v16  ;;  %v6834_v14 = vunpack.i.l.bf16 %v6833_v16 }
0x17e4   : > { %v3979_v51 = vpack.c.bf16 %v6820_v27, %v6819_v17  ;;  %v3982_v41 = vpack.c.bf16 %v6835_v54, %v6834_v14 }
0x17e5   : > { %v6828_v15 = vpop.permute.xlu1 %6827 }
0x17e6   : > { %v6830_v13 = vunpack.i.h.bf16 %v6828_v15  ;;  %v6829_v21 = vunpack.i.l.bf16 %v6828_v15  ;;  %4286 = vrot.lane.b32.xlu0 %v3980_v46, %s9625_s29  ;;  %4236 = vrot.lane.b32.xlu1 %v3979_v51, %s9625_s29 }
0x17e8   : > { %v3981_v48 = vpack.c.bf16 %v6830_v13, %v6829_v21 }
0x17e9   : > { %v4037_v25 = vpop.permute.xlu1 %4036 }
0x17ea   : > { %v4042_v38 = vsel %vm1008_vm2, %v4037_v25, 0  ;;  %4386 = vrot.lane.b32.xlu0 %v3982_v41, %s9625_s29  ;;  %4336 = vrot.lane.b32.xlu1 %v3981_v48, %s9625_s29  ;;  %s9638_s29 = sld [smem:[#allocation37_spill]] }
0x17eb   : > { %6290 = vmatpush3.bf16.xpose.msra.mxu1 %v4042_v38 }
0x17ec   : > { %6295 = vmatprep.subr.bf16.mxu1 %v7480_v60 }
0x17ee   : > { %6837 = vrot.lane.b32.xlu0 %v9025_v43, %s9634_s5  ;;  %6842 = vrot.lane.b32.xlu1 %v9025_v43, %s9633_s22  ;;  %s9639_s22 = sld [smem:[#allocation38_spill]] }
0x17f2   : > { %6292 = vmatmul.mubr.msk.bf16.vlgmr.msra.gmra.mrb[88].mxu1 %vm1008_vm2, %v3975_v57 }
0x17f3   : > { %6297 = vmatprep.mubr.msk.bf16.mxu1 %vm7485_vm1, %v7480_v60 }
0x17f4   : > { %s781_s5 = scalar_lea.vmem %s9639_s22, %s9642_s19 }
0x1850   : > { %v4087_v30 = vpop.permute.xlu0 %4086  ;;  %v4137_v39 = vpop.permute.xlu1 %4136 }
0x1851   : > { %v4092_v20 = vsel %vm1008_vm2, %v4087_v30, 0  ;;  %v4142_v6 = vsel %vm1008_vm2, %v4137_v39, 0 }
0x1852   : > { %6296 = vmatpush3.bf16.xpose.msra.mxu1 %v4092_v20  ;;  %6302 = vmatpush3.bf16.xpose.msra.mxu0 %v4142_v6 }
0x1853   : > { %6307 = vmatprep.subr.bf16.mxu1 %v7480_v60  ;;  %6313 = vmatprep.subr.bf16.mxu0 %v7480_v60 }
0x1854   : > { %v4187_v50 = vpop.permute.xlu0 %4186 }
0x1855   : > { %v4192_v22 = vsel %vm1008_vm2, %v4187_v50, 0 }
0x1858   : > { %v4237_v1 = vpop.permute.xlu1 %4236  ;;  %v4287_v24 = vpop.permute.xlu0 %4286 }
0x1859   : > { %v4242_v61 = vsel %vm1008_vm2, %v4237_v1, 0  ;;  %6298 = vmatmul.mubr.msk.bf16.vlgmr.msra.gmra.mrb[92].mxu1 %vm1008_vm2, %v3976_v0  ;;  %6304 = vmatmul.mubr.msk.bf16.vlgmr.msra.gmra.mrb[76].mxu0 %vm1008_vm2, %v3977_v28  ;;  %v4292_v2 = vsel %vm1008_vm2, %v4287_v24, 0 }
0x185a   : > { %6308 = vmatpush3.bf16.xpose.msra.mxu1 %v4192_v22  ;;  %6314 = vmatpush3.bf16.xpose.msra.mxu0 %v4242_v61 }
0x185b   : > { %6309 = vmatprep.mubr.msk.bf16.mxu1 %vm7485_vm1, %v7480_v60  ;;  %6315 = vmatprep.mubr.msk.bf16.mxu0 %vm7485_vm1, %v7480_v60 }
0x185c   : > { %6319 = vmatprep.subr.bf16.mxu1 %v7480_v60  ;;  %6325 = vmatprep.subr.bf16.mxu0 %v7480_v60  ;;  %v4337_v19 = vpop.permute.xlu1 %4336  ;;  %v4387_v29 = vpop.permute.xlu0 %4386 }
0x185d   : > { %v4342_v8 = vsel %vm1008_vm2, %v4337_v19, 0  ;;  %v4392_v10 = vsel %vm1008_vm2, %v4387_v29, 0 }
0x1860   : > { %v6838_v59 = vpop.permute.xlu0 %6837 }
0x1861   : > { %6310 = vmatmul.mubr.msk.bf16.vlgmr.msra.gmra.mrb[96].mxu1 %vm1008_vm2, %v3978_v36  ;;  %6316 = vmatmul.mubr.msk.bf16.vlgmr.msra.gmra.mrb[80].mxu0 %vm1008_vm2, %v3979_v51  ;;  %v6840_v31 = vunpack.i.h.bf16 %v6838_v59  ;;  %v6839_v47 = vunpack.i.l.bf16 %v6838_v59 }
0x1862   : > { %6320 = vmatpush3.bf16.xpose.msra.mxu1 %v4292_v2  ;;  %6326 = vmatpush3.bf16.xpose.msra.mxu0 %v4342_v8 }
0x1863   : > { %6321 = vmatprep.mubr.msk.bf16.mxu1 %vm7485_vm1, %v7480_v60  ;;  %6327 = vmatprep.mubr.msk.bf16.mxu0 %vm7485_vm1, %v7480_v60  ;;  %v4028_v3 = vpack.c.bf16 %v6840_v31, %v6839_v47 }
0x1864   : > { %6331 = vmatprep.subr.bf16.mxu1 %v7480_v60  ;;  %6337 = vmatprep.subr.bf16.mxu0 %v7480_v60 }
0x1869   : > { %6322 = vmatmul.mubr.msk.bf16.vlgmr.msra.gmra.mrb[100].mxu1 %vm1008_vm2, %v3980_v46  ;;  %6328 = vmatmul.mubr.msk.bf16.vlgmr.msra.gmra.mrb[84].mxu0 %vm1008_vm2, %v3981_v48 }
0x186a   : > { %6332 = vmatpush3.bf16.xpose.msra.mxu1 %v4392_v10  ;;  %6338 = vmatpush3.bf16.msra.mxu0 %v4027_v45 }
0x186b   : > { %6333 = vmatprep.mubr.msk.bf16.mxu1 %vm7485_vm1, %v7480_v60  ;;  %6343 = vmatprep.subr.bf16.mxu1 %v7480_v60 }
0x186c   : > { %6339 = vmatprep.mubr.msk.bf16.mxu0 %vm7485_vm1, %v7480_v60  ;;  %6349 = vmatprep.subr.bf16.mxu0 %v7480_v60 }
0x1871   : > { %6334 = vmatmul.mubr.msk.bf16.vlgmr.msra.gmra.mrb[104].mxu1 %vm1008_vm2, %v3982_v41 }
0x1872   : > { %6344 = vmatpush3.bf16.msra.mxu1 %v4028_v3  ;;  %6345 = vmatprep.mubr.msk.bf16.mxu1 %vm7485_vm1, %v7480_v60 }
0x1873   : > { %6355 = vmatprep.subr.bf16.mxu1 %v7480_v60 }
0x18c5   : > { %v4078_v58 = vpop.f32.mrb[88].mxu1 }
0x18c6   : > { %v9091_v11 = vmul.f32 0.35355338, %v4078_v58  ;;  %v6293_v9 = vpop.f32.mrb[89].mxu1 }
0x18c7   : > { %v4081_v4 = vpop.f32.mrb[90].mxu1 }
0x18c8   : > { %v9093_v7 = vmul.f32 0.35355338, %v4081_v4  ;;  %v6294_v44 = vpop.f32.mrb[91].mxu1  ;;  %v4451_v35 = vsel %vm1422_vm3, %v9091_v11, -inf }
0x18c9   : > { %4452 = vmax.xlane.f32.xlu1 %v4451_v35  ;;  %v9161_v35 = vpop.permute.xlu1 %6842 }
0x18ca   : > { %v4454_v18 = vsel %vm1422_vm3, %v9093_v7, -inf }
0x18cb   : > { %4455 = vmax.xlane.f32.xlu0 %v4454_v18 }
0x192c   : > { %v4128_v62 = vpop.f32.mrb[92].mxu1  ;;  %v4178_v49 = vpop.f32.mrb[76].mxu0 }
0x192d   : > { %v9099_v57 = vmul.f32 0.35355338, %v4128_v62  ;;  %v6299_v45 = vpop.f32.mrb[93].mxu1  ;;  %v6305_v53 = vpop.f32.mrb[77].mxu0  ;;  %v9103_v28 = vmul.f32 0.35355338, %v4178_v49 }
0x192e   : > { %v4131_v40 = vpop.f32.mrb[94].mxu1  ;;  %v4181_v42 = vpop.f32.mrb[78].mxu0 }
0x192f   : > { %v9101_v37 = vmul.f32 0.35355338, %v4131_v40  ;;  %v6300_v56 = vpop.f32.mrb[95].mxu1  ;;  %v6306_v52 = vpop.f32.mrb[79].mxu0  ;;  %v4457_v0 = vsel %vm1422_vm3, %v9099_v57, -inf  ;;  %v4463_v5 = vsel %vm1422_vm3, %v9103_v28, -inf }
0x1930   : > { %v9107_v55 = vmul.f32 0.35355338, %v4181_v42  ;;  %4458 = vmax.xlane.f32.xlu0 %v4457_v0 }
0x1931   : > { %v4460_v63 = vsel %vm1422_vm3, %v9101_v37, -inf }
0x1932   : > { %4461 = vmax.xlane.f32.xlu1 %v4460_v63  ;;  %v4466_v23 = vsel %vm1422_vm3, %v9107_v55, -inf }
0x1934   : > { %v4228_v32 = vpop.f32.mrb[96].mxu1  ;;  %v4278_v34 = vpop.f32.mrb[80].mxu0  ;;  %4464 = vmax.xlane.f32.xlu0 %v4463_v5 }
0x1935   : > { %v9113_v12 = vmul.f32 0.35355338, %v4228_v32  ;;  %v6311_v36 = vpop.f32.mrb[97].mxu1  ;;  %v6317_v16 = vpop.f32.mrb[81].mxu0  ;;  %v9119_v51 = vmul.f32 0.35355338, %v4278_v34 }
0x1936   : > { %v4231_v27 = vpop.f32.mrb[98].mxu1  ;;  %4467 = vmax.xlane.f32.xlu1 %v4466_v23  ;;  %v4281_v17 = vpop.f32.mrb[82].mxu0 }
0x1937   : > { %v9117_v46 = vmul.f32 0.35355338, %v4231_v27  ;;  %v6312_v54 = vpop.f32.mrb[99].mxu1  ;;  %v6318_v14 = vpop.f32.mrb[83].mxu0  ;;  %v4469_v15 = vsel %vm1422_vm3, %v9113_v12, -inf  ;;  %v4475_v48 = vsel %vm1422_vm3, %v9119_v51, -inf }
0x1938   : > { %v9123_v13 = vmul.f32 0.35355338, %v4281_v17  ;;  %4470 = vmax.xlane.f32.xlu0 %v4469_v15 }
0x1939   : > { %v4472_v21 = vsel %vm1422_vm3, %v9117_v46, -inf }
0x193a   : > { %4473 = vmax.xlane.f32.xlu1 %v4472_v21  ;;  %v4478_v20 = vsel %vm1422_vm3, %v9123_v13, -inf }
0x193c   : > { %v4328_v41 = vpop.f32.mrb[100].mxu1  ;;  %v4378_v25 = vpop.f32.mrb[84].mxu0  ;;  %4476 = vmax.xlane.f32.xlu0 %v4475_v48 }
0x193d   : > { %v9129_v38 = vmul.f32 0.35355338, %v4328_v41  ;;  %v6323_v30 = vpop.f32.mrb[101].mxu1  ;;  %v6329_v39 = vpop.f32.mrb[85].mxu0  ;;  %v9135_v24 = vmul.f32 0.35355338, %v4378_v25 }
0x193e   : > { %v4331_v6 = vpop.f32.mrb[102].mxu1  ;;  %4479 = vmax.xlane.f32.xlu1 %v4478_v20  ;;  %v4381_v50 = vpop.f32.mrb[86].mxu0 }
0x193f   : > { %v9133_v1 = vmul.f32 0.35355338, %v4331_v6  ;;  %v6324_v22 = vpop.f32.mrb[103].mxu1  ;;  %v6330_v61 = vpop.f32.mrb[87].mxu0  ;;  %v4481_v19 = vsel %vm1422_vm3, %v9129_v38, -inf  ;;  %v4487_v10 = vsel %vm1422_vm3, %v9135_v24, -inf }
0x1940   : > { %v9139_v2 = vmul.f32 0.35355338, %v4381_v50  ;;  %4482 = vmax.xlane.f32.xlu0 %v4481_v19 }
0x1941   : > { %v4484_v8 = vsel %vm1422_vm3, %v9133_v1, -inf }
0x1942   : > { %4485 = vmax.xlane.f32.xlu1 %v4484_v8  ;;  %v4490_v47 = vsel %vm1422_vm3, %v9139_v2, -inf }
0x1944   : > { %v4428_v29 = vpop.f32.mrb[104].mxu1  ;;  %4488 = vmax.xlane.f32.xlu0 %v4487_v10 }
0x1945   : > { %v9145_v59 = vmul.f32 0.35355338, %v4428_v29  ;;  %v6335_v31 = vpop.f32.mrb[105].mxu1 }
0x1946   : > { %v4431_v3 = vpop.f32.mrb[106].mxu1  ;;  %4491 = vmax.xlane.f32.xlu1 %v4490_v47 }
0x1947   : > { %v9149_v58 = vmul.f32 0.35355338, %v4431_v3  ;;  %v6336_v9 = vpop.f32.mrb[107].mxu1  ;;  %v4493_v4 = vsel %vm1422_vm3, %v9145_v59, -inf }
0x1948   : > { %4494 = vmax.xlane.f32.xlu0 %v4493_v4 }
0x1949   : > { %v4496_v44 = vsel %vm1422_vm3, %v9149_v58, -inf }
0x194a   : > { %4497 = vmax.xlane.f32.xlu1 %v4496_v44 }
0x1956   : > { %v4453_v62 = vpop.xlane.xlu1 %4452 }
0x1957   : > { %v4499_v45 = vsub.f32 %v9091_v11, %v4453_v62 }
0x1958   : > { %v4456_v18 = vpop.xlane.xlu0 %4455 }
0x1959   : > { %v4500_v49 = vsub.f32 %v9093_v7, %v4456_v18  ;;  %v4515_v40 = vmul.f32 1.442695, %v4499_v45 }
0x195b   : > { %6857 = vrot.lane.b32.xlu1 %v9025_v43, %s9635_s8  ;;  %v4517_v53 = vmul.f32 1.442695, %v4500_v49 }
0x195d   : > { %7050 = vpow2.f32 %v4517_v53 }
0x195e   : > { %6847 = vrot.lane.b32.xlu0 %v9025_v43, %s9636_s20  ;;  %7052 = vpow2.f32 %v4515_v40 }
0x1962   : > { %6852 = vrot.lane.b32.xlu0 %v9025_v43, %s9637_s24 }
0x1967   : > { %v9165_v42 = vpop.eup %7050 }
0x1968   : > { %v9167_v56 = vpop.eup %7052  ;;  %v4550_v52 = vsel %vm1422_vm3, %v9165_v42, 0.0 }
0x1969   : > { %v4547_v0 = vsel %vm1422_vm3, %v9167_v56, 0.0 }
0x197f   : > { %4551 = vadd.xlane.f32.xlu1 %v4550_v52 }
0x1981   : > { %4548 = vadd.xlane.f32.xlu0 %v4547_v0 }
0x19bd   : > { %v4459_v63 = vpop.xlane.xlu0 %4458 }
0x19be   : > { %v4501_v7 = vsub.f32 %v9099_v57, %v4459_v63 }
0x19bf   : > { %v4462_v11 = vpop.xlane.xlu1 %4461 }
0x19c0   : > { %v4502_v32 = vsub.f32 %v9101_v37, %v4462_v11  ;;  %v4519_v5 = vmul.f32 1.442695, %v4501_v7 }
0x19c1   : > { %v4465_v36 = vpop.xlane.xlu0 %4464 }
0x19c2   : > { %v4521_v34 = vmul.f32 1.442695, %v4502_v32  ;;  %7054 = vpow2.f32 %v4519_v5  ;;  %v4503_v16 = vsub.f32 %v9103_v28, %v4465_v36 }
0x19c3   : > { %v4468_v23 = vpop.xlane.xlu1 %4467 }
0x19c4   : > { %7056 = vpow2.f32 %v4521_v34  ;;  %v4504_v27 = vsub.f32 %v9107_v55, %v4468_v23  ;;  %v4523_v17 = vmul.f32 1.442695, %v4503_v16 }
0x19c5   : > { %v4471_v14 = vpop.xlane.xlu0 %4470 }
0x19c6   : > { %v4525_v54 = vmul.f32 1.442695, %v4504_v27  ;;  %7058 = vpow2.f32 %v4523_v17  ;;  %v4505_v15 = vsub.f32 %v9113_v12, %v4471_v14 }
0x19c7   : > { %v4474_v57 = vpop.xlane.xlu1 %4473 }
0x19c8   : > { %7060 = vpow2.f32 %v4525_v54  ;;  %v4506_v37 = vsub.f32 %v9117_v46, %v4474_v57  ;;  %v4527_v21 = vmul.f32 1.442695, %v4505_v15 }
0x19c9   : > { %v4477_v48 = vpop.xlane.xlu0 %4476 }
0x19ca   : > { %v4529_v41 = vmul.f32 1.442695, %v4506_v37  ;;  %7062 = vpow2.f32 %v4527_v21  ;;  %v4507_v28 = vsub.f32 %v9119_v51, %v4477_v48 }
0x19cb   : > { %v4480_v25 = vpop.xlane.xlu1 %4479 }
0x19cc   : > { %7064 = vpow2.f32 %v4529_v41  ;;  %v4508_v55 = vsub.f32 %v9123_v13, %v4480_v25  ;;  %v9181_v30 = vpop.eup %7054  ;;  %v4531_v39 = vmul.f32 1.442695, %v4507_v28  ;;  %v6845_v25 = vunpack.i.h.bf16 %v9161_v35 }
0x19cd   : > { %v4483_v6 = vpop.xlane.xlu0 %4482  ;;  %v4553_v46 = vsel %vm1422_vm3, %v9181_v30, 0.0 }
0x19ce   : > { %v9183_v20 = vpop.eup %7056  ;;  %v4533_v12 = vmul.f32 1.442695, %v4508_v55  ;;  %7066 = vpow2.f32 %v4531_v39  ;;  %v4509_v50 = vsub.f32 %v9129_v38, %v4483_v6  ;;  %4554 = vadd.xlane.f32.xlu0 %v4553_v46  ;;  %v6844_v55 = vunpack.i.l.bf16 %v9161_v35 }
0x19cf   : > { %v4486_v22 = vpop.xlane.xlu1 %4485  ;;  %v4556_v51 = vsel %vm1422_vm3, %v9183_v20, 0.0 }
0x19d0   : > { %7068 = vpow2.f32 %v4533_v12  ;;  %v4510_v13 = vsub.f32 %v9133_v1, %v4486_v22  ;;  %4557 = vadd.xlane.f32.xlu1 %v4556_v51  ;;  %v9191_v61 = vpop.eup %7058  ;;  %v4535_v19 = vmul.f32 1.442695, %v4509_v50 }
0x19d1   : > { %v4489_v10 = vpop.xlane.xlu0 %4488  ;;  %v4559_v31 = vsel %vm1422_vm3, %v9191_v61, 0.0 }
0x19d2   : > { %v9193_v8 = vpop.eup %7060  ;;  %v4537_v29 = vmul.f32 1.442695, %v4510_v13  ;;  %7070 = vpow2.f32 %v4535_v19  ;;  %v4511_v38 = vsub.f32 %v9135_v24, %v4489_v10  ;;  %4560 = vadd.xlane.f32.xlu0 %v4559_v31 }
0x19d3   : > { %v4492_v47 = vpop.xlane.xlu1 %4491  ;;  %v4562_v3 = vsel %vm1422_vm3, %v9193_v8, 0.0 }
0x19d4   : > { %7072 = vpow2.f32 %v4537_v29  ;;  %v4512_v1 = vsub.f32 %v9139_v2, %v4492_v47  ;;  %4563 = vadd.xlane.f32.xlu1 %v4562_v3  ;;  %v9201_v9 = vpop.eup %7062  ;;  %v4539_v4 = vmul.f32 1.442695, %v4511_v38 }
0x19d5   : > { %v4495_v62 = vpop.xlane.xlu0 %4494  ;;  %v4565_v49 = vsel %vm1422_vm3, %v9201_v9, 0.0 }
0x19d6   : > { %v9203_v44 = vpop.eup %7064  ;;  %v4541_v18 = vmul.f32 1.442695, %v4512_v1  ;;  %7074 = vpow2.f32 %v4539_v4  ;;  %v4513_v24 = vsub.f32 %v9145_v59, %v4495_v62  ;;  %4566 = vadd.xlane.f32.xlu0 %v4565_v49 }
0x19d7   : > { %v4498_v45 = vpop.xlane.xlu1 %4497  ;;  %v4568_v53 = vsel %vm1422_vm3, %v9203_v44, 0.0 }
0x19d8   : > { %7076 = vpow2.f32 %v4541_v18  ;;  %v4514_v2 = vsub.f32 %v9149_v58, %v4498_v45  ;;  %4569 = vadd.xlane.f32.xlu1 %v4568_v53  ;;  %v9211_v40 = vpop.eup %7066  ;;  %v4543_v52 = vmul.f32 1.442695, %v4513_v24 }
0x19d9   : > { %v4571_v7 = vsel %vm1422_vm3, %v9211_v40, 0.0  ;;  %v6848_v15 = vpop.permute.xlu0 %6847 }
0x19da   : > { %v9213_v0 = vpop.eup %7068  ;;  %v4545_v63 = vmul.f32 1.442695, %v4514_v2  ;;  %7078 = vpow2.f32 %v4543_v52  ;;  %4572 = vadd.xlane.f32.xlu0 %v4571_v7  ;;  %v6850_v19 = vunpack.i.h.bf16 %v6848_v15  ;;  %v6849_v29 = vunpack.i.l.bf16 %v6848_v15 }
0x19db   : > { %v4574_v59 = vsel %vm1422_vm3, %v9213_v0, 0.0  ;;  %v9247_v57 = vpop.permute.xlu1 %6857 }
0x19dc   : > { %4575 = vadd.xlane.f32.xlu1 %v4574_v59  ;;  %v9219_v11 = vpop.eup %7070  ;;  %7080 = vpow2.f32 %v4545_v63  ;;  %v4030_v18 = vpack.c.bf16 %v6850_v19, %v6849_v29  ;;  %v6860_v63 = vunpack.i.h.bf16 %v9247_v57 }
0x19dd   : > { %v4577_v58 = vsel %vm1422_vm3, %v9219_v11, 0.0  ;;  %v6853_v37 = vpop.permute.xlu0 %6852 }
0x19de   : > { %v9221_v32 = vpop.eup %7072  ;;  %4578 = vadd.xlane.f32.xlu0 %v4577_v58  ;;  %v6855_v62 = vunpack.i.h.bf16 %v6853_v37  ;;  %v6854_v49 = vunpack.i.l.bf16 %v6853_v37 }
0x19df   : > { %v4580_v5 = vsel %vm1422_vm3, %v9221_v32, 0.0 }
0x19e0   : > { %4581 = vadd.xlane.f32.xlu1 %v4580_v5  ;;  %v9227_v34 = vpop.eup %7074  ;;  %v4031_v7 = vpack.c.bf16 %v6855_v62, %v6854_v49 }
0x19e1   : > { %v4583_v16 = vsel %vm1422_vm3, %v9227_v34, 0.0 }
0x19e2   : > { %v9229_v36 = vpop.eup %7076  ;;  %4584 = vadd.xlane.f32.xlu0 %v4583_v16 }
0x19e3   : > { %v4586_v23 = vsel %vm1422_vm3, %v9229_v36, 0.0 }
0x19e4   : > { %4587 = vadd.xlane.f32.xlu1 %v4586_v23  ;;  %v9235_v27 = vpop.eup %7078 }
0x19e5   : > { %v4589_v17 = vsel %vm1422_vm3, %v9235_v27, 0.0 }
0x19e6   : > { %v9239_v54 = vpop.eup %7080 }
0x19e7   : > { %v4592_v14 = vsel %vm1422_vm3, %v9239_v54, 0.0 }
0x19e8   : > { %4590 = vadd.xlane.f32.xlu1 %v4589_v17 }
0x19ec   : > { %4593 = vadd.xlane.f32.xlu1 %v4592_v14 }
0x19f8   : > { %6862 = vrot.lane.b32.xlu0 %v9025_v43, %s9623_s0 }
0x19fd   : > { %6867 = vrot.lane.b32.xlu1 %v9025_v43, %s9624_s27  ;;  %v4029_v43 = vpack.c.bf16 %v6845_v25, %v6844_v55 }
0x1a0c   : > { %v4552_v21 = vpop.xlane.xlu1 %4551 }
0x1a0d   : > { %7082 = vrcp.f32 %v4552_v21 }
0x1a0e   : > { %v4549_v41 = vpop.xlane.xlu0 %4548 }
0x1a0f   : > { %7084 = vrcp.f32 %v4549_v41 }
0x1a17   : > { %v7083_v48 = vpop.eup %7082 }
0x1a18   : > { %v4612_v39 = vmul.f32 %v7083_v48, %v9165_v42 }
0x1a19   : > { %v7085_v28 = vpop.eup %7084 }
0x1a1a   : > { %v4611_v12 = vmul.f32 %v7085_v28, %v9167_v56 }
0x1a1c   : > { %v4627_v6 = vpack.c.bf16 %v4612_v39, %v4611_v12 }
0x1a1e   : > { %6340 = vmatmul.mubr.msk.bf16.vlgmr.msra.gmra.mrb[88].mxu0 %vm1422_vm3, %v4627_v6 }
0x1a1f   : > { %6350 = vmatpush3.bf16.msra.mxu0 %v4029_v43  ;;  %6351 = vmatprep.mubr.msk.bf16.mxu0 %vm7485_vm1, %v7480_v60 }
0x1a20   : > { %6361 = vmatprep.subr.bf16.mxu0 %v7480_v60 }
0x1a5b   : > { %v4555_v46 = vpop.xlane.xlu0 %4554 }
0x1a5c   : > { %7086 = vrcp.f32 %v4555_v46 }
0x1a5d   : > { %v4558_v50 = vpop.xlane.xlu1 %4557 }
0x1a5e   : > { %7088 = vrcp.f32 %v4558_v50 }
0x1a5f   : > { %v4561_v22 = vpop.xlane.xlu0 %4560 }
0x1a60   : > { %7090 = vrcp.f32 %v4561_v22 }
0x1a61   : > { %v4564_v35 = vpop.xlane.xlu1 %4563 }
0x1a62   : > { %7092 = vrcp.f32 %v4564_v35 }
0x1a63   : > { %v4567_v42 = vpop.xlane.xlu0 %4566 }
0x1a64   : > { %7094 = vrcp.f32 %v4567_v42 }
0x1a65   : > { %v4570_v56 = vpop.xlane.xlu1 %4569 }
0x1a66   : > { %7096 = vrcp.f32 %v4570_v56  ;;  %v7087_v51 = vpop.eup %7086 }
0x1a67   : > { %v4573_v10 = vpop.xlane.xlu0 %4572  ;;  %v4613_v31 = vmul.f32 %v7087_v51, %v9181_v30 }
0x1a68   : > { %v7089_v13 = vpop.eup %7088  ;;  %7098 = vrcp.f32 %v4573_v10 }
0x1a69   : > { %v4614_v38 = vmul.f32 %v7089_v13, %v9183_v20  ;;  %v4576_v47 = vpop.xlane.xlu1 %4575 }
0x1a6a   : > { %7100 = vrcp.f32 %v4576_v47  ;;  %v7091_v3 = vpop.eup %7090 }
0x1a6b   : > { %v4628_v1 = vpack.c.bf16 %v4614_v38, %v4613_v31  ;;  %v4579_v24 = vpop.xlane.xlu0 %4578  ;;  %v4615_v45 = vmul.f32 %v7091_v3, %v9191_v61  ;;  %v6859_v61 = vunpack.i.l.bf16 %v9247_v57 }
0x1a6c   : > { %v7093_v4 = vpop.eup %7092  ;;  %7102 = vrcp.f32 %v4579_v24 }
0x1a6d   : > { %v4616_v53 = vmul.f32 %v7093_v4, %v9193_v8  ;;  %6346 = vmatmul.mubr.msk.bf16.vlgmr.msra.gmra.mrb[108].mxu1 %vm1422_vm3, %v4628_v1  ;;  %v4582_v30 = vpop.xlane.xlu1 %4581  ;;  %v4032_v14 = vpack.c.bf16 %v6860_v63, %v6859_v61 }
0x1a6e   : > { %6356 = vmatpush3.bf16.msra.mxu1 %v4030_v18  ;;  %7104 = vrcp.f32 %v4582_v30  ;;  %6357 = vmatprep.mubr.msk.bf16.mxu1 %vm7485_vm1, %v7480_v60  ;;  %v7095_v20 = vpop.eup %7094  ;;  %v5803_v30 = vld [vmem:[%s9523_s6 + $0x88] sm:$0xff] }
0x1a6f   : > { %v4629_v2 = vpack.c.bf16 %v4616_v53, %v4615_v45  ;;  %6367 = vmatprep.subr.bf16.mxu1 %v7480_v60  ;;  %v4585_v8 = vpop.xlane.xlu0 %4584  ;;  %v4617_v59 = vmul.f32 %v7095_v20, %v9201_v9  ;;  %v5802_v53 = vld [vmem:[%s9523_s6 + $0x80] sm:$0xff] }
0x1a70   : > { %v7097_v52 = vpop.eup %7096  ;;  %7106 = vrcp.f32 %v4585_v8  ;;  %v5804_v8 = vld [vmem:[%s9523_s6 + $0x90] sm:$0xff] }
0x1a71   : > { %v4618_v58 = vmul.f32 %v7097_v52, %v9203_v44  ;;  %6352 = vmatmul.mubr.msk.bf16.vlgmr.msra.gmra.mrb[92].mxu0 %vm1422_vm3, %v4629_v2  ;;  %v4588_v5 = vpop.xlane.xlu1 %4587  ;;  %v5067_v52 = vpack.c.bf16 %v5803_v30, %v5802_v53 }
0x1a72   : > { %6362 = vmatpush3.bf16.msra.mxu0 %v4031_v7  ;;  %7108 = vrcp.f32 %v4588_v5  ;;  %6363 = vmatprep.mubr.msk.bf16.mxu0 %vm7485_vm1, %v7480_v60  ;;  %v7099_v16 = vpop.eup %7098 }
0x1a73   : > { %v4630_v23 = vpack.c.bf16 %v4618_v58, %v4617_v59  ;;  %6373 = vmatprep.subr.bf16.mxu0 %v7480_v60  ;;  %v6863_v15 = vpop.permute.xlu0 %6862  ;;  %v4619_v9 = vmul.f32 %v7099_v16, %v9211_v40  ;;  %v5805_v59 = vld [vmem:[%s9523_s6 + $0x98] sm:$0xff]  ;;  %v5806_v58 = vld [vmem:[%s9523_s6 + $0xa0] sm:$0xff] }
0x1a74   : > { %v7101_v17 = vpop.eup %7100  ;;  %v6865_v57 = vunpack.i.h.bf16 %v6863_v15  ;;  %v6864_v37 = vunpack.i.l.bf16 %v6863_v15 }
0x1a75   : > { %v4620_v44 = vmul.f32 %v7101_v17, %v9213_v0  ;;  %6358 = vmatmul.mubr.msk.bf16.vlgmr.msra.gmra.mrb[112].mxu1 %vm1422_vm3, %v4630_v23  ;;  %v4591_v21 = vpop.xlane.xlu1 %4590  ;;  %v5068_v23 = vpack.c.bf16 %v5805_v59, %v5804_v8  ;;  %v5807_v17 = vld [vmem:[%s9523_s6 + $0xa8] sm:$0xff] }
0x1a76   : > { %6368 = vmatpush3.bf16.msra.mxu1 %v4032_v14  ;;  %6369 = vmatprep.mubr.msk.bf16.mxu1 %vm7485_vm1, %v7480_v60  ;;  %v7103_v41 = vpop.eup %7102  ;;  %v4033_v48 = vpack.c.bf16 %v6865_v57, %v6864_v37  ;;  %7110 = vrcp.f32 %v4591_v21  ;;  %v5810_v59 = vld [vmem:[#allocation8 + $0x2] ss:$0 sm:$0xff] }
0x1a77   : > { %v4631_v28 = vpack.c.bf16 %v4620_v44, %v4619_v9  ;;  %6379 = vmatprep.subr.bf16.mxu1 %v7480_v60  ;;  %v4621_v40 = vmul.f32 %v7103_v41, %v9219_v11  ;;  %v5069_v9 = vpack.c.bf16 %v5807_v17, %v5806_v58 }
0x1a78   : > { %v7105_v25 = vpop.eup %7104 }
0x1a79   : > { %v4622_v0 = vmul.f32 %v7105_v25, %v9221_v32  ;;  %6364 = vmatmul.mubr.msk.bf16.vlgmr.msra.gmra.mrb[96].mxu0 %vm1422_vm3, %v4631_v28  ;;  %v4594_v55 = vpop.xlane.xlu1 %4593  ;;  %v5808_v28 = vld [vmem:[%s9523_s6 + $0xb0] sm:$0xff]  ;;  %v5809_v25 = vld [vmem:[%s9523_s6 + $0xb8] sm:$0xff] }
0x1a7a   : > { %6374 = vmatpush3.bf16.msra.mxu0 %v4033_v48  ;;  %7112 = vrcp.f32 %v4594_v55  ;;  %6375 = vmatprep.mubr.msk.bf16.mxu0 %vm7485_vm1, %v7480_v60  ;;  %v7107_v39 = vpop.eup %7106  ;;  %v5070_v55 = vpack.c.bf16 %v5809_v25, %v5808_v28 }
0x1a7b   : > { %v4632_v12 = vpack.c.bf16 %v4622_v0, %v4621_v40  ;;  %6385 = vmatprep.subr.bf16.mxu0 %v7480_v60  ;;  %v4623_v43 = vmul.f32 %v7107_v39, %v9227_v34 }
0x1a7c   : > { %v7109_v6 = vpop.eup %7108 }
0x1a7d   : > { %v4624_v46 = vmul.f32 %v7109_v6, %v9229_v36  ;;  %v6868_v11 = vpop.permute.xlu1 %6867  ;;  %6370 = vmatmul.mubr.msk.bf16.vlgmr.msra.gmra.mrb[116].mxu1 %vm1422_vm3, %v4632_v12 }
0x1a7e   : > { %v6870_v32 = vunpack.i.h.bf16 %v6868_v11  ;;  %v6869_v50 = vunpack.i.l.bf16 %v6868_v11  ;;  %6381 = vmatprep.mubr.msk.bf16.mxu1 %vm7485_vm1, %v7480_v60 }
0x1a7f   : > { %v4633_v22 = vpack.c.bf16 %v4624_v46, %v4623_v43 }
0x1a80   : > { %v4034_v35 = vpack.c.bf16 %v6870_v32, %v6869_v50  ;;  %v7111_v42 = vpop.eup %7110 }
0x1a81   : > { %6376 = vmatmul.mubr.msk.bf16.vlgmr.msra.gmra.mrb[100].mxu0 %vm1422_vm3, %v4633_v22  ;;  %v4625_v36 = vmul.f32 %v7111_v42, %v9235_v27 }
0x1a82   : > { %6380 = vmatpush3.bf16.msra.mxu1 %v4034_v35  ;;  %6393 = vmatprep.mubr.msk.bf16.mxu0 %vm7485_vm1, %v7480_v60 }
0x1a83   : > { %6397 = vmatprep.subr.bf16.mxu1 %v7480_v60  ;;  %6386 = vmatpush3.bf16.msra.mxu0 %v5067_v52 }
0x1a84   : > { %v7113_v34 = vpop.eup %7112  ;;  %6387 = vmatprep.subr.bf16.mxu0 %v7480_v60 }
0x1a85   : > { %v4626_v56 = vmul.f32 %v7113_v34, %v9239_v54 }
0x1a87   : > { %v4634_v51 = vpack.c.bf16 %v4626_v56, %v4625_v36  ;;  %6388 = vmatpush3.bf16.msra.mxu0 %v5068_v23 }
0x1a88   : > { %6389 = vmatprep.subr.bf16.mxu0 %v7480_v60 }
0x1a89   : > { %6382 = vmatmul.mubr.msk.bf16.vlgmr.msra.gmra.mrb[120].mxu1 %vm1422_vm3, %v4634_v51 }
0x1a8a   : > { %6405 = vmatprep.mubr.msk.bf16.mxu1 %vm7485_vm1, %v7480_v60 }
0x1a8b   : > { %6390 = vmatpush3.bf16.msra.mxu0 %v5069_v9 }
0x1a8c   : > { %6391 = vmatprep.subr.bf16.mxu0 %v7480_v60 }
0x1a8f   : > { %6392 = vmatpush3.bf16.msra.mxu0 %v5070_v55  ;;  %v5814_v55 = vld [vmem:[%s9527_s10 + $0x80] sm:$0xff] }
0x1a90   : > { %6409 = vmatprep.subr.bf16.mxu0 %v7480_v60 }
0x1af1   : > { %v9299_v13 = vpop.f32.mrb[88].mxu0 }
0x1af2   : > { %v6341_v19 = vpop.f32.mrb[89].mxu0 }
0x1af3   : > { %v9301_v29 = vpop.f32.mrb[90].mxu0 }
0x1af4   : > { %v6342_v10 = vpop.f32.mrb[91].mxu0 }
0x1b40   : > { %v4716_v31 = vpop.f32.mrb[108].mxu1 }
0x1b41   : > { %v6347_v38 = vpop.f32.mrb[109].mxu1 }
0x1b42   : > { %v4719_v47 = vpop.f32.mrb[110].mxu1 }
0x1b43   : > { %v6871_v3 = vpack.i.bf16 %v4719_v47, %v4716_v31  ;;  %v6348_v1 = vpop.f32.mrb[111].mxu1 }
0x1b44   : > { %v4760_v27 = vpop.f32.mrb[92].mxu0 }
0x1b45   : > { %6872 = vrot.lane.b32.xlu0 %v6871_v3, %s9626_s28  ;;  %v6353_v54 = vpop.f32.mrb[93].mxu0 }
0x1b46   : > { %v4763_v4 = vpop.f32.mrb[94].mxu0 }
0x1b47   : > { %v6876_v18 = vpack.i.bf16 %v4763_v4, %v4760_v27  ;;  %v6354_v62 = vpop.f32.mrb[95].mxu0 }
0x1b48   : > { %v4804_v49 = vpop.f32.mrb[112].mxu1 }
0x1b49   : > { %v6359_v24 = vpop.f32.mrb[113].mxu1  ;;  %6877 = vrot.lane.b32.xlu1 %v6876_v18, %s9627_s25 }
0x1b4a   : > { %v4807_v45 = vpop.f32.mrb[114].mxu1 }
0x1b4b   : > { %v6881_v20 = vpack.i.bf16 %v4807_v45, %v4804_v49  ;;  %v6360_v2 = vpop.f32.mrb[115].mxu1 }
0x1b4c   : > { %v4848_v63 = vpop.f32.mrb[96].mxu0 }
0x1b4d   : > { %6882 = vrot.lane.b32.xlu0 %v6881_v20, %s9628_s2  ;;  %v6365_v61 = vpop.f32.mrb[97].mxu0 }
0x1b4e   : > { %v4851_v7 = vpop.f32.mrb[98].mxu0 }
0x1b4f   : > { %v6886_v5 = vpack.i.bf16 %v4851_v7, %v4848_v63  ;;  %v6366_v16 = vpop.f32.mrb[99].mxu0 }
0x1b50   : > { %v4892_v14 = vpop.f32.mrb[116].mxu1 }
0x1b51   : > { %v6371_v15 = vpop.f32.mrb[117].mxu1  ;;  %6887 = vrot.lane.b32.xlu1 %v6886_v5, %s9629_s30 }
0x1b52   : > { %v4895_v44 = vpop.f32.mrb[118].mxu1 }
0x1b53   : > { %v6891_v57 = vpack.i.bf16 %v4895_v44, %v4892_v14  ;;  %v6372_v37 = vpop.f32.mrb[119].mxu1 }
0x1b54   : > { %v4936_v21 = vpop.f32.mrb[100].mxu0 }
0x1b55   : > { %6892 = vrot.lane.b32.xlu0 %v6891_v57, %s9630_s23  ;;  %v6377_v41 = vpop.f32.mrb[101].mxu0 }
0x1b56   : > { %v4939_v48 = vpop.f32.mrb[102].mxu0 }
0x1b57   : > { %v6896_v40 = vpack.i.bf16 %v4939_v48, %v4936_v21  ;;  %v6378_v0 = vpop.f32.mrb[103].mxu0 }
0x1b59   : > { %6897 = vrot.lane.b32.xlu1 %v6896_v40, %s9631_s26 }
0x1b5c   : > { %v4980_v39 = vpop.f32.mrb[120].mxu1 }
0x1b5d   : > { %v6383_v12 = vpop.f32.mrb[121].mxu1 }
0x1b5e   : > { %v4983_v6 = vpop.f32.mrb[122].mxu1 }
0x1b5f   : > { %v6901_v43 = vpack.i.bf16 %v4983_v6, %v4980_v39  ;;  %v6384_v46 = vpop.f32.mrb[123].mxu1  ;;  %v5815_v39 = vld [vmem:[%s9527_s10 + $0x88] sm:$0xff]  ;;  %v5816_v6 = vld [vmem:[%s9527_s10 + $0x90] sm:$0xff] }
0x1b60   : > { %v5181_v12 = vpack.c.bf16 %v5815_v39, %v5814_v55  ;;  %v5840_v55 = vld [vmem:[#allocation14 + $0x2] ss:$0 sm:$0xff] }
0x1b61   : > { %6902 = vrot.lane.b32.xlu0 %v6901_v43, %s9632_s3  ;;  %v5817_v43 = vld [vmem:[%s9527_s10 + $0x98] sm:$0xff] }
0x1b62   : > { %6398 = vmatpush3.bf16.msra.mxu1 %v5181_v12  ;;  %v5182_v46 = vpack.c.bf16 %v5817_v43, %v5816_v6 }
0x1b63   : > { %6399 = vmatprep.subr.bf16.mxu1 %v7480_v60 }
0x1b66   : > { %6400 = vmatpush3.bf16.msra.mxu1 %v5182_v46 }
0x1b67   : > { %6401 = vmatprep.subr.bf16.mxu1 %v7480_v60 }
0x1bb7   : > { %v6873_v11 = vpop.permute.xlu0 %6872 }
0x1bb8   : > { %v6875_v35 = vunpack.i.h.bf16 %v6873_v11  ;;  %v6874_v42 = vunpack.i.l.bf16 %v6873_v11  ;;  %v5818_v11 = vld [vmem:[%s9527_s10 + $0xa0] sm:$0xff] }
0x1bba   : > { %v5043_v47 = vsel %vm1008_vm2, %v9299_v13, %v6874_v42  ;;  %v5044_v3 = vsel %vm1008_vm2, %v9301_v29, %v6875_v35  ;;  %v5821_v35 = vld [vmem:[%s9527_s10 + $0xb8] sm:$0xff] }
0x1bbb   : > { %v6878_v32 = vpop.permute.xlu1 %6877 }
0x1bbc   : > { %v6880_v34 = vunpack.i.h.bf16 %v6878_v32  ;;  %v6879_v36 = vunpack.i.l.bf16 %v6878_v32  ;;  %v5819_v32 = vld [vmem:[%s9527_s10 + $0xa8] sm:$0xff] }
0x1bbe   : > { %v5046_v54 = vsel %vm1422_vm3, %v5044_v3, %v6880_v34  ;;  %v5045_v4 = vsel %vm1422_vm3, %v5043_v47, %v6879_v36  ;;  %v5824_v34 = vld [vmem:[%s9529_s12 + $0x100] sm:$0xff]  ;;  %v5825_v36 = vld [vmem:[%s9529_s12 + $0x108] sm:$0xff]  ;;  %v5830_v3 = vld [vmem:[%s9529_s12 + $0x130] sm:$0xff] }
0x1bbf   : > { %v6883_v50 = vpop.permute.xlu0 %6882 }
0x1bc0   : > { %v6885_v51 = vunpack.i.h.bf16 %v6883_v50  ;;  %v6884_v19 = vunpack.i.l.bf16 %v6883_v50  ;;  %v5183_v50 = vpack.c.bf16 %v5819_v32, %v5818_v11 }
0x1bc2   : > { %v5047_v49 = vsel %vm2019_vm4, %v5045_v4, %v6884_v19  ;;  %v5048_v24 = vsel %vm2019_vm4, %v5046_v54, %v6885_v51  ;;  %6402 = vmatpush3.bf16.msra.mxu1 %v5183_v50  ;;  %v5257_v51 = vpack.c.bf16 %v5825_v36, %v5824_v34  ;;  %v5827_v19 = vld [vmem:[%s9529_s12 + $0x118] sm:$0xff]  ;;  %v5832_v54 = vld [vmem:[%s9529_s12 + $0x140] sm:$0xff]  ;;  %v5833_v4 = vld [vmem:[%s9529_s12 + $0x148] sm:$0xff] }
0x1bc3   : > { %v6888_v22 = vpop.permute.xlu1 %6887  ;;  %6403 = vmatprep.subr.bf16.mxu1 %v7480_v60 }
0x1bc4   : > { %v6890_v31 = vunpack.i.h.bf16 %v6888_v22  ;;  %v6889_v38 = vunpack.i.l.bf16 %v6888_v22  ;;  %v5820_v22 = vld [vmem:[%s9527_s10 + $0xb0] sm:$0xff] }
0x1bc5   : > { %v5184_v42 = vpack.c.bf16 %v5821_v35, %v5820_v22 }
0x1bc6   : > { %v5050_v45 = vsel %vm2022_vm5, %v5048_v24, %v6890_v31  ;;  %v5049_v53 = vsel %vm2022_vm5, %v5047_v49, %v6889_v38  ;;  %v5828_v31 = vld [vmem:[%s9529_s12 + $0x120] sm:$0xff]  ;;  %v5829_v38 = vld [vmem:[%s9529_s12 + $0x128] sm:$0xff]  ;;  %v5835_v49 = vld [vmem:[%s9529_s12 + $0x158] sm:$0xff] }
0x1bc7   : > { %v6893_v56 = vpop.permute.xlu0 %6892  ;;  %6404 = vmatpush3.bf16.msra.mxu1 %v5184_v42  ;;  %v5259_v47 = vpack.c.bf16 %v5829_v38, %v5828_v31 }
0x1bc8   : > { %v6895_v1 = vunpack.i.h.bf16 %v6893_v56  ;;  %v6894_v27 = vunpack.i.l.bf16 %v6893_v56  ;;  %v5826_v56 = vld [vmem:[%s9529_s12 + $0x110] sm:$0xff]  ;;  %6429 = vmatprep.subr.bf16.mxu1 %v7480_v60 }
0x1bca   : > { %v5051_v30 = vsel %vm2025_vm6, %v5049_v53, %v6894_v27  ;;  %v5052_v29 = vsel %vm2025_vm6, %v5050_v45, %v6895_v1  ;;  %v5831_v1 = vld [vmem:[%s9529_s12 + $0x138] sm:$0xff] }
0x1bcb   : > { %v6898_v10 = vpop.permute.xlu1 %6897  ;;  %v5260_v27 = vpack.c.bf16 %v5831_v1, %v5830_v3  ;;  %v5373_v3 = vld [vmem:[%s9533_s16] sm:$0xff]  ;;  %v5374_v1 = vld [vmem:[%s9533_s16 + $0x8] sm:$0xff] }
0x1bcc   : > { %v6900_v18 = vunpack.i.h.bf16 %v6898_v10  ;;  %v6899_v62 = vunpack.i.l.bf16 %v6898_v10  ;;  %v5258_v10 = vpack.c.bf16 %v5827_v19, %v5826_v56 }
0x1bce   : > { %v5054_v52 = vsel %vm2028_vm7, %v5052_v29, %v6900_v18  ;;  %v5053_v63 = vsel %vm2028_vm7, %v5051_v30, %v6899_v62  ;;  %v5261_v18 = vpack.c.bf16 %v5833_v4, %v5832_v54  ;;  %v5834_v62 = vld [vmem:[%s9529_s12 + $0x150] sm:$0xff]  ;;  %v5382_v54 = vpack.c.bf16 %v5374_v1, %v5373_v3  ;;  %v5376_v4 = vld [vmem:[%s9533_s16 + $0x18] sm:$0xff] }
0x1bcf   : > { %v5262_v24 = vpack.c.bf16 %v5835_v49, %v5834_v62  ;;  %v5377_v62 = vld [vmem:[%s9533_s16 + $0x20] sm:$0xff]  ;;  %v5378_v49 = vld [vmem:[%s9533_s16 + $0x28] sm:$0xff] }
0x1bd3   : > { %v6903_v13 = vpop.permute.xlu0 %6902 }
0x1bd4   : > { %v6905_v20 = vunpack.i.h.bf16 %v6903_v13  ;;  %v6904_v2 = vunpack.i.l.bf16 %v6903_v13 }
0x1bd6   : > { %v5055_v61 = vsel %vm2031_vm8, %v5053_v63, %v6904_v2  ;;  %v5056_v7 = vsel %vm2031_vm8, %v5054_v52, %v6905_v20  ;;  %v5812_v52 = vld [vmem:[#allocation10 + $0x2] ss:$0 sm:$0xff] }
0x1bd7   : > { %v5066_v8 = vpack.c.bf16 %v5056_v7, %v5055_v61 }
0x1bd9   : > { %6394 = vmatmul.mubr.msk.bf16.vlgmr.msra.gmra.mrb[104].mxu0 %vm854_vm0, %v5066_v8 }
0x1bda   : > { %6425 = vmatprep.mubr.msk.bf16.mxu0 %vm7485_vm1, %v7480_v60  ;;  %6410 = vmatpush3.bf16.msra.mxu0 %v5257_v51 }
0x1bdb   : > { %6411 = vmatprep.subr.bf16.mxu0 %v7480_v60 }
0x1bde   : > { %6412 = vmatpush3.bf16.msra.mxu0 %v5258_v10 }
0x1bdf   : > { %6413 = vmatprep.subr.bf16.mxu0 %v7480_v60 }
0x1be2   : > { %6414 = vmatpush3.bf16.msra.mxu0 %v5259_v47 }
0x1be3   : > { %6415 = vmatprep.subr.bf16.mxu0 %v7480_v60 }
0x1be6   : > { %6416 = vmatpush3.bf16.msra.mxu0 %v5260_v27  ;;  %v5375_v27 = vld [vmem:[%s9533_s16 + $0x10] sm:$0xff] }
0x1be7   : > { %6417 = vmatprep.subr.bf16.mxu0 %v7480_v60 }
0x1bea   : > { %6418 = vmatpush3.bf16.msra.mxu0 %v5261_v18  ;;  %v5383_v18 = vpack.c.bf16 %v5376_v4, %v5375_v27 }
0x1beb   : > { %6419 = vmatprep.subr.bf16.mxu0 %v7480_v60 }
0x1bee   : > { %6420 = vmatpush3.bf16.msra.mxu0 %v5262_v24  ;;  %v5384_v24 = vpack.c.bf16 %v5378_v49, %v5377_v62 }
0x1bef   : > { %6421 = vmatprep.subr.bf16.mxu0 %v7480_v60 }
0x1cac   : > { %v5116_v58 = vpop.f32.mrb[104].mxu0 }
0x1cad   : > { %v5117_v5 = vadd.f32 %v5810_v59, %v5116_v58  ;;  %v6395_v16 = vpop.f32.mrb[105].mxu0 }
0x1cae   : > { %v5119_v23 = vpop.f32.mrb[106].mxu0 }
0x1caf   : > { %v5123_v17 = vadd.f32 %v5117_v5, %v9006_v33  ;;  %v5120_v14 = vadd.f32 %v5810_v59, %v5119_v23  ;;  %v6396_v15 = vpop.f32.mrb[107].mxu0  ;;  %v5813_v59 = vld [vmem:[#allocation11 + $0x2] ss:$0 sm:$0xff] }
0x1cb1   : > { %v5124_v9 = vadd.f32 %v5120_v14, %v9008_v26  ;;  %v5129_v44 = vsel %vm854_vm0, %v5123_v17, 0.0  ;;  %v5837_v14 = vld [vmem:[%s9529_s12 + $0x168] sm:$0xff] }
0x1cb2   : > { %5130 = vadd.xlane.f32.xlu1 %v5129_v44  ;;  %v5839_v44 = vld [vmem:[%s9529_s12 + $0x178] sm:$0xff] }
0x1cb3   : > { %v5132_v57 = vsel %vm854_vm0, %v5124_v9, 0.0 }
0x1cb4   : > { %5133 = vadd.xlane.f32.xlu0 %v5132_v57 }
0x1d3f   : > { %v5131_v37 = vpop.xlane.xlu1 %5130 }
0x1d40   : > { %v5135_v21 = vmul.f32 0.015625, %v5131_v37  ;;  %v5822_v37 = vld [vmem:[#allocation13 + $0x2] ss:$0 sm:$0xff] }
0x1d41   : > { %v5134_v41 = vpop.xlane.xlu0 %5133 }
0x1d42   : > { %v9361_v48 = vsub.f32 %v5123_v17, %v5135_v21  ;;  %v5136_v28 = vmul.f32 0.015625, %v5134_v41  ;;  %v5836_v17 = vld [vmem:[%s9529_s12 + $0x160] sm:$0xff] }
0x1d43   : > { %v5263_v15 = vpack.c.bf16 %v5837_v14, %v5836_v17 }
0x1d44   : > { %v9363_v25 = vsub.f32 %v5124_v9, %v5136_v28  ;;  %v5139_v33 = vmul.f32 %v9361_v48, %v9361_v48  ;;  %v5838_v9 = vld [vmem:[%s9529_s12 + $0x170] sm:$0xff] }
0x1d45   : > { %6422 = vmatpush3.bf16.msra.mxu0 %v5263_v15  ;;  %v5264_v57 = vpack.c.bf16 %v5839_v44, %v5838_v9 }
0x1d46   : > { %v5141_v40 = vsel %vm854_vm0, %v5139_v33, 0.0  ;;  %v5140_v26 = vmul.f32 %v9363_v25, %v9363_v25  ;;  %6423 = vmatprep.subr.bf16.mxu0 %v7480_v60 }
0x1d47   : > { %5142 = vadd.xlane.f32.xlu0 %v5141_v40 }
0x1d48   : > { %v5144_v0 = vsel %vm854_vm0, %v5140_v26, 0.0 }
0x1d49   : > { %5145 = vadd.xlane.f32.xlu1 %v5144_v0  ;;  %6424 = vmatpush3.bf16.msra.mxu0 %v5264_v57 }
0x1dd4   : > { %v5143_v45 = vpop.xlane.xlu0 %5142 }
0x1dd5   : > { %v5147_v53 = vmul.f32 0.015625, %v5143_v45  ;;  %v5379_v45 = vld [vmem:[%s9533_s16 + $0x30] sm:$0xff] }
0x1dd6   : > { %v5146_v13 = vpop.xlane.xlu1 %5145 }
0x1dd7   : > { %v5149_v30 = vadd.f32 1e-05, %v5147_v53  ;;  %v5148_v29 = vmul.f32 0.015625, %v5146_v13  ;;  %v5380_v53 = vld [vmem:[%s9533_s16 + $0x38] sm:$0xff] }
0x1dd8   : > { %v5385_v13 = vpack.c.bf16 %v5380_v53, %v5379_v45 }
0x1dd9   : > { %7114 = vrsqrt.f32 %v5149_v30  ;;  %v5150_v20 = vadd.f32 1e-05, %v5148_v29 }
0x1ddb   : > { %7116 = vrsqrt.f32 %v5150_v20 }
0x1de3   : > { %v7115_v2 = vpop.eup %7114 }
0x1de4   : > { %v5153_v63 = vmul.f32 %v7115_v2, %v9361_v48 }
0x1de5   : > { %v7117_v61 = vpop.eup %7116 }
0x1de6   : > { %v5161_v7 = vmul.f32 %v5812_v52, %v5153_v63  ;;  %v5154_v8 = vmul.f32 %v7117_v61, %v9363_v25 }
0x1de8   : > { %v5162_v58 = vmul.f32 %v5812_v52, %v5154_v8  ;;  %v5169_v5 = vadd.f32 %v5813_v59, %v5161_v7  ;;  %v5841_v7 = vld [vmem:[#allocation16 + $0x2] ss:$0 sm:$0xff] }
0x1dea   : > { %v5170_v16 = vadd.f32 %v5813_v59, %v5162_v58  ;;  %v5842_v58 = vld [vmem:[#allocation17 + $0x2] ss:$0 sm:$0xff] }
0x1dec   : > { %v5180_v23 = vpack.c.bf16 %v5170_v16, %v5169_v5 }
0x1dee   : > { %6406 = vmatmul.mubr.msk.bf16.vlgmr.msra.gmra.mrb[124].mxu1 %vm854_vm0, %v5180_v23 }
0x1def   : > { %6437 = vmatprep.mubr.msk.bf16.mxu1 %vm7485_vm1, %v7480_v60  ;;  %6430 = vmatpush3.bf16.msra.mxu1 %v5382_v54 }
0x1df0   : > { %6431 = vmatprep.subr.bf16.mxu1 %v7480_v60 }
0x1df3   : > { %6432 = vmatpush3.bf16.msra.mxu1 %v5383_v18 }
0x1df4   : > { %6433 = vmatprep.subr.bf16.mxu1 %v7480_v60 }
0x1df7   : > { %6434 = vmatpush3.bf16.msra.mxu1 %v5384_v24 }
0x1df8   : > { %6435 = vmatprep.subr.bf16.mxu1 %v7480_v60 }
0x1dfb   : > { %6436 = vmatpush3.bf16.msra.mxu1 %v5385_v13 }
0x1dfc   : > { %6441 = vmatprep.subr.bf16.mxu1 %v7480_v60 }
0x1ec1   : > { %v5230_v21 = vpop.f32.mrb[124].mxu1 }
0x1ec2   : > { %v5231_v41 = vadd.f32 %v5822_v37, %v5230_v21  ;;  %v6407_v48 = vpop.f32.mrb[125].mxu1 }
0x1ec3   : > { %v5233_v28 = vpop.f32.mrb[126].mxu1 }
0x1ec4   : > { %v5234_v25 = vadd.f32 %v5822_v37, %v5233_v28  ;;  %v6408_v33 = vpop.f32.mrb[127].mxu1  ;;  %v5237_v40 = vmax.f32 %v5231_v41, 0.0 }
0x1ec6   : > { %v5238_v26 = vmax.f32 %v5234_v25, 0.0 }
0x1ec8   : > { %v5256_v0 = vpack.c.bf16 %v5238_v26, %v5237_v40  ;;  %v5431_v40 = vld [vmem:[%s9638_s29] sm:$0xff]  ;;  %v5432_v26 = vld [vmem:[%s9638_s29 + $0x8] sm:$0xff] }
0x1eca   : > { %6426 = vmatmul.mubr.bf16.vlgmr.msra.gmra.mrb[108].mxu0 %v5256_v0  ;;  %v5436_v0 = vpack.c.bf16 %v5432_v26, %v5431_v40 }
0x1f9d   : > { %v5307_v39 = vpop.f32.mrb[108].mxu0 }
0x1f9e   : > { %v5308_v12 = vadd.f32 %v5840_v55, %v5307_v39  ;;  %v6427_v6 = vpop.f32.mrb[109].mxu0  ;;  %v5434_v39 = vld [vmem:[%s9638_s29 + $0x18] sm:$0xff] }
0x1f9f   : > { %v5310_v43 = vpop.f32.mrb[110].mxu0  ;;  %v5386_v6 = vld [vmem:[#allocation19] sm:$0x1] }
0x1fa0   : > { %v5314_v46 = vadd.f32 %v5308_v12, %v5169_v5  ;;  %v5311_v11 = vadd.f32 %v5840_v55, %v5310_v43  ;;  %v6428_v32 = vpop.f32.mrb[111].mxu0  ;;  %v5433_v55 = vld [vmem:[%s9638_s29 + $0x10] sm:$0xff] }
0x1fa1   : > { %v5437_v12 = vpack.c.bf16 %v5434_v39, %v5433_v55 }
0x1fa2   : > { %v5315_v50 = vadd.f32 %v5311_v11, %v5170_v16  ;;  %v5320_v22 = vsel %vm854_vm0, %v5314_v46, 0.0 }
0x1fa3   : > { %5321 = vadd.xlane.f32.xlu0 %v5320_v22 }
0x1fa4   : > { %v5323_v35 = vsel %vm854_vm0, %v5315_v50, 0.0 }
0x1fa5   : > { %5324 = vadd.xlane.f32.xlu1 %v5323_v35 }
0x2030   : > { %v5322_v42 = vpop.xlane.xlu0 %5321 }
0x2031   : > { %v5326_v34 = vmul.f32 0.015625, %v5322_v42 }
0x2032   : > { %v5325_v36 = vpop.xlane.xlu1 %5324 }
0x2033   : > { %v5328_v56 = vsub.f32 %v5314_v46, %v5326_v34  ;;  %v5327_v51 = vmul.f32 0.015625, %v5325_v36 }
0x2035   : > { %v5329_v19 = vsub.f32 %v5315_v50, %v5327_v51  ;;  %v5330_v10 = vmul.f32 %v5328_v56, %v5328_v56 }
0x2037   : > { %v5332_v31 = vsel %vm854_vm0, %v5330_v10, 0.0  ;;  %v5331_v38 = vmul.f32 %v5329_v19, %v5329_v19 }
0x2038   : > { %5333 = vadd.xlane.f32.xlu0 %v5332_v31 }
0x2039   : > { %v5335_v47 = vsel %vm854_vm0, %v5331_v38, 0.0 }
0x203a   : > { %5336 = vadd.xlane.f32.xlu1 %v5335_v47 }
0x20c5   : > { %v5334_v30 = vpop.xlane.xlu0 %5333 }
0x20c6   : > { %v5338_v29 = vmul.f32 0.015625, %v5334_v30 }
0x20c7   : > { %v5337_v20 = vpop.xlane.xlu1 %5336 }
0x20c8   : > { %v5340_v2 = vadd.f32 1e-05, %v5338_v29  ;;  %v5339_v52 = vmul.f32 0.015625, %v5337_v20 }
0x20ca   : > { %7118 = vrsqrt.f32 %v5340_v2  ;;  %v5341_v63 = vadd.f32 1e-05, %v5339_v52 }
0x20cc   : > { %7120 = vrsqrt.f32 %v5341_v63 }
0x20d4   : > { %v7119_v61 = vpop.eup %7118 }
0x20d5   : > { %v5344_v8 = vmul.f32 %v7119_v61, %v5328_v56 }
0x20d6   : > { %v7121_v59 = vpop.eup %7120 }
0x20d7   : > { %v5352_v5 = vmul.f32 %v5841_v7, %v5344_v8  ;;  %v5345_v16 = vmul.f32 %v7121_v59, %v5329_v19 }
0x20d9   : > { %v5360_v23 = vadd.f32 %v5842_v58, %v5352_v5  ;;  %v5353_v17 = vmul.f32 %v5841_v7, %v5345_v16 }
0x20db   : > { %v5361_v14 = vadd.f32 %v5842_v58, %v5353_v17  ;;  %v5362_v15 = vsel %vm854_vm0, %v5360_v23, 0.0 }
0x20dd   : > { %v5363_v9 = vsel %vm854_vm0, %v5361_v14, 0.0 }
0x20de   : > { %v5364_v44 = vadd.f32 %v5363_v9, %v5362_v15 }
0x20e0   : > { %v5365_v57 = vrot.slane %v5364_v44, 4 }
0x20e2   : > { %v5366_v37 = vadd.f32 %v5365_v57, %v5364_v44 }
0x20e4   : > { %v5367_v21 = vrot.slane %v5366_v37, 2 }
0x20e6   : > { %v5368_v41 = vadd.f32 %v5367_v21, %v5366_v37 }
0x20e8   : > { %v5369_v48 = vrot.slane %v5368_v41, 1 }
0x20ea   : > { %v5370_v28 = vadd.f32 %v5369_v48, %v5368_v41 }
0x20ec   : > { %v5372_v25 = vmul.f32 0.0625, %v5370_v28 }
0x20ee   : > { %v5381_v33 = vpack.c.bf16 %v5372_v25, %v5372_v25 }
0x20f0   : > { %6438 = vmatmul.mubr.msk.bf16.vlgmr.msra.gmra.mrb[128].mxu1 %vm854_vm0, %v5381_v33 }
0x20f1   : > { %6445 = vmatprep.mubr.msk.bf16.mxu1 %vm7485_vm1, %v7480_v60  ;;  %6442 = vmatpush3.bf16.msra.mxu1 %v5436_v0 }
0x20f2   : > { %6443 = vmatprep.subr.bf16.mxu1 %v7480_v60  ;;  %v5438_v60 = vld [vmem:[#allocation2] sm:$0x1] }
0x20f5   : > { %6444 = vmatpush3.bf16.msra.mxu1 %v5437_v12 }
0x21c3   : > { %v5424_v43 = vpop.f32.mrb[128].mxu1 }
0x21c4   : > { %v5425_v46 = vadd.f32 %v5424_v43, %v5386_v6  ;;  %v6439_v11 = vpop.f32.mrb[129].mxu1 }
0x21c5   : > { %v5427_v32 = vpop.f32.mrb[130].mxu1 }
0x21c6   : > { %v5430_v50 = vmax.f32 %v5425_v46, 0.0  ;;  %v6440_v22 = vpop.f32.mrb[131].mxu1 }
0x21c8   : > { %v5435_v35 = vpack.c.bf16 %v5430_v50, %v5430_v50 }
0x21ca   : > { %6446 = vmatmul.mubr.msk.bf16.vlgmr.msra.gmra.mrb[132].mxu1 %vm2022_vm5, %v5435_v35 }
0x229d   : > { %v5476_v42 = vpop.f32.mrb[132].mxu1 }
0x229e   : > { %v5477_v34 = vadd.f32 %v5476_v42, %v5438_v60  ;;  %v6447_v36 = vpop.f32.mrb[133].mxu1 }
0x229f   : > { %v5479_v56 = vpop.f32.mrb[134].mxu1 }
0x22a0   : > { %5483 = vst.msk [vmem:[%s781_s5] sm:$0x1] %vm5482_vm9, %v5477_v34  ;;  %v6448_v51 = vpop.f32.mrb[135].mxu1 }
0x22a1 PF: > { %s9640_s8 = sld [smem:[#allocation26_spill]] }
0x22a7   : > { %s38_s23 = sadd.s32 1, %s9640_s8  }
0x22a8   : > { %p35_p2 = scmp.ge.s32.totalorder %s38_s23, 4  }
0x22aa   :  { %37 = sbr.rel (!%p35_p2) target bundleno = 19 (0x13), region = 199 }
0x22b1   :  { %5501 = vsyncpa [#allocation4], 1 }
0x22b2   :  { %5503 = vsyncpa [#allocation4 + $0x1], 1 }
0x22b3   :  { %5504 = vsyncpa [#allocation6], 1 }
0x22b4   :  { %5505 = vsyncpa [#allocation9], 1 }
0x22b5   :  { %5506 = vsyncpa [#allocation12], 1 }
0x22b6   :  { %5507 = vsyncpa [#allocation15], 1 }
0x22b7   :  { %5508 = vsyncpa [#allocation18], 1 }

</bundles_post_ra>
